<compile_context>
chip_gen: v7x
topology: tpu7x:2x2x1
jax: 0.10.0
libtpu: 0.0.40
codegen_flags: <defaults>
</compile_context>

<pallas_src>
import jax
import jax.numpy as jnp
from jax import lax
from jax.experimental import pallas as pl
from jax.experimental.pallas import tpu as pltpu


def multimodal_multitask_forward(ts_features, text_features, texts_weight_mat,
                                 tab_embed, params):
    """Functional Pallas forward (use_ts = use_text = use_tab = True, eval mode)."""
    t_len, batch, d_ts = ts_features.shape
    _, n_docs, d_tx = text_features.shape
    d_tab = tab_embed.shape[-1]
    assert t_len >= 48, "forward indexes timesteps 23 and 47 -> needs t_len >= 48"
    assert t_len % 8 == 0, "t_len must be a multiple of 8 (sublane tiling)"

    (wd1, bd1, wd2, bd2, wl1, bl1, wl2, bl2,
     wi1, bi1, wi2, bi2, wp, bp, wr, br, wm, bm) = params

    dec_h, dec_c = wd1.shape[1], wd2.shape[1]
    los_h, los_c = wl1.shape[1], wl2.shape[1]
    ihm_h, ihm_c = wi1.shape[1], wi2.shape[1]
    pheno_c, readmit_c, ltm_c = wp.shape[1], wr.shape[1], wm.shape[1]

    # ---- lane-packed parameters (6 arrays instead of 18) ----------------------
    los_off = dec_h                       # column layout of the packed first layer
    ihm_off = dec_h + los_h
    tail_off = dec_h + los_h + ihm_h
    tail_w = pheno_c + readmit_c + ltm_c  # [pheno | readmit | ltm] (no hidden layer)
    h_raw = tail_off + tail_w
    h_pack = ((h_raw + 127) // 128) * 128

    w1_cat = jnp.concatenate([wd1, wl1, wi1, wp, wr, wm], axis=1)
    b1_cat = jnp.concatenate([bd1, bl1, bi1, bp, br, bm], axis=1)
    if h_pack != h_raw:
        w1_cat = jnp.pad(w1_cat, ((0, 0), (0, h_pack - h_raw)))
        b1_cat = jnp.pad(b1_cat, ((0, 0), (0, h_pack - h_raw)))
    w1_pack = w1_cat.astype(jnp.bfloat16)        # bf16 MXU operands, f32 accumulation
    b1_cat = b1_cat.astype(jnp.float32)

    dec_pad = ((dec_c + 127) // 128) * 128       # lane-dense decomp output
    wd2_pad = jnp.pad(wd2, ((0, 0), (0, dec_pad - dec_c))).astype(jnp.float32)
    bd2_pad = jnp.pad(bd2, ((0, 0), (0, dec_pad - dec_c))).astype(jnp.float32)

    li_h, li_c = los_h + ihm_h, los_c + ihm_c    # fused los|ihm second layer
    w2_li = jnp.zeros((li_h, li_c), jnp.float32)
    w2_li = w2_li.at[:los_h, :los_c].set(wl2)
    w2_li = w2_li.at[los_h:, los_c:].set(wi2)
    b2_li = jnp.concatenate([bl2, bi2], axis=1).astype(jnp.float32)

    heads_w = li_c + tail_w                      # 37 logit lanes with defaults
    heads_pad = ((heads_w + 127) // 128) * 128

    # ---- batch blocking: several batch elements per grid step -----------------
    b_blk = next(d for d in (8, 4, 2, 1) if batch % d == 0)
    num_blocks = batch // b_blk
    m = b_blk * t_len

    # torch: ts_model output is (T, B, D); permute(1,0,2) kept wrapper-side as a
    # one-time layout op so the kernel only sees batch-major, lane-dense slabs.
    ts_bt = jnp.transpose(ts_features, (1, 0, 2)).astype(jnp.float32)   # (B, T, D_ts)
    txt = text_features.astype(jnp.float32)                             # (B, N, D_tx)
    wmat = texts_weight_mat.astype(jnp.float32)                         # (B, T, N)
    tab = tab_embed.astype(jnp.float32)                                 # (B, D_tab)

    def kernel(ts_ref, txt_ref, wmat_ref, tab_ref,
               w1_ref, b1_ref, wd2_ref, bd2_ref, w2li_ref, b2li_ref,
               decomp_ref, heads_ref):
        # --- text branch: FeatureSpreadWTime == (weights @ feats) / n_docs,
        #     then non-affine LayerNorm (eps=1e-5) over the feature dim, in f32.
        c = jnp.einsum("btn,bnd->btd", wmat_ref[...], txt_ref[...],
                       preferred_element_type=jnp.float32) * (1.0 / n_docs)
        mu = jnp.mean(c, axis=-1, keepdims=True)
        cen = c - mu
        var = jnp.mean(cen * cen, axis=-1, keepdims=True)
        txt_norm = cen * lax.rsqrt(var + 1e-5)                     # (b_blk, T, d_tx)

        # --- per-modality first layer; all six heads' first-layer weights are
        #     lane-packed, so this is one K=128x3 contraction set over M=b_blk*T
        #     rows (no concat, no tab-broadcast materialization).
        ts2d = ts_ref[...].reshape(m, d_ts).astype(jnp.bfloat16)
        tx2d = txt_norm.reshape(m, d_tx).astype(jnp.bfloat16)
        h = (jnp.dot(ts2d, w1_ref[0:d_ts, :], preferred_element_type=jnp.float32)
             + jnp.dot(tx2d, w1_ref[d_ts:d_ts + d_tx, :],
                       preferred_element_type=jnp.float32))
        tab_h = jnp.dot(tab_ref[...].astype(jnp.bfloat16), w1_ref[d_ts + d_tx:, :],
                        preferred_element_type=jnp.float32) + b1_ref[...]
        h3 = h.reshape(b_blk, t_len, h_pack) + tab_h[:, None, :]   # (b_blk, T, H)

        # --- fc_decomp on every timestep (Dropout == identity at inference);
        #     class dim lane-padded to 128 for unmasked stores / one dense DMA.
        h_dec = jnp.maximum(h3.reshape(m, h_pack)[:, 0:dec_h], 0.0)
        dec = (jnp.dot(h_dec, wd2_ref[...], preferred_element_type=jnp.float32)
               + bd2_ref[...])
        decomp_ref[...] = dec.reshape(b_blk, t_len, dec_pad)

        # --- fused per-row heads: select timestep 23 (los) / 47 (ihm) / T-1
        #     (pheno, readmit, ltm) with masked sublane reductions; run the two
        #     tiny second layers as one block-diagonal matmul; pack all 37 logit
        #     lanes into a single lane-dense (b_blk, 128) output row.
        t_iota = lax.broadcasted_iota(jnp.int32, (1, t_len, 1), 1)
        lane_iota = lax.broadcasted_iota(jnp.int32, (1, 1, h_pack), 2)
        sel_li = (((t_iota == 23) & (lane_iota >= los_off) & (lane_iota < ihm_off))
                  | ((t_iota == 47) & (lane_iota >= ihm_off) & (lane_iota < tail_off)))
        li_rows = jnp.sum(jnp.where(sel_li, h3, 0.0), axis=1)      # (b_blk, H)
        li_in = jnp.maximum(li_rows[:, los_off:tail_off], 0.0)     # (b_blk, 96)
        li = (jnp.dot(li_in, w2li_ref[...], preferred_element_type=jnp.float32)
              + b2li_ref[...])                                     # [los | ihm]

        last_rows = jnp.sum(jnp.where(t_iota == t_len - 1, h3, 0.0), axis=1)
        tail = last_rows[:, tail_off:tail_off + tail_w]            # [pheno|readmit|ltm]

        parts = [li, tail]
        if heads_pad > heads_w:
            parts.append(jnp.zeros((b_blk, heads_pad - heads_w), jnp.float32))
        heads_ref[...] = jnp.concatenate(parts, axis=-1)

    in_specs = [
        pl.BlockSpec((b_blk, t_len, d_ts), lambda b: (b, 0, 0)),
        pl.BlockSpec((b_blk, n_docs, d_tx), lambda b: (b, 0, 0)),
        pl.BlockSpec((b_blk, t_len, n_docs), lambda b: (b, 0, 0)),
        pl.BlockSpec((b_blk, d_tab), lambda b: (b, 0)),
        pl.BlockSpec(w1_pack.shape, lambda b: (0, 0)),
        pl.BlockSpec(b1_cat.shape, lambda b: (0, 0)),
        pl.BlockSpec(wd2_pad.shape, lambda b: (0, 0)),
        pl.BlockSpec(bd2_pad.shape, lambda b: (0, 0)),
        pl.BlockSpec(w2_li.shape, lambda b: (0, 0)),
        pl.BlockSpec(b2_li.shape, lambda b: (0, 0)),
    ]
    out_shape = (
        jax.ShapeDtypeStruct((batch, t_len, dec_pad), jnp.float32),
        jax.ShapeDtypeStruct((batch, heads_pad), jnp.float32),
    )
    out_specs = (
        pl.BlockSpec((b_blk, t_len, dec_pad), lambda b: (b, 0, 0)),
        pl.BlockSpec((b_blk, heads_pad), lambda b: (b, 0)),
    )

    decomp_full, heads = pl.pallas_call(
        kernel,
        out_shape=out_shape,
        grid=(num_blocks,),
        in_specs=in_specs,
        out_specs=out_specs,
        compiler_params=pltpu.CompilerParams(dimension_semantics=("parallel",)),
    )(ts_bt, txt, wmat, tab, w1_pack, b1_cat, wd2_pad, bd2_pad, w2_li, b2_li)

    # un-pack the lane-padded outputs (cheap XLA slices)
    decomp = decomp_full[:, :, :dec_c].reshape(batch * t_len, dec_c)
    los = heads[:, 0:los_c]
    ihm = heads[:, los_c:li_c]
    pheno = heads[:, li_c:li_c + pheno_c]
    readmit = heads[:, li_c + pheno_c:li_c + pheno_c + readmit_c]
    ltm = heads[:, li_c + pheno_c + readmit_c:heads_w]
    return decomp, los, ihm, pheno, readmit, ltm


def _reference_forward(ts_features, text_features, texts_weight_mat, tab_embed, params):
    """Pure-JAX f32 reference mirroring the PyTorch forward (inference mode)."""
    (wd1, bd1, wd2, bd2, wl1, bl1, wl2, bl2,
     wi1, bi1, wi2, bi2, wp, bp, wr, br, wm, bm) = params
    t_len, batch, d_ts = ts_features.shape
    n_docs = text_features.shape[1]

    ts_out = jnp.transpose(ts_features, (1, 0, 2)).reshape(batch * t_len, d_ts)
    c = jnp.einsum("btn,bnd->btd", texts_weight_mat, text_features) / n_docs
    c = c.reshape(batch * t_len, -1)
    mean = jnp.mean(c, axis=-1, keepdims=True)
    var = jnp.mean((c - mean) ** 2, axis=-1, keepdims=True)
    txt_out = (c - mean) / jnp.sqrt(var + 1e-5)
    tab_rep = jnp.repeat(tab_embed, t_len, axis=0)
    out = jnp.concatenate([ts_out, txt_out, tab_rep], axis=1)
    out_copy = out.reshape(batch, t_len, -1)

    def mlp(x, w1, b1, w2, b2):
        return jnp.maximum(x @ w1 + b1, 0.0) @ w2 + b2

    decomp = mlp(out, wd1, bd1, wd2, bd2)
    los = mlp(out_copy[:, 23, :], wl1, bl1, wl2, bl2)
    ihm = mlp(out_copy[:, 47, :], wi1, bi1, wi2, bi2)
    last = out_copy[:, -1, :]
    return (decomp, los, ihm, last @ wp + bp, last @ wr + br, last @ wm + bm)


if __name__ == "__main__":
    B, T, N = 16, 48, 8                   # T must be >= 48 (forward indexes timestep 47)
    D_TS, D_TX, D_TAB = 128, 128, 128     # lane-aligned modality dims
    OUT_DIM = D_TS + D_TX + D_TAB
    DECOMP_C, LOS_C, IHM_C, PHENO_C, READMIT_C, LTM_C = 2, 3, 2, 25, 5, 2

    key = jax.random.PRNGKey(0)
    ks = jax.random.split(key, 24)

    def rnd(k, shape, scale=1.0):
        return scale * jax.random.normal(k, shape, dtype=jnp.float32)

    ts_features = rnd(ks[0], (T, B, D_TS))
    text_features = rnd(ks[1], (B, N, D_TX))
    texts_weight_mat = rnd(ks[2], (B, T, N))
    tab_embed = rnd(ks[3], (B, D_TAB))

    params = (
        rnd(ks[4], (OUT_DIM, 128), 0.05),  rnd(ks[5], (1, 128), 0.05),        # fc_decomp
        rnd(ks[6], (128, DECOMP_C), 0.05), rnd(ks[7], (1, DECOMP_C), 0.05),
        rnd(ks[8], (OUT_DIM, 32), 0.05),   rnd(ks[9], (1, 32), 0.05),         # fc_los
        rnd(ks[10], (32, LOS_C), 0.05),    rnd(ks[11], (1, LOS_C), 0.05),
        rnd(ks[12], (OUT_DIM, 64), 0.05),  rnd(ks[13], (1, 64), 0.05),        # fc_ihm
        rnd(ks[14], (64, IHM_C), 0.05),    rnd(ks[15], (1, IHM_C), 0.05),
        rnd(ks[16], (OUT_DIM, PHENO_C), 0.05),   rnd(ks[17], (1, PHENO_C), 0.05),
        rnd(ks[18], (OUT_DIM, READMIT_C), 0.05), rnd(ks[19], (1, READMIT_C), 0.05),
        # TODO(synk): fc_ltm is used in the reference forward but never defined in
        # __init__ of the PyTorch source; implemented as Linear(out_dim, ltm_classes).
        rnd(ks[20], (OUT_DIM, LTM_C), 0.05),     rnd(ks[21], (1, LTM_C), 0.05),
    )

    outs = jax.jit(multimodal_multitask_forward)(
        ts_features, text_features, texts_weight_mat, tab_embed, params)
    outs = jax.block_until_ready(outs)

    refs = _reference_forward(ts_features, text_features, texts_weight_mat,
                              tab_embed, params)
    refs = jax.block_until_ready(refs)

    expected_shapes = [(B * T, DECOMP_C), (B, LOS_C), (B, IHM_C),
                       (B, PHENO_C), (B, READMIT_C), (B, LTM_C)]
    for o, r, s in zip(outs, refs, expected_shapes):
        assert o.shape == tuple(s), (o.shape, s)
        # bf16 MXU operands (f32 accumulation) vs. pure-f32 reference
        assert bool(jnp.allclose(o, r, rtol=2e-2, atol=2e-2)), \
            float(jnp.max(jnp.abs(o - r)))
    print("KERNEL_OK")
</pallas_src>

<mosaic_0001>
module attributes {stable_mosaic.version = 11 : i64} {
  func.func @kernel(%arg0: i32, %arg1: memref<8x48x128xf32, #tpu.memory_space<vmem>>, %arg2: memref<8x8x128xf32, #tpu.memory_space<vmem>>, %arg3: memref<8x48x8xf32, #tpu.memory_space<vmem>>, %arg4: memref<8x128xf32, #tpu.memory_space<vmem>>, %arg5: memref<384x256xbf16, #tpu.memory_space<vmem>>, %arg6: memref<1x256xf32, #tpu.memory_space<vmem>>, %arg7: memref<128x128xf32, #tpu.memory_space<vmem>>, %arg8: memref<1x128xf32, #tpu.memory_space<vmem>>, %arg9: memref<96x5xf32, #tpu.memory_space<vmem>>, %arg10: memref<1x5xf32, #tpu.memory_space<vmem>>, %arg11: memref<8x48x128xf32, #tpu.memory_space<vmem>>, %arg12: memref<8x128xf32, #tpu.memory_space<vmem>>) attributes {dimension_semantics = [#tpu.dimension_semantics<parallel>], iteration_bounds = array<i64: 2>, scalar_prefetch = 0 : i64, scratch_operands = 0 : i64, tpu.core_type = #tpu.core_type<tc>, window_params = [{transform_indices = @transform_0, window_bounds = array<i64: 8, 48, 128>}, {transform_indices = @transform_1, window_bounds = array<i64: 8, 8, 128>}, {transform_indices = @transform_2, window_bounds = array<i64: 8, 48, 8>}, {transform_indices = @transform_3, window_bounds = array<i64: 8, 128>}, {pipeline_mode = #tpu.pipeline_mode<synchronous>, transform_indices = @transform_4, window_bounds = array<i64: 384, 256>}, {pipeline_mode = #tpu.pipeline_mode<synchronous>, transform_indices = @transform_5, window_bounds = array<i64: 1, 256>}, {pipeline_mode = #tpu.pipeline_mode<synchronous>, transform_indices = @transform_6, window_bounds = array<i64: 128, 128>}, {pipeline_mode = #tpu.pipeline_mode<synchronous>, transform_indices = @transform_7, window_bounds = array<i64: 1, 128>}, {pipeline_mode = #tpu.pipeline_mode<synchronous>, transform_indices = @transform_8, window_bounds = array<i64: 96, 5>}, {pipeline_mode = #tpu.pipeline_mode<synchronous>, transform_indices = @transform_9, window_bounds = array<i64: 1, 5>}, {transform_indices = @transform_10, window_bounds = array<i64: 8, 48, 128>}, {transform_indices = @transform_11, window_bounds = array<i64: 8, 128>}]} {
    %c0 = arith.constant 0 : index
    %c0_0 = arith.constant 0 : index
    %c0_1 = arith.constant 0 : index
    %0 = vector.load %arg3[%c0, %c0_0, %c0_1] : memref<8x48x8xf32, #tpu.memory_space<vmem>>, vector<8x48x8xf32>
    %c0_2 = arith.constant 0 : index
    %c0_3 = arith.constant 0 : index
    %c0_4 = arith.constant 0 : index
    %1 = vector.load %arg2[%c0_2, %c0_3, %c0_4] : memref<8x8x128xf32, #tpu.memory_space<vmem>>, vector<8x8x128xf32>
    "tpu.trace_start"() <{level = 10 : i32, message = "btn,bnd->btd"}> : () -> ()
    %cst = arith.constant dense<0.000000e+00> : vector<8x48x128xf32>
    %2 = tpu.matmul %0, %1, %cst {dimension_numbers = #tpu.dot_dimension_numbers<[2], [1], [1], [2], [0, 0, 0, 1, 1, 2], [0], [0]>} : vector<8x48x8xf32>, vector<8x8x128xf32>, vector<8x48x128xf32> -> vector<8x48x128xf32>
    "tpu.trace_stop"() : () -> ()
    %cst_5 = arith.constant 1.250000e-01 : f32
    %3 = vector.broadcast %cst_5 : f32 to vector<8x48x128xf32>
    %4 = arith.mulf %2, %3 : vector<8x48x128xf32>
    %cst_6 = arith.constant dense<0.000000e+00> : vector<8x48xf32>
    %5 = vector.multi_reduction <add>, %4, %cst_6 [2] : vector<8x48x128xf32> to vector<8x48xf32>
    %6 = vector.shape_cast %5 : vector<8x48xf32> to vector<8x48x1xf32>
    %cst_7 = arith.constant 1.280000e+02 : f32
    %7 = vector.broadcast %cst_7 : f32 to vector<8x48x1xf32>
    %8 = arith.divf %6, %7 : vector<8x48x1xf32>
    %9 = vector.broadcast %8 : vector<8x48x1xf32> to vector<8x48x128xf32>
    %10 = arith.subf %4, %9 : vector<8x48x128xf32>
    %11 = arith.mulf %10, %10 : vector<8x48x128xf32>
    %cst_8 = arith.constant dense<0.000000e+00> : vector<8x48xf32>
    %12 = vector.multi_reduction <add>, %11, %cst_8 [2] : vector<8x48x128xf32> to vector<8x48xf32>
    %13 = vector.shape_cast %12 : vector<8x48xf32> to vector<8x48x1xf32>
    %cst_9 = arith.constant 1.280000e+02 : f32
    %14 = vector.broadcast %cst_9 : f32 to vector<8x48x1xf32>
    %15 = arith.divf %13, %14 : vector<8x48x1xf32>
    %cst_10 = arith.constant 9.99999974E-6 : f32
    %16 = vector.broadcast %cst_10 : f32 to vector<8x48x1xf32>
    %17 = arith.addf %15, %16 : vector<8x48x1xf32>
    %18 = math.rsqrt %17 : vector<8x48x1xf32>
    %19 = vector.broadcast %18 : vector<8x48x1xf32> to vector<8x48x128xf32>
    %20 = arith.mulf %10, %19 : vector<8x48x128xf32>
    %c0_11 = arith.constant 0 : index
    %c0_12 = arith.constant 0 : index
    %c0_13 = arith.constant 0 : index
    %21 = vector.load %arg1[%c0_11, %c0_12, %c0_13] : memref<8x48x128xf32, #tpu.memory_space<vmem>>, vector<8x48x128xf32>
    %22 = vector.shape_cast %21 : vector<8x48x128xf32> to vector<384x128xf32>
    %23 = arith.truncf %22 : vector<384x128xf32> to vector<384x128xbf16>
    %24 = vector.shape_cast %20 : vector<8x48x128xf32> to vector<384x128xf32>
    %25 = arith.truncf %24 : vector<384x128xf32> to vector<384x128xbf16>
    %c0_14 = arith.constant 0 : index
    %c0_15 = arith.constant 0 : index
    %26 = vector.load %arg5[%c0_14, %c0_15] : memref<384x256xbf16, #tpu.memory_space<vmem>>, vector<128x256xbf16>
    %cst_16 = arith.constant dense<0.000000e+00> : vector<384x256xf32>
    %27 = tpu.matmul %23, %26, %cst_16 {dimension_numbers = #tpu.dot_dimension_numbers<[1], [0], [0], [1], [0, 0, 1, 1], [], []>} : vector<384x128xbf16>, vector<128x256xbf16>, vector<384x256xf32> -> vector<384x256xf32>
    %c128 = arith.constant 128 : index
    %c0_17 = arith.constant 0 : index
    %28 = vector.load %arg5[%c128, %c0_17] : memref<384x256xbf16, #tpu.memory_space<vmem>>, vector<128x256xbf16>
    %cst_18 = arith.constant dense<0.000000e+00> : vector<384x256xf32>
    %29 = tpu.matmul %25, %28, %cst_18 {dimension_numbers = #tpu.dot_dimension_numbers<[1], [0], [0], [1], [0, 0, 1, 1], [], []>} : vector<384x128xbf16>, vector<128x256xbf16>, vector<384x256xf32> -> vector<384x256xf32>
    %30 = arith.addf %27, %29 : vector<384x256xf32>
    %c0_19 = arith.constant 0 : index
    %c0_20 = arith.constant 0 : index
    %31 = vector.load %arg4[%c0_19, %c0_20] : memref<8x128xf32, #tpu.memory_space<vmem>>, vector<8x128xf32>
    %32 = arith.truncf %31 : vector<8x128xf32> to vector<8x128xbf16>
    %c256 = arith.constant 256 : index
    %c0_21 = arith.constant 0 : index
    %33 = vector.load %arg5[%c256, %c0_21] : memref<384x256xbf16, #tpu.memory_space<vmem>>, vector<128x256xbf16>
    %cst_22 = arith.constant dense<0.000000e+00> : vector<8x256xf32>
    %34 = tpu.matmul %32, %33, %cst_22 {dimension_numbers = #tpu.dot_dimension_numbers<[1], [0], [0], [1], [0, 0, 1, 1], [], []>} : vector<8x128xbf16>, vector<128x256xbf16>, vector<8x256xf32> -> vector<8x256xf32>
    %c0_23 = arith.constant 0 : index
    %c0_24 = arith.constant 0 : index
    %35 = vector.load %arg6[%c0_23, %c0_24] : memref<1x256xf32, #tpu.memory_space<vmem>>, vector<1x256xf32>
    %36 = vector.broadcast %35 : vector<1x256xf32> to vector<8x256xf32>
    %37 = arith.addf %34, %36 : vector<8x256xf32>
    %38 = vector.shape_cast %30 : vector<384x256xf32> to vector<8x48x256xf32>
    %39 = vector.shape_cast %37 : vector<8x256xf32> to vector<8x1x256xf32>
    %40 = vector.broadcast %39 : vector<8x1x256xf32> to vector<8x48x256xf32>
    %41 = arith.addf %38, %40 : vector<8x48x256xf32>
    %42 = vector.shape_cast %41 : vector<8x48x256xf32> to vector<384x256xf32>
    %43 = vector.extract_strided_slice %42 {offsets = [0, 0], sizes = [384, 128], strides = [1, 1]} : vector<384x256xf32> to vector<384x128xf32>
    %cst_25 = arith.constant 0.000000e+00 : f32
    %44 = vector.broadcast %cst_25 : f32 to vector<384x128xf32>
    %45 = arith.maximumf %43, %44 : vector<384x128xf32>
    %c0_26 = arith.constant 0 : index
    %c0_27 = arith.constant 0 : index
    %46 = vector.load %arg7[%c0_26, %c0_27] : memref<128x128xf32, #tpu.memory_space<vmem>>, vector<128x128xf32>
    %cst_28 = arith.constant dense<0.000000e+00> : vector<384x128xf32>
    %47 = tpu.matmul %45, %46, %cst_28 {dimension_numbers = #tpu.dot_dimension_numbers<[1], [0], [0], [1], [0, 0, 1, 1], [], []>} : vector<384x128xf32>, vector<128x128xf32>, vector<384x128xf32> -> vector<384x128xf32>
    %c0_29 = arith.constant 0 : index
    %c0_30 = arith.constant 0 : index
    %48 = vector.load %arg8[%c0_29, %c0_30] : memref<1x128xf32, #tpu.memory_space<vmem>>, vector<1x128xf32>
    %49 = vector.broadcast %48 : vector<1x128xf32> to vector<384x128xf32>
    %50 = arith.addf %47, %49 : vector<384x128xf32>
    %51 = vector.shape_cast %50 : vector<384x128xf32> to vector<8x48x128xf32>
    %c0_31 = arith.constant 0 : index
    %c0_32 = arith.constant 0 : index
    %c0_33 = arith.constant 0 : index
    %52 = vector.load %arg11[%c0_31, %c0_32, %c0_33] : memref<8x48x128xf32, #tpu.memory_space<vmem>>, vector<8x48x128xf32>
    tpu.vector_store %arg11[%c0_31, %c0_32, %c0_33], %51 {strides = array<i32>} : memref<8x48x128xf32, #tpu.memory_space<vmem>>, vector<8x48x128xf32>,
    %53 = tpu.iota {dimensions = array<i32: 1>} : vector<1x48x1xi32>
    %54 = tpu.iota {dimensions = array<i32: 2>} : vector<1x1x256xi32>
    %c23_i32 = arith.constant 23 : i32
    %55 = vector.broadcast %c23_i32 : i32 to vector<1x48x1xi32>
    %56 = arith.cmpi eq, %53, %55 : vector<1x48x1xi32>
    %c128_i32 = arith.constant 128 : i32
    %57 = vector.broadcast %c128_i32 : i32 to vector<1x1x256xi32>
    %58 = arith.cmpi sge, %54, %57 : vector<1x1x256xi32>
    %59 = vector.broadcast %56 : vector<1x48x1xi1> to vector<1x48x256xi1>
    %60 = vector.broadcast %58 : vector<1x1x256xi1> to vector<1x48x256xi1>
    %61 = arith.andi %59, %60 : vector<1x48x256xi1>
    %c160_i32 = arith.constant 160 : i32
    %62 = vector.broadcast %c160_i32 : i32 to vector<1x1x256xi32>
    %63 = arith.cmpi slt, %54, %62 : vector<1x1x256xi32>
    %64 = vector.broadcast %63 : vector<1x1x256xi1> to vector<1x48x256xi1>
    %65 = arith.andi %61, %64 : vector<1x48x256xi1>
    %c47_i32 = arith.constant 47 : i32
    %66 = vector.broadcast %c47_i32 : i32 to vector<1x48x1xi32>
    %67 = arith.cmpi eq, %53, %66 : vector<1x48x1xi32>
    %c160_i32_34 = arith.constant 160 : i32
    %68 = vector.broadcast %c160_i32_34 : i32 to vector<1x1x256xi32>
    %69 = arith.cmpi sge, %54, %68 : vector<1x1x256xi32>
    %70 = vector.broadcast %67 : vector<1x48x1xi1> to vector<1x48x256xi1>
    %71 = vector.broadcast %69 : vector<1x1x256xi1> to vector<1x48x256xi1>
    %72 = arith.andi %70, %71 : vector<1x48x256xi1>
    %c224_i32 = arith.constant 224 : i32
    %73 = vector.broadcast %c224_i32 : i32 to vector<1x1x256xi32>
    %74 = arith.cmpi slt, %54, %73 : vector<1x1x256xi32>
    %75 = vector.broadcast %74 : vector<1x1x256xi1> to vector<1x48x256xi1>
    %76 = arith.andi %72, %75 : vector<1x48x256xi1>
    %77 = arith.ori %65, %76 : vector<1x48x256xi1>
    %cst_35 = arith.constant 0.000000e+00 : f32
    %78 = vector.shape_cast %77 : vector<1x48x256xi1> to vector<1x48x256xi1>
    %79 = vector.broadcast %78 : vector<1x48x256xi1> to vector<8x48x256xi1>
    %80 = vector.broadcast %cst_35 : f32 to vector<8x48x256xf32>
    %81 = arith.select %79, %41, %80 : vector<8x48x256xi1>, vector<8x48x256xf32>
    %cst_36 = arith.constant dense<0.000000e+00> : vector<8x256xf32>
    %82 = vector.multi_reduction <add>, %81, %cst_36 [1] : vector<8x48x256xf32> to vector<8x256xf32>
    %83 = vector.extract_strided_slice %82 {offsets = [0, 128], sizes = [8, 96], strides = [1, 1]} : vector<8x256xf32> to vector<8x96xf32>
    %cst_37 = arith.constant 0.000000e+00 : f32
    %84 = vector.broadcast %cst_37 : f32 to vector<8x96xf32>
    %85 = arith.maximumf %83, %84 : vector<8x96xf32>
    %c0_38 = arith.constant 0 : index
    %c0_39 = arith.constant 0 : index
    %86 = vector.load %arg9[%c0_38, %c0_39] : memref<96x5xf32, #tpu.memory_space<vmem>>, vector<96x5xf32>
    %cst_40 = arith.constant dense<0.000000e+00> : vector<8x5xf32>
    %87 = tpu.matmul %85, %86, %cst_40 {dimension_numbers = #tpu.dot_dimension_numbers<[1], [0], [0], [1], [0, 0, 1, 1], [], []>} : vector<8x96xf32>, vector<96x5xf32>, vector<8x5xf32> -> vector<8x5xf32>
    %c0_41 = arith.constant 0 : index
    %c0_42 = arith.constant 0 : index
    %88 = vector.load %arg10[%c0_41, %c0_42] : memref<1x5xf32, #tpu.memory_space<vmem>>, vector<1x5xf32>
    %89 = vector.broadcast %88 : vector<1x5xf32> to vector<8x5xf32>
    %90 = arith.addf %87, %89 : vector<8x5xf32>
    %c47_i32_43 = arith.constant 47 : i32
    %91 = vector.broadcast %c47_i32_43 : i32 to vector<1x48x1xi32>
    %92 = arith.cmpi eq, %53, %91 : vector<1x48x1xi32>
    %cst_44 = arith.constant 0.000000e+00 : f32
    %93 = vector.shape_cast %92 : vector<1x48x1xi1> to vector<1x48x1xi1>
    %94 = vector.broadcast %93 : vector<1x48x1xi1> to vector<8x48x256xi1>
    %95 = vector.broadcast %cst_44 : f32 to vector<8x48x256xf32>
    %96 = arith.select %94, %41, %95 : vector<8x48x256xi1>, vector<8x48x256xf32>
    %cst_45 = arith.constant dense<0.000000e+00> : vector<8x256xf32>
    %97 = vector.multi_reduction <add>, %96, %cst_45 [1] : vector<8x48x256xf32> to vector<8x256xf32>
    %98 = vector.extract_strided_slice %97 {offsets = [0, 224], sizes = [8, 32], strides = [1, 1]} : vector<8x256xf32> to vector<8x32xf32>
    %cst_46 = arith.constant 0.000000e+00 : f32
    %99 = vector.broadcast %cst_46 : f32 to vector<8x91xf32>
    %100 = tpu.concatenate %90, %98, %99 in 1 : vector<8x5xf32>, vector<8x32xf32>, vector<8x91xf32> -> vector<8x128xf32>
    %c0_47 = arith.constant 0 : index
    %c0_48 = arith.constant 0 : index
    %101 = vector.load %arg12[%c0_47, %c0_48] : memref<8x128xf32, #tpu.memory_space<vmem>>, vector<8x128xf32>
    tpu.vector_store %arg12[%c0_47, %c0_48], %100 {strides = array<i32>} : memref<8x128xf32, #tpu.memory_space<vmem>>, vector<8x128xf32>,
    return
  }
  func.func @transform_0(%arg0: i32) -> (i32, i32, i32) {
    %c0_i32 = arith.constant 0 : i32
    %c0_i32_0 = arith.constant 0 : i32
    %c0_i32_1 = arith.constant 0 : i32
    return %arg0, %c0_i32, %c0_i32_0 : i32, i32, i32
  }
  func.func @transform_1(%arg0: i32) -> (i32, i32, i32) {
    %c0_i32 = arith.constant 0 : i32
    %c0_i32_0 = arith.constant 0 : i32
    %c0_i32_1 = arith.constant 0 : i32
    return %arg0, %c0_i32, %c0_i32_0 : i32, i32, i32
  }
  func.func @transform_2(%arg0: i32) -> (i32, i32, i32) {
    %c0_i32 = arith.constant 0 : i32
    %c0_i32_0 = arith.constant 0 : i32
    %c0_i32_1 = arith.constant 0 : i32
    return %arg0, %c0_i32, %c0_i32_0 : i32, i32, i32
  }
  func.func @transform_3(%arg0: i32) -> (i32, i32) {
    %c0_i32 = arith.constant 0 : i32
    %c0_i32_0 = arith.constant 0 : i32
    return %arg0, %c0_i32 : i32, i32
  }
  func.func @transform_4(%arg0: i32) -> (i32, i32) {
    %c0_i32 = arith.constant 0 : i32
    %c0_i32_0 = arith.constant 0 : i32
    %c0_i32_1 = arith.constant 0 : i32
    return %c0_i32, %c0_i32_0 : i32, i32
  }
  func.func @transform_5(%arg0: i32) -> (i32, i32) {
    %c0_i32 = arith.constant 0 : i32
    %c0_i32_0 = arith.constant 0 : i32
    %c0_i32_1 = arith.constant 0 : i32
    return %c0_i32, %c0_i32_0 : i32, i32
  }
  func.func @transform_6(%arg0: i32) -> (i32, i32) {
    %c0_i32 = arith.constant 0 : i32
    %c0_i32_0 = arith.constant 0 : i32
    %c0_i32_1 = arith.constant 0 : i32
    return %c0_i32, %c0_i32_0 : i32, i32
  }
  func.func @transform_7(%arg0: i32) -> (i32, i32) {
    %c0_i32 = arith.constant 0 : i32
    %c0_i32_0 = arith.constant 0 : i32
    %c0_i32_1 = arith.constant 0 : i32
    return %c0_i32, %c0_i32_0 : i32, i32
  }
  func.func @transform_8(%arg0: i32) -> (i32, i32) {
    %c0_i32 = arith.constant 0 : i32
    %c0_i32_0 = arith.constant 0 : i32
    %c0_i32_1 = arith.constant 0 : i32
    return %c0_i32, %c0_i32_0 : i32, i32
  }
  func.func @transform_9(%arg0: i32) -> (i32, i32) {
    %c0_i32 = arith.constant 0 : i32
    %c0_i32_0 = arith.constant 0 : i32
    %c0_i32_1 = arith.constant 0 : i32
    return %c0_i32, %c0_i32_0 : i32, i32
  }
  func.func @transform_10(%arg0: i32) -> (i32, i32, i32) {
    %c0_i32 = arith.constant 0 : i32
    %c0_i32_0 = arith.constant 0 : i32
    %c0_i32_1 = arith.constant 0 : i32
    return %arg0, %c0_i32, %c0_i32_0 : i32, i32, i32
  }
  func.func @transform_11(%arg0: i32) -> (i32, i32) {
    %c0_i32 = arith.constant 0 : i32
    %c0_i32_0 = arith.constant 0 : i32
    return %arg0, %c0_i32 : i32, i32
  }
}

</mosaic_0001>

<bundles_post_ra>
// kernel: multimodal_multitask_forward.1
= control target key start
LH: loop header
LB: loop body
LE: loop exit
PB: predicated region body
PF: predicated region fallthrough
CT: control target
= control target key end

     0   :  { %s5079_s17 = smov 0   ;;  %s6823_s0 = inlined_call_operand.vmem [shape: f32[16,48,128], index: 0, kind: input, shape index: {}]   ;;  %s6824_s1 = inlined_call_operand.vmem [shape: f32[16,8,128], index: 1, kind: input, shape index: {}]   ;;  %s6825_s2 = inlined_call_operand.vmem [shape: f32[16,48,8], index: 2, kind: input, shape index: {}]   ;;  %s6826_s3 = inlined_call_operand.vmem [shape: f32[16,128], index: 3, kind: input, shape index: {}]   ;;  %s6827_s4 = inlined_call_operand.vmem [shape: bf16[384,256], index: 4, kind: input, shape index: {}]   ;;  %s6828_s5 = inlined_call_operand.vmem [shape: f32[1,256], index: 5, kind: input, shape index: {}]   ;;  %s6829_s6 = inlined_call_operand.vmem [shape: f32[128,128], index: 6, kind: input, shape index: {}]   ;;  %s6830_s7 = inlined_call_operand.vmem [shape: f32[1,128], index: 7, kind: input, shape index: {}]   ;;  %s6831_s8 = inlined_call_operand.vmem [shape: f32[96,5], index: 8, kind: input, shape index: {}]   ;;  %s6832_s9 = inlined_call_operand.vmem [shape: f32[1,5], index: 9, kind: input, shape index: {}]   ;;  %s6833_s10 = inlined_call_operand.vmem [shape: f32[16,48,128], index: 10, kind: output, shape index: {0}]   ;;  %s6834_s11 = inlined_call_operand.vmem [shape: f32[16,128], index: 11, kind: output, shape index: {1}]  }
   0x1 LB: > { %s5085_s18 = sadd.s32 4294967295, %s5011_s17   ;;  %p4292_p0 = scmp.ge.s32.totalorder %s5011_s17, 1  ;;  %s5011_s17 = sphi %s5079_s17, %s22_s17  }
   0x2   : > { %p374_p1 = scmp.lt.s32.totalorder %s5011_s17, 3 }
   0x4   : > { %p375_p2 = pnand %p4292_p0, %p374_p1 }
   0x6   : > { %378 = sbr.rel (%p375_p2) target bundleno = 1476 (0x5c4), region = 60 }
   0xd   : > { %s4293_s19 = sshll.u32 %s5085_s18, 3  ;;  %vm527_vm0 = vcmask 64512   ;;  %p455_p4 = scmp.lt.s32.totalorder %s5085_s18, 1  ;;  %vm5015_vm1 = vmmov 0   ;;  %vm3917_vm10 = vcmask 1041409   ;;  %vm3919_vm11 = vcmask 1042434  }
   0xe   : > { %p436_p3 = scmp.lt.s32.totalorder %s4293_s19, 15  ;;  %vm3921_vm12 = vcmask 1043459   ;;  %vm3923_vm13 = vcmask 1044484   ;;  %vm3925_vm14 = vcmask 1045509   ;;  %vm3927_vm15 = vcmask 1046534  }
   0xf   : > { %s6962_s18 = smov (!%p455_p4, %s5085_s18), 1 }
  0x10   : > { %s6960_s19 = smov (!%p436_p3, %s4293_s19), 15  ;;  %s4299_s28 = sshll.u32 %s6962_s18, 3 }
  0x11   : > { %s5090_s20 = smul.u32 48, %s6960_s19  ;;  %s4296_s21 = sshll.u32 %s6960_s19, 3 }
  0x12   : > { %s5095_s24 = scalar_lea.vmem %s6824_s1, %s4296_s21  ;;  %s458_s15 = scalar_lea.vmem %s6826_s3, %s4299_s28 }
  0x13   : > { %s5101_s27 = scalar_lea.vmem %s6825_s2, %s5090_s20  ;;  %v519_v0 = vld [vmem:[%s5095_s24] sm:$0xff]  ;;  %v520_v1 = vld [vmem:[%s5095_s24 + $0x8] sm:$0xff]  ;;  %v521_v5 = vld [vmem:[%s5095_s24 + $0x10] sm:$0xff]  ;;  %s5603_s26 = scalar_lea.vmem %s6823_s0, %s5090_s20 }
  0x14   : > { %4537 = vmatprep.subr.mxu0 %v519_v0  ;;  %v471_v2 = vld [vmem:[%s5101_s27] sm:$0xff]  ;;  %v472_v3 = vld [vmem:[%s5101_s27 + $0x8] sm:$0xff]  ;;  %v473_v4 = vld [vmem:[%s5101_s27 + $0x10] sm:$0xff]  ;;  %4548 = vmatprep.subr.mxu1 %v520_v1  ;;  %s6714_s23 = scalar_lea.vmem %s6833_s10, %s5090_s20  ;;  %s469_s29 = scalar_lea.vmem %s6834_s11, %s4299_s28 }
  0x15   : > { %4538 = vmatpush3.msra.mxu0 %v519_v0  ;;  %4539 = vmatprep.mubr.msk.f32.mxu0 %vm527_vm0, %v471_v2  ;;  %v477_v6 = vld [vmem:[%s5101_s27 + $0x30] sm:$0xff]  ;;  %v478_v7 = vld [vmem:[%s5101_s27 + $0x38] sm:$0xff]  ;;  %v479_v8 = vld [vmem:[%s5101_s27 + $0x40] sm:$0xff] }
  0x16   : > { %4540 = vmatmul.mubr.msk.f32.vlgmr.msra.gmra.mrb[0].mxu0 %vm527_vm0, %v472_v3  ;;  %4549 = vmatpush3.msra.mxu1 %v520_v1  ;;  %v474_v9 = vld [vmem:[%s5101_s27 + $0x18] sm:$0xff]  ;;  %v475_v10 = vld [vmem:[%s5101_s27 + $0x20] sm:$0xff]  ;;  %v480_v11 = vld [vmem:[%s5101_s27 + $0x48] sm:$0xff] }
  0x17   : > { %4542 = vmatprep.mubr.msk.f32.mxu0 %vm527_vm0, %v473_v4  ;;  %4550 = vmatprep.mubr.msk.f32.mxu1 %vm527_vm0, %v477_v6  ;;  %v481_v12 = vld [vmem:[%s5101_s27 + $0x50] sm:$0xff]  ;;  %v522_v13 = vld [vmem:[%s5095_s24 + $0x18] sm:$0xff]  ;;  %v476_v14 = vld [vmem:[%s5101_s27 + $0x28] sm:$0xff] }
  0x18   : > { %4551 = vmatmul.mubr.msk.f32.vlgmr.msra.gmra.mrb[0].mxu1 %vm527_vm0, %v478_v7  ;;  %4559 = vmatprep.subr.mxu0 %v521_v5  ;;  %v483_v15 = vld [vmem:[%s5101_s27 + $0x60] sm:$0xff]  ;;  %v482_v17 = vld [vmem:[%s5101_s27 + $0x58] sm:$0xff]  ;;  %v489_v18 = vld [vmem:[%s5101_s27 + $0x90] sm:$0xff] }
  0x19   : > { %4553 = vmatprep.mubr.msk.f32.mxu1 %vm527_vm0, %v479_v8  ;;  %4560 = vmatpush3.msra.mxu0 %v521_v5  ;;  %v523_v16 = vld [vmem:[%s5095_s24 + $0x20] sm:$0xff]  ;;  %v524_v19 = vld [vmem:[%s5095_s24 + $0x28] sm:$0xff]  ;;  %v485_v21 = vld [vmem:[%s5101_s27 + $0x70] sm:$0xff] }
  0x1a   : > { %4543 = vmatmul.mubr.msk.f32.gmra.mrb[2].mxu0 %vm527_vm0, %v474_v9  ;;  %4570 = vmatprep.subr.mxu1 %v522_v13  ;;  %v484_v20 = vld [vmem:[%s5101_s27 + $0x68] sm:$0xff]  ;;  %v490_v22 = vld [vmem:[%s5101_s27 + $0x98] sm:$0xff]  ;;  %v491_v23 = vld [vmem:[%s5101_s27 + $0xa0] sm:$0xff] }
  0x1b   : > { %4545 = vmatprep.mubr.msk.f32.mxu0 %vm527_vm0, %v475_v10  ;;  %4571 = vmatpush3.msra.mxu1 %v522_v13  ;;  %v486_v24 = vld [vmem:[%s5101_s27 + $0x78] sm:$0xff]  ;;  %v487_v25 = vld [vmem:[%s5101_s27 + $0x80] sm:$0xff]  ;;  %v492_v26 = vld [vmem:[%s5101_s27 + $0xa8] sm:$0xff] }
  0x1c   : > { %4554 = vmatmul.mubr.msk.f32.gmra.mrb[2].mxu1 %vm527_vm0, %v480_v11  ;;  %4581 = vmatprep.subr.mxu0 %v523_v16  ;;  %v493_v27 = vld [vmem:[%s5101_s27 + $0xb0] sm:$0xff]  ;;  %v488_v28 = vld [vmem:[%s5101_s27 + $0x88] sm:$0xff]  ;;  %v495_v29 = vld [vmem:[%s5101_s27 + $0xc0] sm:$0xff] }
  0x1d   : > { %4556 = vmatprep.mubr.msk.f32.mxu1 %vm527_vm0, %v481_v12  ;;  %4592 = vmatprep.subr.mxu1 %v524_v19  ;;  %v494_v30 = vld [vmem:[%s5101_s27 + $0xb8] sm:$0xff]  ;;  %v501_v31 = vld [vmem:[%s5101_s27 + $0xf0] sm:$0xff]  ;;  %v496_v32 = vld [vmem:[%s5101_s27 + $0xc8] sm:$0xff] }
  0x1e   : > { %4546 = vmatmul.mubr.msk.f32.gmra.mrb[4].mxu0 %vm527_vm0, %v476_v14  ;;  %v497_v33 = vld [vmem:[%s5101_s27 + $0xd0] sm:$0xff]  ;;  %v502_v34 = vld [vmem:[%s5101_s27 + $0xf8] sm:$0xff]  ;;  %v503_v35 = vld [vmem:[%s5101_s27 + $0x100] sm:$0xff] }
  0x1f   : > { %4561 = vmatprep.mubr.msk.f32.mxu0 %vm527_vm0, %v483_v15  ;;  %v498_v36 = vld [vmem:[%s5101_s27 + $0xd8] sm:$0xff]  ;;  %v499_v37 = vld [vmem:[%s5101_s27 + $0xe0] sm:$0xff]  ;;  %v504_v38 = vld [vmem:[%s5101_s27 + $0x108] sm:$0xff] }
  0x20   : > { %4557 = vmatmul.mubr.msk.f32.gmra.mrb[4].mxu1 %vm527_vm0, %v482_v17  ;;  %v505_v39 = vld [vmem:[%s5101_s27 + $0x110] sm:$0xff]  ;;  %v500_v40 = vld [vmem:[%s5101_s27 + $0xe8] sm:$0xff]  ;;  %v506_v41 = vld [vmem:[%s5101_s27 + $0x118] sm:$0xff] }
  0x21   : > { %4572 = vmatprep.mubr.msk.f32.mxu1 %vm527_vm0, %v489_v18  ;;  %v525_v42 = vld [vmem:[%s5095_s24 + $0x30] sm:$0xff]  ;;  %v507_v43 = vld [vmem:[%s5101_s27 + $0x120] sm:$0xff]  ;;  %v508_v44 = vld [vmem:[%s5101_s27 + $0x128] sm:$0xff] }
  0x22   : > { %4562 = vmatmul.mubr.msk.f32.vlgmr.msra.gmra.mrb[6].mxu0 %vm527_vm0, %v484_v20  ;;  %v509_v45 = vld [vmem:[%s5101_s27 + $0x130] sm:$0xff]  ;;  %v510_v46 = vld [vmem:[%s5101_s27 + $0x138] sm:$0xff]  ;;  %v511_v47 = vld [vmem:[%s5101_s27 + $0x140] sm:$0xff] }
  0x23   : > { %4564 = vmatprep.mubr.msk.f32.mxu0 %vm527_vm0, %v485_v21  ;;  %4582 = vmatpush3.msra.mxu0 %v523_v16  ;;  %v526_v48 = vld [vmem:[%s5095_s24 + $0x38] sm:$0xff]  ;;  %v512_v49 = vld [vmem:[%s5101_s27 + $0x148] sm:$0xff]  ;;  %v513_v50 = vld [vmem:[%s5101_s27 + $0x150] sm:$0xff] }
  0x24   : > { %4573 = vmatmul.mubr.msk.f32.vlgmr.msra.gmra.mrb[6].mxu1 %vm527_vm0, %v490_v22  ;;  %4603 = vmatprep.subr.mxu0 %v525_v42  ;;  %v514_v51 = vld [vmem:[%s5101_s27 + $0x158] sm:$0xff]  ;;  %v515_v52 = vld [vmem:[%s5101_s27 + $0x160] sm:$0xff]  ;;  %v516_v53 = vld [vmem:[%s5101_s27 + $0x168] sm:$0xff] }
  0x25   : > { %4575 = vmatprep.mubr.msk.f32.mxu1 %vm527_vm0, %v491_v23  ;;  %4593 = vmatpush3.msra.mxu1 %v524_v19  ;;  %v517_v54 = vld [vmem:[%s5101_s27 + $0x170] sm:$0xff]  ;;  %v518_v55 = vld [vmem:[%s5101_s27 + $0x178] sm:$0xff] }
  0x26   : > { %4565 = vmatmul.mubr.msk.f32.gmra.mrb[8].mxu0 %vm527_vm0, %v486_v24  ;;  %4614 = vmatprep.subr.mxu1 %v526_v48 }
  0x27   : > { %4567 = vmatprep.mubr.msk.f32.mxu0 %vm527_vm0, %v487_v25 }
  0x28   : > { %4576 = vmatmul.mubr.msk.f32.gmra.mrb[8].mxu1 %vm527_vm0, %v492_v26 }
  0x29   : > { %4578 = vmatprep.mubr.msk.f32.mxu1 %vm527_vm0, %v493_v27 }
  0x2a   : > { %4568 = vmatmul.mubr.msk.f32.gmra.mrb[10].mxu0 %vm527_vm0, %v488_v28 }
  0x2b   : > { %4583 = vmatprep.mubr.msk.f32.mxu0 %vm527_vm0, %v495_v29 }
  0x2c   : > { %4579 = vmatmul.mubr.msk.f32.gmra.mrb[10].mxu1 %vm527_vm0, %v494_v30 }
  0x2d   : > { %4594 = vmatprep.mubr.msk.f32.mxu1 %vm527_vm0, %v501_v31 }
  0x2e   : > { %4584 = vmatmul.mubr.msk.f32.vlgmr.msra.gmra.mrb[12].mxu0 %vm527_vm0, %v496_v32 }
  0x2f   : > { %4586 = vmatprep.mubr.msk.f32.mxu0 %vm527_vm0, %v497_v33  ;;  %4604 = vmatpush3.msra.mxu0 %v525_v42 }
  0x30   : > { %4595 = vmatmul.mubr.msk.f32.vlgmr.msra.gmra.mrb[12].mxu1 %vm527_vm0, %v502_v34 }
  0x31   : > { %4597 = vmatprep.mubr.msk.f32.mxu1 %vm527_vm0, %v503_v35  ;;  %4615 = vmatpush3.msra.mxu1 %v526_v48 }
  0x32   : > { %4587 = vmatmul.mubr.msk.f32.gmra.mrb[14].mxu0 %vm527_vm0, %v498_v36 }
  0x33   : > { %4589 = vmatprep.mubr.msk.f32.mxu0 %vm527_vm0, %v499_v37 }
  0x34   : > { %4598 = vmatmul.mubr.msk.f32.gmra.mrb[14].mxu1 %vm527_vm0, %v504_v38 }
  0x35   : > { %4600 = vmatprep.mubr.msk.f32.mxu1 %vm527_vm0, %v505_v39 }
  0x36   : > { %4590 = vmatmul.mubr.msk.f32.gmra.mrb[16].mxu0 %vm527_vm0, %v500_v40 }
  0x37   : > { %4605 = vmatprep.mubr.msk.f32.mxu0 %vm527_vm0, %v507_v43 }
  0x38   : > { %4601 = vmatmul.mubr.msk.f32.gmra.mrb[16].mxu1 %vm527_vm0, %v506_v41 }
  0x39   : > { %4616 = vmatprep.mubr.msk.f32.mxu1 %vm527_vm0, %v513_v50 }
  0x3a   : > { %4606 = vmatmul.mubr.msk.f32.vlgmr.msra.gmra.mrb[18].mxu0 %vm527_vm0, %v508_v44 }
  0x3b   : > { %4608 = vmatprep.mubr.msk.f32.mxu0 %vm527_vm0, %v509_v45 }
  0x3c   : > { %4617 = vmatmul.mubr.msk.f32.vlgmr.msra.gmra.mrb[18].mxu1 %vm527_vm0, %v514_v51 }
  0x3d   : > { %4619 = vmatprep.mubr.msk.f32.mxu1 %vm527_vm0, %v515_v52  ;;  %v4837_v52 = vld [vmem:[%s6827_s4 + $0x80] ss:$8 sps:$4 sm:$0xff]  }
  0x3e   : > { %4609 = vmatmul.mubr.msk.f32.gmra.mrb[20].mxu0 %vm527_vm0, %v510_v46 }
  0x3f   : > { %4611 = vmatprep.mubr.msk.f32.mxu0 %vm527_vm0, %v511_v47 }
  0x40   : > { %4620 = vmatmul.mubr.msk.f32.gmra.mrb[20].mxu1 %vm527_vm0, %v516_v53  ;;  %v4839_v53 = vld [vmem:[%s6827_s4 + $0x84] ss:$8 sps:$4 sm:$0xff]  }
  0x41   : > { %4622 = vmatprep.mubr.msk.f32.mxu1 %vm527_vm0, %v517_v54  ;;  %v4842_v54 = vld [vmem:[%s6827_s4 + $0x94] ss:$8 sps:$4 sm:$0xff]   ;;  %2217 = vmatprep.subr.bf16.mxu0 %v4839_v53 }
  0x42   : > { %4612 = vmatmul.mubr.msk.f32.gmra.mrb[22].mxu0 %vm527_vm0, %v512_v49 }
  0x43   : > { %2218 = vmatpush1.bf16.msra.mxu0 %v4837_v52 }
  0x44   : > { %4623 = vmatmul.mubr.msk.f32.gmra.mrb[22].mxu1 %vm527_vm0, %v518_v55  ;;  %v4840_v55 = vld [vmem:[%s6827_s4 + $0x90] ss:$8 sps:$4 sm:$0xff]   ;;  %2219 = vmatprep.subr.bf16.mxu0 %v4842_v54  ;;  %vm3929_vm0 = vcmask 1047559  }
  0x47   : > { %2220 = vmatpush1.bf16.msra.mxu0 %v4840_v55 }
  0xe9   : > { %v4541_v56 = vpop.f32.mrb[0].mxu0 }
  0xea   : > { %v612_v57 = vpop.f32.mrb[1].mxu0  ;;  %v5210_v63 = vmul.f32 0.125, %v4541_v56  ;;  %v4845_v56 = vld [vmem:[%s6827_s4 + $0xa4] ss:$8 sps:$4 sm:$0xff]  }
  0xeb   : > { %v5207_v58 = vmul.f32 0.125, %v612_v57  ;;  %v4552_v59 = vpop.f32.mrb[0].mxu1  ;;  %v4843_v57 = vld [vmem:[%s6827_s4 + $0xa0] ss:$8 sps:$4 sm:$0xff]   ;;  %2221 = vmatprep.subr.bf16.mxu0 %v4845_v56  ;;  %v4848_v56 = vld [vmem:[%s6827_s4 + $0xb4] ss:$8 sps:$4 sm:$0xff]  }
  0xec   : > { %v725_v60 = vpop.f32.mrb[1].mxu1  ;;  %v5226_v15 = vmul.f32 0.125, %v4552_v59  ;;  %2222 = vmatpush1.bf16.msra.mxu0 %v4843_v57 }
  0xed   : > { %1480 = vadd.xlane.f32.xlu0 %v5207_v58  ;;  %v4544_v61 = vpop.f32.mrb[2].mxu0  ;;  %v5224_v10 = vmul.f32 0.125, %v725_v60  ;;  %2223 = vmatprep.subr.bf16.mxu0 %v4848_v56 }
  0xee   : > { %v622_v62 = vpop.f32.mrb[3].mxu0  ;;  %v5214_v3 = vmul.f32 0.125, %v4544_v61 }
  0xef   : > { %v5212_v0 = vmul.f32 0.125, %v622_v62  ;;  %v4555_v1 = vpop.f32.mrb[2].mxu1 }
  0xf0   : > { %v735_v2 = vpop.f32.mrb[3].mxu1  ;;  %v5232_v19 = vmul.f32 0.125, %v4555_v1 }
  0xf1   : > { %1482 = vadd.xlane.f32.xlu0 %v5210_v63  ;;  %1484 = vadd.xlane.f32.xlu1 %v5212_v0  ;;  %v4547_v4 = vpop.f32.mrb[4].mxu0  ;;  %v5230_v16 = vmul.f32 0.125, %v735_v2 }
  0xf2   : > { %v632_v5 = vpop.f32.mrb[5].mxu0  ;;  %v5220_v9 = vmul.f32 0.125, %v4547_v4 }
  0xf3   : > { %v5218_v6 = vmul.f32 0.125, %v632_v5  ;;  %v4558_v7 = vpop.f32.mrb[4].mxu1 }
  0xf4   : > { %v745_v8 = vpop.f32.mrb[5].mxu1  ;;  %v5238_v23 = vmul.f32 0.125, %v4558_v7 }
  0xf5   : > { %1486 = vadd.xlane.f32.xlu1 %v5214_v3  ;;  %1488 = vadd.xlane.f32.xlu0 %v5218_v6  ;;  %v4563_v11 = vpop.f32.mrb[6].mxu0  ;;  %v5236_v20 = vmul.f32 0.125, %v745_v8 }
  0xf6   : > { %v838_v12 = vpop.f32.mrb[7].mxu0  ;;  %v5246_v27 = vmul.f32 0.125, %v4563_v11 }
  0xf7   : > { %v4574_v13 = vpop.f32.mrb[6].mxu1  ;;  %v5242_v24 = vmul.f32 0.125, %v838_v12 }
  0xf8   : > { %v951_v14 = vpop.f32.mrb[7].mxu1  ;;  %v5266_v35 = vmul.f32 0.125, %v4574_v13 }
  0xf9   : > { %1490 = vadd.xlane.f32.xlu1 %v5220_v9  ;;  %1492 = vadd.xlane.f32.xlu0 %v5224_v10  ;;  %v4566_v17 = vpop.f32.mrb[8].mxu0  ;;  %v5264_v34 = vmul.f32 0.125, %v951_v14 }
  0xfa   : > { %v848_v18 = vpop.f32.mrb[9].mxu0  ;;  %v5252_v29 = vmul.f32 0.125, %v4566_v17 }
  0xfb   : > { %v5244_v25 = vpop.f32.mrb[8].mxu1  ;;  %v5250_v28 = vmul.f32 0.125, %v848_v18 }
  0xfc   : > { %v961_v26 = vpop.f32.mrb[9].mxu1  ;;  %v5337_v17 = vmul.f32 0.125, %v5244_v25 }
  0xfd   : > { %1494 = vadd.xlane.f32.xlu1 %v5226_v15  ;;  %1496 = vadd.xlane.f32.xlu0 %v5230_v16  ;;  %v4569_v21 = vpop.f32.mrb[10].mxu0  ;;  %v5329_v8 = vmul.f32 0.125, %v961_v26 }
  0xfe   : > { %v858_v22 = vpop.f32.mrb[11].mxu0  ;;  %v5260_v33 = vmul.f32 0.125, %v4569_v21 }
  0xff   : > { %v5256_v30 = vmul.f32 0.125, %v858_v22  ;;  %v5258_v31 = vpop.f32.mrb[10].mxu1 }
 0x100   : > { %v971_v32 = vpop.f32.mrb[11].mxu1 }
 0x101   : > { %1498 = vadd.xlane.f32.xlu1 %v5232_v19  ;;  %1500 = vadd.xlane.f32.xlu0 %v5236_v20  ;;  %v5270_v36 = vpop.f32.mrb[12].mxu0  ;;  %v5346_v22 = vmul.f32 0.125, %v971_v32 }
 0x102   : > { %v5272_v37 = vpop.f32.mrb[13].mxu0 }
 0x103   : > { %v5283_v42 = vpop.f32.mrb[12].mxu1 }
 0x104   : > { %v5285_v43 = vpop.f32.mrb[13].mxu1 }
 0x105   : > { %1502 = vadd.xlane.f32.xlu1 %v5238_v23  ;;  %1504 = vadd.xlane.f32.xlu0 %v5242_v24  ;;  %v5275_v38 = vpop.f32.mrb[14].mxu0 }
 0x106   : > { %v5277_v39 = vpop.f32.mrb[15].mxu0 }
 0x107   : > { %v5287_v44 = vpop.f32.mrb[14].mxu1 }
 0x108   : > { %v5289_v45 = vpop.f32.mrb[15].mxu1 }
 0x109   : > { %1506 = vadd.xlane.f32.xlu1 %v5246_v27  ;;  %1508 = vadd.xlane.f32.xlu0 %v5250_v28  ;;  %v5279_v40 = vpop.f32.mrb[16].mxu0 }
 0x10a   : > { %v5281_v41 = vpop.f32.mrb[17].mxu0 }
 0x10b   : > { %v5291_v46 = vpop.f32.mrb[16].mxu1  ;;  %v5431_v56 = vmul.f32 0.125, %v5281_v41  ;;  %v4863_v41 = vld [vmem:[%s6827_s4 + $0x4] ss:$8 sps:$4 sm:$0xff]  }
 0x10c   : > { %v5293_v47 = vpop.f32.mrb[17].mxu1  ;;  %4806 = vmatprep.subr.bf16.mxu1 %v4863_v41 }
 0x10d   : > { %1510 = vadd.xlane.f32.xlu1 %v5252_v29  ;;  %1512 = vadd.xlane.f32.xlu0 %v5256_v30  ;;  %v5295_v48 = vpop.f32.mrb[18].mxu0 }
 0x10e   : > { %v5297_v49 = vpop.f32.mrb[19].mxu0 }
 0x111   : > { %1514 = vadd.xlane.f32.xlu1 %v5260_v33  ;;  %1516 = vadd.xlane.f32.xlu0 %v5264_v34  ;;  %v5299_v50 = vpop.f32.mrb[20].mxu0 }
 0x112   : > { %v5301_v51 = vpop.f32.mrb[21].mxu0 }
 0x115   : > { %1518 = vadd.xlane.f32.xlu1 %v5266_v35 }
 0x17a   : > { %v1481_v59 = vpop.xlane.xlu0 %1480 }
 0x17b   : > { %v1577_v60 = vmul.f32 0.0078125, %v1481_v59 }
 0x17d   : > { %v5322_v61 = vsub.f32 %v5207_v58, %v1577_v60 }
 0x17e   : > { %v1483_v62 = vpop.xlane.xlu0 %1482  ;;  %v1485_v1 = vpop.xlane.xlu1 %1484 }
 0x17f   : > { %v1578_v2 = vmul.f32 0.0078125, %v1483_v62  ;;  %v1579_v4 = vmul.f32 0.0078125, %v1485_v1  ;;  %v1673_v5 = vmul.f32 %v5322_v61, %v5322_v61  ;;  %v4851_v1 = vld [vmem:[%s6827_s4 + $0xc4] ss:$8 sps:$4 sm:$0xff]  }
 0x181   : > { %v5327_v7 = vsub.f32 %v5210_v63, %v1578_v2  ;;  %1721 = vadd.xlane.f32.xlu0 %v1673_v5  ;;  %v5332_v12 = vsub.f32 %v5212_v0, %v1579_v4 }
 0x182   : > { %v1487_v11 = vpop.xlane.xlu1 %1486  ;;  %v1489_v14 = vpop.xlane.xlu0 %1488 }
 0x183   : > { %v1580_v13 = vmul.f32 0.0078125, %v1487_v11  ;;  %v1674_v58 = vmul.f32 %v5327_v7, %v5327_v7  ;;  %v1581_v18 = vmul.f32 0.0078125, %v1489_v14  ;;  %v1675_v21 = vmul.f32 %v5332_v12, %v5332_v12 }
 0x185   : > { %1723 = vadd.xlane.f32.xlu1 %v1674_v58  ;;  %1520 = vadd.xlane.f32.xlu0 %v5329_v8  ;;  %v5341_v63 = vsub.f32 %v5214_v3, %v1580_v13  ;;  %v5349_v26 = vsub.f32 %v5218_v6, %v1581_v18  ;;  %v5354_v3 = vmul.f32 0.125, %v5258_v31  ;;  %v5367_v31 = vmul.f32 0.125, %v5272_v37  ;;  %v5399_v58 = vpop.f32.mrb[22].mxu0 }
 0x186   : > { %v1491_v0 = vpop.xlane.xlu1 %1490  ;;  %v1493_v53 = vpop.xlane.xlu0 %1492  ;;  %v5381_v37 = vmul.f32 0.125, %v5270_v36  ;;  %v4854_v36 = vld [vmem:[%s6827_s4 + $0xd4] ss:$8 sps:$4 sm:$0xff]   ;;  %v5397_v13 = vmul.f32 0.125, %v5277_v39  ;;  %v4857_v39 = vld [vmem:[%s6827_s4 + $0xe4] ss:$8 sps:$4 sm:$0xff]  }
 0x187   : > { %v1582_v25 = vmul.f32 0.0078125, %v1491_v0  ;;  %v1676_v52 = vmul.f32 %v5341_v63, %v5341_v63  ;;  %v1583_v55 = vmul.f32 0.0078125, %v1493_v53  ;;  %v1677_v32 = vmul.f32 %v5349_v26, %v5349_v26  ;;  %v5409_v0 = vpop.f32.mrb[23].mxu0 }
 0x189   : > { %1522 = vadd.xlane.f32.xlu1 %v5337_v17  ;;  %1725 = vadd.xlane.f32.xlu0 %v1675_v21  ;;  %v5358_v54 = vsub.f32 %v5220_v9, %v1582_v25  ;;  %v4846_v9 = vld [vmem:[%s6827_s4 + $0xb0] ss:$8 sps:$4 sm:$0xff]   ;;  %v5373_v57 = vsub.f32 %v5224_v10, %v1583_v55  ;;  %v4849_v10 = vld [vmem:[%s6827_s4 + $0xc0] ss:$8 sps:$4 sm:$0xff]  }
 0x18a   : > { %v1495_v6 = vpop.xlane.xlu1 %1494  ;;  %2224 = vmatpush1.bf16.msra.mxu0 %v4846_v9  ;;  %v1497_v62 = vpop.xlane.xlu0 %1496 }
 0x18b   : > { %v1584_v59 = vmul.f32 0.0078125, %v1495_v6  ;;  %v1678_v60 = vmul.f32 %v5358_v54, %v5358_v54  ;;  %2225 = vmatprep.subr.bf16.mxu0 %v4851_v1  ;;  %v1585_v4 = vmul.f32 0.0078125, %v1497_v62  ;;  %v1679_v5 = vmul.f32 %v5373_v57, %v5373_v57  ;;  %v5433_v9 = vpop.f32.mrb[18].mxu1 }
 0x18d   : > { %1727 = vadd.xlane.f32.xlu1 %v1676_v52  ;;  %1524 = vadd.xlane.f32.xlu0 %v5346_v22  ;;  %v5388_v2 = vsub.f32 %v5226_v15, %v1584_v59  ;;  %v4852_v15 = vld [vmem:[%s6827_s4 + $0xd0] ss:$8 sps:$4 sm:$0xff]   ;;  %v5405_v14 = vsub.f32 %v5230_v16, %v1585_v4  ;;  %v5415_v52 = vmul.f32 0.125, %v5275_v38  ;;  %v4855_v16 = vld [vmem:[%s6827_s4 + $0xe0] ss:$8 sps:$4 sm:$0xff]   ;;  %v5438_v59 = vpop.f32.mrb[19].mxu1 }
 0x18e   : > { %2226 = vmatpush1.bf16.msra.mxu0 %v4849_v10  ;;  %v1499_v11 = vpop.xlane.xlu1 %1498  ;;  %v1501_v25 = vpop.xlane.xlu0 %1500  ;;  %v4860_v38 = vld [vmem:[%s6827_s4 + $0xf4] ss:$8 sps:$4 sm:$0xff]   ;;  %v5449_v4 = vmul.f32 0.125, %v5279_v40 }
 0x18f   : > { %2227 = vmatprep.subr.bf16.mxu0 %v4854_v36  ;;  %v1586_v18 = vmul.f32 0.0078125, %v1499_v11  ;;  %v1680_v21 = vmul.f32 %v5388_v2, %v5388_v2  ;;  %v1587_v55 = vmul.f32 0.0078125, %v1501_v25  ;;  %v5479_v25 = vld [vmem:[%s6827_s4 + $0x10] ss:$8 sps:$4 sm:$0xff]  }
 0x191   : > { %1526 = vadd.xlane.f32.xlu1 %v5354_v3  ;;  %1729 = vadd.xlane.f32.xlu0 %v1677_v32  ;;  %v5422_v53 = vsub.f32 %v5232_v19, %v1586_v18  ;;  %v1681_v32 = vmul.f32 %v5405_v14, %v5405_v14  ;;  %v4858_v19 = vld [vmem:[%s6827_s4 + $0xf0] ss:$8 sps:$4 sm:$0xff]   ;;  %v5468_v18 = vld [vmem:[%s6827_s4 + $0x14] ss:$8 sps:$4 sm:$0xff]  }
 0x192   : > { %2228 = vmatpush1.bf16.msra.mxu0 %v4852_v15  ;;  %v1503_v6 = vpop.xlane.xlu1 %1502  ;;  %v1505_v10 = vpop.xlane.xlu0 %1504 }
 0x193   : > { %2229 = vmatprep.subr.bf16.mxu0 %v4857_v39  ;;  %v1588_v62 = vmul.f32 0.0078125, %v1503_v6  ;;  %v1682_v1 = vmul.f32 %v5422_v53, %v5422_v53  ;;  %v1589_v36 = vmul.f32 0.0078125, %v1505_v10  ;;  %v5493_v6 = vld [vmem:[%s6827_s4 + $0x24] ss:$8 sps:$4 sm:$0xff]   ;;  %v5514_v10 = vld [vmem:[%s6827_s4 + $0x34] ss:$8 sps:$4 sm:$0xff]  }
 0x195   : > { %1731 = vadd.xlane.f32.xlu1 %v1678_v60  ;;  %1528 = vadd.xlane.f32.xlu0 %v5367_v31  ;;  %v5441_v60 = vsub.f32 %v5236_v20, %v1587_v55  ;;  %v5455_v20 = vld [vmem:[%s6827_s4] ss:$8 sps:$4 sm:$0xff]   ;;  %v5459_v11 = vsub.f32 %v5238_v23, %v1588_v62  ;;  %v5472_v23 = vmul.f32 0.125, %v5285_v43 }
 0x196   : > { %2230 = vmatpush1.bf16.msra.mxu0 %v4855_v16  ;;  %4814 = vmatpush1.bf16.msra.mxu1 %v5455_v20  ;;  %v1507_v15 = vpop.xlane.xlu1 %1506  ;;  %v5485_v16 = vsub.f32 %v5242_v24, %v1589_v36  ;;  %v1509_v43 = vpop.xlane.xlu0 %1508  ;;  %v5502_v24 = vld [vmem:[%s6827_s4 + $0x20] ss:$8 sps:$4 sm:$0xff]   ;;  %v5525_v36 = vld [vmem:[%s6827_s4 + $0x30] ss:$8 sps:$4 sm:$0xff]  }
 0x197   : > { %2231 = vmatprep.subr.bf16.mxu0 %v4860_v38  ;;  %6854 = vst [vmem:[#allocation2_spill] sm:$0xff] %v5459_v11  ;;  %v1683_v40 = vmul.f32 %v5441_v60, %v5441_v60  ;;  %4807 = vmatprep.subr.bf16.mxu1 %v5468_v18  ;;  %v1590_v55 = vmul.f32 0.0078125, %v1507_v15  ;;  %v5496_v38 = vmul.f32 0.125, %v5283_v42  ;;  %v1591_v62 = vmul.f32 0.0078125, %v1509_v43  ;;  %v5539_v43 = vld [vmem:[%s6827_s4 + $0x44] ss:$8 sps:$4 sm:$0xff]  }
 0x198   : > { %6855 = vst [vmem:[#allocation3_spill] sm:$0xff] %v5485_v16 }
 0x199   : > { %1530 = vadd.xlane.f32.xlu1 %v5381_v37  ;;  %1733 = vadd.xlane.f32.xlu0 %v1679_v5  ;;  %v6835_v5 = vmov 0   ;;  %v5531_v15 = vsub.f32 %v5250_v28, %v1591_v62  ;;  %v5548_v28 = vld [vmem:[%s6827_s4 + $0x40] ss:$8 sps:$4 sm:$0xff]  }
 0x19a   : > { %2232 = vmatpush1.bf16.msra.mxu0 %v4858_v19  ;;  %2249 = vmatprep.mubr.bf16.mxu0 %v6835_v5  ;;  %v5506_v19 = vsub.f32 %v5246_v27, %v1590_v55  ;;  %v1511_v42 = vpop.xlane.xlu1 %1510 }
 0x19b   : > { %2642 = vmatprep.mubr.bf16.mxu1 %v6835_v5  ;;  %2570 = vmatprep.subr.bf16.mxu0 %v4863_v41  ;;  %v5518_v41 = vmul.f32 0.125, %v5289_v45  ;;  %6857 = vst [vmem:[#allocation5_spill] sm:$0xff] %v5531_v15  ;;  %v1592_v55 = vmul.f32 0.0078125, %v1511_v42  ;;  %v1513_v45 = vpop.xlane.xlu0 %1512  ;;  %v1687_v5 = vmul.f32 %v5531_v15, %v5531_v15 }
 0x19c   : > { %4815 = vmatpush1.bf16.msra.mxu1 %v5479_v25  ;;  %6856 = vst [vmem:[#allocation4_spill] sm:$0xff] %v5506_v19  ;;  %v1593_v42 = vmul.f32 0.0078125, %v1513_v45 }
 0x19d   : > { %1735 = vadd.xlane.f32.xlu1 %v1680_v21  ;;  %1532 = vadd.xlane.f32.xlu0 %v5397_v13  ;;  %v5474_v21 = vpop.f32.mrb[20].mxu1  ;;  %v5552_v62 = vsub.f32 %v5252_v29, %v1592_v55  ;;  %v5569_v29 = vld [vmem:[%s6827_s4 + $0x50] ss:$8 sps:$4 sm:$0xff]  }
 0x19e   : > { %v5481_v39 = vpop.f32.mrb[21].mxu1  ;;  %4808 = vmatprep.subr.bf16.mxu1 %v5493_v6  ;;  %v5573_v55 = vsub.f32 %v5256_v30, %v1593_v42  ;;  %v5590_v30 = vld [vmem:[%s6827_s4 + $0x60] ss:$8 sps:$4 sm:$0xff]  }
 0x19f   : > { %v5520_v27 = vpop.f32.mrb[22].mxu1  ;;  %6858 = vst [vmem:[#allocation6_spill] sm:$0xff] %v5552_v62  ;;  %v1688_v15 = vmul.f32 %v5552_v62, %v5552_v62 }
 0x1a0   : > { %4816 = vmatpush1.bf16.msra.mxu1 %v5502_v24  ;;  %6860 = vst [vmem:[#allocation8_spill] sm:$0xff] %v5573_v55  ;;  %v1689_v62 = vmul.f32 %v5573_v55, %v5573_v55 }
 0x1a1   : > { %1534 = vadd.xlane.f32.xlu1 %v5415_v52  ;;  %1737 = vadd.xlane.f32.xlu0 %v1681_v32  ;;  %v1684_v32 = vmul.f32 %v5459_v11, %v5459_v11  ;;  %v5629_v11 = vmul.f32 0.125, %v5295_v48  ;;  %v5640_v48 = vmul.f32 0.125, %v5301_v51  ;;  %v2021_v51 = vld [vmem:[%s5603_s26 + $0x60] sm:$0xff] }
 0x1a2   : > { %4809 = vmatprep.subr.bf16.mxu1 %v5514_v10 }
 0x1a3   : > { %6865 = vst [vmem:[#allocation13_spill] sm:$0xff] %v5629_v11  ;;  %6868 = vst [vmem:[#allocation15_spill] sm:$0xff] %v5640_v48 }
 0x1a4   : > { %4817 = vmatpush1.bf16.msra.mxu1 %v5525_v36 }
 0x1a5   : > { %1739 = vadd.xlane.f32.xlu1 %v1682_v1  ;;  %1536 = vadd.xlane.f32.xlu0 %v5431_v56  ;;  %v1685_v1 = vmul.f32 %v5485_v16, %v5485_v16  ;;  %v5584_v16 = vmul.f32 0.125, %v5291_v46 }
 0x1a6   : > { %4810 = vmatprep.subr.bf16.mxu1 %v5539_v43 }
 0x1a7   : > { %6861 = vst [vmem:[#allocation9_spill] sm:$0xff] %v5584_v16 }
 0x1a8   : > { %4818 = vmatpush1.bf16.msra.mxu1 %v5548_v28 }
 0x1a9   : > { %1538 = vadd.xlane.f32.xlu1 %v5449_v4  ;;  %1741 = vadd.xlane.f32.xlu0 %v1683_v40  ;;  %v5527_v40 = vpop.f32.mrb[23].mxu1 }
 0x1ad   : > { %1743 = vadd.xlane.f32.xlu1 %v1684_v32  ;;  %1540 = vadd.xlane.f32.xlu0 %v5472_v23  ;;  %v1686_v32 = vmul.f32 %v5506_v19, %v5506_v19  ;;  %v5564_v19 = vmul.f32 0.125, %v5293_v47  ;;  %v5581_v47 = vld [vmem:[%s6827_s4 + $0x64] ss:$8 sps:$4 sm:$0xff]  }
 0x1af   : > { %6859 = vst [vmem:[#allocation7_spill] sm:$0xff] %v5564_v19 }
 0x1b1   : > { %1542 = vadd.xlane.f32.xlu1 %v5496_v38  ;;  %1745 = vadd.xlane.f32.xlu0 %v1685_v1  ;;  %v5542_v1 = vmul.f32 0.125, %v5287_v44  ;;  %v1515_v44 = vpop.xlane.xlu1 %1514 }
 0x1b2   : > { %v1594_v45 = vmul.f32 0.0078125, %v1515_v44 }
 0x1b4   : > { %v5594_v42 = vsub.f32 %v5260_v33, %v1594_v45  ;;  %v5612_v33 = vmul.f32 0.125, %v5297_v49  ;;  %v5617_v45 = vld [vmem:[%s6827_s4 + $0x70] ss:$8 sps:$4 sm:$0xff]   ;;  %v2017_v49 = vld [vmem:[%s5603_s26 + $0x40] sm:$0xff] }
 0x1b5   : > { %1747 = vadd.xlane.f32.xlu1 %v1686_v32  ;;  %1544 = vadd.xlane.f32.xlu0 %v5518_v41  ;;  %v5560_v32 = vld [vmem:[%s6827_s4 + $0x54] ss:$8 sps:$4 sm:$0xff]   ;;  %v1519_v46 = vpop.xlane.xlu1 %1518 }
 0x1b6   : > { %4811 = vmatprep.subr.bf16.mxu1 %v5560_v32  ;;  %6862 = vst [vmem:[#allocation10_spill] sm:$0xff] %v5594_v42  ;;  %6863 = vst [vmem:[#allocation11_spill] sm:$0xff] %v5612_v33  ;;  %v1596_v55 = vmul.f32 0.0078125, %v1519_v46  ;;  %v6867_v46 = vmov 0  }
 0x1b7   : > { %4819 = vmatpush1.bf16.msra.mxu1 %v5569_v29 }
 0x1b8   : > { %4812 = vmatprep.subr.bf16.mxu1 %v5581_v47 }
 0x1b9   : > { %1546 = vadd.xlane.f32.xlu1 %v5542_v1  ;;  %1749 = vadd.xlane.f32.xlu0 %v1687_v5  ;;  %v1517_v5 = vpop.xlane.xlu0 %1516 }
 0x1ba   : > { %v1595_v44 = vmul.f32 0.0078125, %v1517_v5 }
 0x1bb   : > { %4820 = vmatpush1.bf16.msra.mxu1 %v5590_v30 }
 0x1bc   : > { %v5621_v5 = vsub.f32 %v5264_v34, %v1595_v44  ;;  %v5633_v34 = vsub.f32 %v5266_v35, %v1596_v55  ;;  %v2019_v35 = vld [vmem:[%s5603_s26 + $0x50] sm:$0xff] }
 0x1bd   : > { %1751 = vadd.xlane.f32.xlu1 %v1688_v15  ;;  %1548 = vadd.xlane.f32.xlu0 %v5564_v19  ;;  %v5608_v15 = vld [vmem:[%s6827_s4 + $0x74] ss:$8 sps:$4 sm:$0xff]   ;;  %v1690_v19 = vmul.f32 %v5594_v42, %v5594_v42 }
 0x1be   : > { %4813 = vmatprep.subr.bf16.mxu1 %v5608_v15  ;;  %6864 = vst [vmem:[#allocation12_spill] sm:$0xff] %v5621_v5  ;;  %6866 = vst [vmem:[#allocation14_spill] sm:$0xff] %v5633_v34  ;;  %v1691_v44 = vmul.f32 %v5621_v5, %v5621_v5  ;;  %v2027_v5 = vld [vmem:[%s5603_s26 + $0x90] sm:$0xff]  ;;  %v2028_v42 = vld [vmem:[%s5603_s26 + $0x98] sm:$0xff] }
 0x1bf   : > { %4821 = vmatpush1.bf16.msra.mxu1 %v5617_v45 }
 0x1c1   : > { %1550 = vadd.xlane.f32.xlu1 %v5584_v16  ;;  %1753 = vadd.xlane.f32.xlu0 %v1689_v62  ;;  %v2018_v62 = vld [vmem:[%s5603_s26 + $0x48] sm:$0xff] }
 0x1c2   : > { %v2061_v16 = vpack.c.bf16 %v2018_v62, %v2017_v49  ;;  %v5647_v49 = vmul.f32 0.125, %v5299_v50  ;;  %v2022_v62 = vld [vmem:[%s5603_s26 + $0x68] sm:$0xff]  ;;  %v2023_v50 = vld [vmem:[%s5603_s26 + $0x70] sm:$0xff] }
 0x1c4   : > { %2643 = vmatmul.mubr.bf16.vlgmr.msra.gmra.mrb[24].mxu1 %v2061_v16  ;;  %v1692_v16 = vmul.f32 %v5633_v34, %v5633_v34  ;;  %6869 = vst [vmem:[#allocation16_spill] sm:$0xff] %v5647_v49 }
 0x1c5   : > { %1755 = vadd.xlane.f32.xlu1 %v1690_v19  ;;  %1552 = vadd.xlane.f32.xlu0 %v5612_v33  ;;  %v2020_v19 = vld [vmem:[%s5603_s26 + $0x58] sm:$0xff] }
 0x1c6   : > { %2652 = vmatprep.mubr.bf16.mxu1 %v6867_v46  ;;  %v2062_v55 = vpack.c.bf16 %v2020_v19, %v2019_v35  ;;  %v2024_v35 = vld [vmem:[%s5603_s26 + $0x78] sm:$0xff] }
 0x1c7   : > { %v2064_v19 = vpack.c.bf16 %v2024_v35, %v2023_v50 }
 0x1c9   : > { %1554 = vadd.xlane.f32.xlu1 %v5629_v11  ;;  %1757 = vadd.xlane.f32.xlu0 %v1691_v44  ;;  %v2063_v44 = vpack.c.bf16 %v2022_v62, %v2021_v51 }
 0x1cc   : > { %2653 = vmatmul.mubr.bf16.gmra.mrb[28].mxu1 %v2062_v55  ;;  %v2026_v55 = vld [vmem:[%s5603_s26 + $0x88] sm:$0xff] }
 0x1cd   : > { %1759 = vadd.xlane.f32.xlu1 %v1692_v16  ;;  %1556 = vadd.xlane.f32.xlu0 %v5640_v48  ;;  %v2025_v16 = vld [vmem:[%s5603_s26 + $0x80] sm:$0xff] }
 0x1ce   : > { %2662 = vmatprep.mubr.bf16.mxu1 %v6867_v46  ;;  %v2065_v34 = vpack.c.bf16 %v2026_v55, %v2025_v16 }
 0x1d1   : > { %1558 = vadd.xlane.f32.xlu1 %v5647_v49  ;;  %v2066_v49 = vpack.c.bf16 %v2028_v42, %v2027_v5 }
 0x1d4   : > { %2663 = vmatmul.mubr.bf16.gmra.mrb[32].mxu1 %v2063_v44 }
 0x1d5   : > { %2672 = vmatprep.mubr.bf16.mxu1 %v6867_v46 }
 0x1dc   : > { %2673 = vmatmul.mubr.bf16.gmra.mrb[36].mxu1 %v2064_v19 }
 0x1dd   : > { %2682 = vmatprep.mubr.bf16.mxu1 %v6867_v46 }
 0x1e4   : > { %2683 = vmatmul.mubr.bf16.gmra.mrb[40].mxu1 %v2065_v34 }
 0x1e5   : > { %2692 = vmatprep.mubr.bf16.mxu1 %v6867_v46 }
 0x1ec   : > { %2693 = vmatmul.mubr.bf16.gmra.mrb[44].mxu1 %v2066_v49 }
 0x1ed   : > { %2702 = vmatprep.mubr.bf16.mxu1 %v6867_v46 }
 0x20e   : > { %v1722_v51 = vpop.xlane.xlu0 %1721 }
 0x20f   : > { %v1817_v62 = vmul.f32 0.0078125, %v1722_v51 }
 0x211   : > { %v1865_v44 = vadd.f32 1e-05, %v1817_v62 }
 0x212   : > { %v1724_v48 = vpop.xlane.xlu1 %1723  ;;  %v1521_v50 = vpop.xlane.xlu0 %1520 }
 0x213   : > { %v1818_v35 = vmul.f32 0.0078125, %v1724_v48  ;;  %v1597_v19 = vmul.f32 0.0078125, %v1521_v50  ;;  %4909 = vrsqrt.f32 %v1865_v44  ;;  %v5673_v48 = vmul.f32 0.125, %v5409_v0 }
 0x215   : > { %v1866_v11 = vadd.f32 1e-05, %v1818_v35  ;;  %v5665_v16 = vsub.f32 %v5329_v8, %v1597_v19  ;;  %v5678_v35 = vmul.f32 0.125, %v5399_v58 }
 0x216   : > { %v1523_v34 = vpop.xlane.xlu1 %1522  ;;  %v1726_v55 = vpop.xlane.xlu0 %1725 }
 0x217   : > { %4911 = vrsqrt.f32 %v1866_v11  ;;  %v1598_v33 = vmul.f32 0.0078125, %v1523_v34  ;;  %v1819_v42 = vmul.f32 0.0078125, %v1726_v55  ;;  %v1693_v5 = vmul.f32 %v5665_v16, %v5665_v16 }
 0x219   : > { %v5670_v49 = vsub.f32 %v5337_v17, %v1598_v33  ;;  %v1867_v51 = vadd.f32 1e-05, %v1819_v42  ;;  %1761 = vadd.xlane.f32.xlu0 %v1693_v5 }
 0x21a   : > { %v1728_v62 = vpop.xlane.xlu1 %1727  ;;  %v1525_v44 = vpop.xlane.xlu0 %1524 }
 0x21b   : > { %v1820_v8 = vmul.f32 0.0078125, %v1728_v62  ;;  %v1599_v50 = vmul.f32 0.0078125, %v1525_v44  ;;  %v1694_v11 = vmul.f32 %v5670_v49, %v5670_v49  ;;  %4913 = vrsqrt.f32 %v1867_v51 }
 0x21d   : > { %v1868_v19 = vadd.f32 1e-05, %v1820_v8  ;;  %v5681_v17 = vsub.f32 %v5346_v22, %v1599_v50  ;;  %1763 = vadd.xlane.f32.xlu1 %v1694_v11  ;;  %1560 = vadd.xlane.f32.xlu0 %v5673_v48  ;;  %v4910_v34 = vpop.eup %4909  ;;  %v5691_v22 = vmul.f32 0.125, %v5438_v59 }
 0x21e   : > { %v1527_v0 = vpop.xlane.xlu1 %1526  ;;  %v1730_v33 = vpop.xlane.xlu0 %1729  ;;  %v1961_v44 = vmul.f32 %v4910_v34, %v5322_v61 }
 0x21f   : > { %4915 = vrsqrt.f32 %v1868_v19  ;;  %v1600_v55 = vmul.f32 0.0078125, %v1527_v0  ;;  %v1821_v42 = vmul.f32 0.0078125, %v1730_v33  ;;  %v1695_v5 = vmul.f32 %v5681_v17, %v5681_v17 }
 0x221   : > { %v4912_v51 = vpop.eup %4911  ;;  %v5687_v58 = vsub.f32 %v5354_v3, %v1600_v55  ;;  %v1869_v62 = vadd.f32 1e-05, %v1821_v42  ;;  %1562 = vadd.xlane.f32.xlu1 %v5678_v35  ;;  %1765 = vadd.xlane.f32.xlu0 %v1695_v5  ;;  %v5698_v55 = vmul.f32 0.125, %v5433_v9 }
 0x222   : > { %v1962_v8 = vmul.f32 %v4912_v51, %v5327_v7  ;;  %v1732_v50 = vpop.xlane.xlu1 %1731  ;;  %v1529_v11 = vpop.xlane.xlu0 %1528 }
 0x223   : > { %v1822_v19 = vmul.f32 0.0078125, %v1732_v50  ;;  %v1601_v0 = vmul.f32 0.0078125, %v1529_v11  ;;  %v1696_v33 = vmul.f32 %v5687_v58, %v5687_v58  ;;  %4917 = vrsqrt.f32 %v1869_v62 }
 0x224   : > { %v2081_v3 = vpack.c.bf16 %v1962_v8, %v1961_v44  ;;  %v5714_v8 = vmul.f32 0.125, %v5481_v39  ;;  %v5723_v39 = vmul.f32 0.125, %v5474_v21 }
 0x225   : > { %v1870_v42 = vadd.f32 1e-05, %v1822_v19  ;;  %v5701_v59 = vsub.f32 %v5367_v31, %v1601_v0  ;;  %1767 = vadd.xlane.f32.xlu1 %v1696_v33  ;;  %1564 = vadd.xlane.f32.xlu0 %v5691_v22  ;;  %v4914_v34 = vpop.eup %4913 }
 0x226   : > { %2250 = vmatmul.mubr.bf16.vlgmr.msra.gmra.mrb[24].mxu0 %v2081_v3  ;;  %v1531_v61 = vpop.xlane.xlu1 %1530  ;;  %v1734_v7 = vpop.xlane.xlu0 %1733  ;;  %v1963_v19 = vmul.f32 %v4914_v34, %v5332_v12 }
 0x227   : > { %4919 = vrsqrt.f32 %v1870_v42  ;;  %v1602_v5 = vmul.f32 0.0078125, %v1531_v61  ;;  %v1823_v51 = vmul.f32 0.0078125, %v1734_v7  ;;  %v1697_v62 = vmul.f32 %v5701_v59, %v5701_v59  ;;  %2259 = vmatprep.mubr.bf16.mxu0 %v6867_v46  ;;  %2571 = vmatpush1.bf16.msra.mxu0 %v5455_v20 }
 0x228   : > { %2572 = vmatprep.subr.bf16.mxu0 %v5468_v18 }
 0x229   : > { %v4916_v31 = vpop.eup %4915  ;;  %v5710_v9 = vsub.f32 %v5381_v37, %v1602_v5  ;;  %v1871_v44 = vadd.f32 1e-05, %v1823_v51  ;;  %1566 = vadd.xlane.f32.xlu1 %v5698_v55  ;;  %1769 = vadd.xlane.f32.xlu0 %v1697_v62  ;;  %v5739_v5 = vmul.f32 0.125, %v5527_v40  ;;  %v5748_v40 = vmul.f32 0.125, %v5520_v27 }
 0x22a   : > { %v1736_v50 = vpop.xlane.xlu1 %1735  ;;  %v1533_v11 = vpop.xlane.xlu0 %1532  ;;  %v1964_v0 = vmul.f32 %v4916_v31, %v5341_v63 }
 0x22b   : > { %v1824_v20 = vmul.f32 0.0078125, %v1736_v50  ;;  %v1603_v33 = vmul.f32 0.0078125, %v1533_v11  ;;  %v1698_v18 = vmul.f32 %v5710_v9, %v5710_v9  ;;  %2573 = vmatpush1.bf16.msra.mxu0 %v5479_v25  ;;  %4921 = vrsqrt.f32 %v1871_v44 }
 0x22c   : > { %v2082_v37 = vpack.c.bf16 %v1964_v0, %v1963_v19  ;;  %2574 = vmatprep.subr.bf16.mxu0 %v5493_v6 }
 0x22d   : > { %v1872_v3 = vadd.f32 1e-05, %v1824_v20  ;;  %v5726_v42 = vsub.f32 %v5397_v13, %v1603_v33  ;;  %1771 = vadd.xlane.f32.xlu1 %v1698_v18  ;;  %1568 = vadd.xlane.f32.xlu0 %v5714_v8  ;;  %v4918_v61 = vpop.eup %4917 }
 0x22e   : > { %2260 = vmatmul.mubr.bf16.gmra.mrb[28].mxu0 %v2082_v37  ;;  %v1535_v12 = vpop.xlane.xlu1 %1534  ;;  %v1738_v63 = vpop.xlane.xlu0 %1737  ;;  %v1965_v31 = vmul.f32 %v4918_v61, %v5349_v26 }
 0x22f   : > { %4923 = vrsqrt.f32 %v1872_v3  ;;  %v1604_v25 = vmul.f32 0.0078125, %v1535_v12  ;;  %v1825_v7 = vmul.f32 0.0078125, %v1738_v63  ;;  %v1699_v6 = vmul.f32 %v5726_v42, %v5726_v42  ;;  %2269 = vmatprep.mubr.bf16.mxu0 %v6867_v46  ;;  %2575 = vmatpush1.bf16.msra.mxu0 %v5502_v24 }
 0x230   : > { %2576 = vmatprep.subr.bf16.mxu0 %v5514_v10 }
 0x231   : > { %v4920_v13 = vpop.eup %4919  ;;  %v5735_v21 = vsub.f32 %v5415_v52, %v1604_v25  ;;  %v1873_v34 = vadd.f32 1e-05, %v1825_v7  ;;  %1570 = vadd.xlane.f32.xlu1 %v5723_v39  ;;  %1773 = vadd.xlane.f32.xlu0 %v1699_v6  ;;  %v2030_v25 = vld [vmem:[%s5603_s26 + $0xa8] sm:$0xff] }
 0x232   : > { %v1740_v51 = vpop.xlane.xlu1 %1739  ;;  %v1537_v62 = vpop.xlane.xlu0 %1536  ;;  %v1966_v44 = vmul.f32 %v4920_v13, %v5358_v54 }
 0x233   : > { %v1826_v24 = vmul.f32 0.0078125, %v1740_v51  ;;  %v1605_v50 = vmul.f32 0.0078125, %v1537_v62  ;;  %v1700_v10 = vmul.f32 %v5735_v21, %v5735_v21  ;;  %2577 = vmatpush1.bf16.msra.mxu0 %v5525_v36  ;;  %4925 = vrsqrt.f32 %v1873_v34 }
 0x234   : > { %v2083_v52 = vpack.c.bf16 %v1966_v44, %v1965_v31  ;;  %2578 = vmatprep.subr.bf16.mxu0 %v5539_v43 }
 0x235   : > { %v1874_v11 = vadd.f32 1e-05, %v1826_v24  ;;  %v5751_v19 = vsub.f32 %v5431_v56, %v1605_v50  ;;  %1775 = vadd.xlane.f32.xlu1 %v1700_v10  ;;  %1572 = vadd.xlane.f32.xlu0 %v5739_v5  ;;  %v4922_v0 = vpop.eup %4921 }
 0x236   : > { %2270 = vmatmul.mubr.bf16.gmra.mrb[32].mxu0 %v2083_v52  ;;  %v1539_v26 = vpop.xlane.xlu1 %1538  ;;  %v1742_v54 = vpop.xlane.xlu0 %1741  ;;  %v1967_v3 = vmul.f32 %v4922_v0, %v5373_v57 }
 0x237   : > { %4927 = vrsqrt.f32 %v1874_v11  ;;  %v1606_v36 = vmul.f32 0.0078125, %v1539_v26  ;;  %v1827_v20 = vmul.f32 0.0078125, %v1742_v54  ;;  %v1701_v43 = vmul.f32 %v5751_v19, %v5751_v19  ;;  %2279 = vmatprep.mubr.bf16.mxu0 %v6867_v46  ;;  %2579 = vmatpush1.bf16.msra.mxu0 %v5548_v28  ;;  %v2032_v54 = vld [vmem:[%s5603_s26 + $0xb8] sm:$0xff] }
 0x238   : > { %2580 = vmatprep.subr.bf16.mxu0 %v5560_v32  ;;  %v2029_v32 = vld [vmem:[%s5603_s26 + $0xa0] sm:$0xff] }
 0x239   : > { %v4924_v56 = vpop.eup %4923  ;;  %v5760_v27 = vsub.f32 %v5449_v4, %v1606_v36  ;;  %v1875_v33 = vadd.f32 1e-05, %v1827_v20  ;;  %1574 = vadd.xlane.f32.xlu1 %v5748_v40  ;;  %1777 = vadd.xlane.f32.xlu0 %v1701_v43  ;;  %v2067_v7 = vpack.c.bf16 %v2030_v25, %v2029_v32 }
 0x23a   : > { %v1744_v18 = vpop.xlane.xlu1 %1743  ;;  %v1541_v37 = vpop.xlane.xlu0 %1540  ;;  %v1968_v12 = vmul.f32 %v4924_v56, %v5388_v2 }
 0x23b   : > { %v1828_v63 = vmul.f32 0.0078125, %v1744_v18  ;;  %v1607_v61 = vmul.f32 0.0078125, %v1541_v37  ;;  %v1702_v28 = vmul.f32 %v5760_v27, %v5760_v27  ;;  %2581 = vmatpush1.bf16.msra.mxu0 %v5569_v29  ;;  %4929 = vrsqrt.f32 %v1875_v33  ;;  %2703 = vmatmul.mubr.bf16.gmra.mrb[48].mxu1 %v2067_v7  ;;  %v2034_v7 = vld [vmem:[%s5603_s26 + $0xc8] sm:$0xff] }
 0x23c   : > { %v2084_v4 = vpack.c.bf16 %v1968_v12, %v1967_v3  ;;  %2582 = vmatprep.subr.bf16.mxu0 %v5581_v47  ;;  %2712 = vmatprep.mubr.bf16.mxu1 %v6867_v46 }
 0x23d   : > { %v1876_v6 = vadd.f32 1e-05, %v1828_v63  ;;  %v5772_v13 = vsub.f32 %v5472_v23, %v1607_v61  ;;  %1779 = vadd.xlane.f32.xlu1 %v1702_v28  ;;  %v4926_v34 = vpop.eup %4925  ;;  %v6870_v63 = vld [vmem:[#allocation2_spill] sm:$0xff] }
 0x23e   : > { %2280 = vmatmul.mubr.bf16.gmra.mrb[36].mxu0 %v2084_v4  ;;  %v1543_v57 = vpop.xlane.xlu1 %1542  ;;  %v1746_v2 = vpop.xlane.xlu0 %1745  ;;  %v1969_v50 = vmul.f32 %v4926_v34, %v5405_v14  ;;  %v2033_v4 = vld [vmem:[%s5603_s26 + $0xc0] sm:$0xff] }
 0x23f   : > { %4931 = vrsqrt.f32 %v1876_v6  ;;  %v1608_v51 = vmul.f32 0.0078125, %v1543_v57  ;;  %v1829_v62 = vmul.f32 0.0078125, %v1746_v2  ;;  %v1703_v29 = vmul.f32 %v5772_v13, %v5772_v13  ;;  %2289 = vmatprep.mubr.bf16.mxu0 %v6867_v46  ;;  %2583 = vmatpush1.bf16.msra.mxu0 %v5590_v30  ;;  %v2031_v30 = vld [vmem:[%s5603_s26 + $0xb0] sm:$0xff]  ;;  %v6871_v2 = vld [vmem:[#allocation7_spill] sm:$0xff] }
 0x240   : > { %2584 = vmatprep.subr.bf16.mxu0 %v5608_v15  ;;  %v2069_v57 = vpack.c.bf16 %v2034_v7, %v2033_v4 }
 0x241   : > { %v4928_v23 = vpop.eup %4927  ;;  %v5780_v47 = vsub.f32 %v5496_v38, %v1608_v51  ;;  %v1877_v31 = vadd.f32 1e-05, %v1829_v62  ;;  %1781 = vadd.xlane.f32.xlu0 %v1703_v29  ;;  %v2068_v38 = vpack.c.bf16 %v2032_v54, %v2031_v30  ;;  %v6874_v54 = vld [vmem:[#allocation4_spill] sm:$0xff] }
 0x242   : > { %v1748_v44 = vpop.xlane.xlu1 %1747  ;;  %v1545_v24 = vpop.xlane.xlu0 %1544  ;;  %v1970_v10 = vmul.f32 %v4928_v23, %v5422_v53 }
 0x243   : > { %v1830_v52 = vmul.f32 0.0078125, %v1748_v44  ;;  %v1609_v11 = vmul.f32 0.0078125, %v1545_v24  ;;  %v1704_v26 = vmul.f32 %v5780_v47, %v5780_v47  ;;  %2585 = vmatpush1.bf16.msra.mxu0 %v5617_v45  ;;  %4933 = vrsqrt.f32 %v1877_v31  ;;  %2713 = vmatmul.mubr.bf16.gmra.mrb[52].mxu1 %v2068_v38  ;;  %v6872_v24 = vld [vmem:[#allocation9_spill] sm:$0xff] }
 0x244   : > { %v2085_v0 = vpack.c.bf16 %v1970_v10, %v1969_v50  ;;  %2722 = vmatprep.mubr.bf16.mxu1 %v6867_v46 }
 0x245   : > { %v1878_v36 = vadd.f32 1e-05, %v1830_v52  ;;  %v5791_v15 = vsub.f32 %v5518_v41, %v1609_v11  ;;  %1783 = vadd.xlane.f32.xlu1 %v1704_v26  ;;  %v4930_v20 = vpop.eup %4929  ;;  %v6873_v26 = vld [vmem:[#allocation3_spill] sm:$0xff] }
 0x246   : > { %2290 = vmatmul.mubr.bf16.gmra.mrb[40].mxu0 %v2085_v0  ;;  %v1547_v14 = vpop.xlane.xlu1 %1546  ;;  %v1750_v53 = vpop.xlane.xlu0 %1749  ;;  %v1971_v12 = vmul.f32 %v4930_v20, %v5441_v60  ;;  %v2036_v20 = vld [vmem:[%s5603_s26 + $0xd8] sm:$0xff] }
 0x247   : > { %4935 = vrsqrt.f32 %v1878_v36  ;;  %v1610_v43 = vmul.f32 0.0078125, %v1547_v14  ;;  %v1831_v56 = vmul.f32 0.0078125, %v1750_v53  ;;  %v1705_v33 = vmul.f32 %v5791_v15, %v5791_v15  ;;  %2299 = vmatprep.mubr.bf16.mxu0 %v6867_v46  ;;  %v2035_v53 = vld [vmem:[%s5603_s26 + $0xd0] sm:$0xff] }
 0x249   : > { %v4932_v41 = vpop.eup %4931  ;;  %v5798_v45 = vsub.f32 %v5542_v1, %v1610_v43  ;;  %v1879_v18 = vadd.f32 1e-05, %v1831_v56  ;;  %1785 = vadd.xlane.f32.xlu0 %v1705_v33  ;;  %v2070_v56 = vpack.c.bf16 %v2036_v20, %v2035_v53  ;;  %v6881_v20 = vld [vmem:[#allocation8_spill] sm:$0xff] }
 0x24a   : > { %v1752_v37 = vpop.xlane.xlu1 %1751  ;;  %v1549_v3 = vpop.xlane.xlu0 %1548  ;;  %v1972_v61 = vmul.f32 %v4932_v41, %v6870_v63  ;;  %v6875_v41 = vld [vmem:[#allocation11_spill] sm:$0xff] }
 0x24b   : > { %v1832_v28 = vmul.f32 0.0078125, %v1752_v37  ;;  %v1611_v32 = vmul.f32 0.0078125, %v1549_v3  ;;  %v1706_v25 = vmul.f32 %v5798_v45, %v5798_v45  ;;  %4937 = vrsqrt.f32 %v1879_v18  ;;  %2723 = vmatmul.mubr.bf16.gmra.mrb[56].mxu1 %v2069_v57 }
 0x24c   : > { %v2086_v6 = vpack.c.bf16 %v1972_v61, %v1971_v12  ;;  %2732 = vmatprep.mubr.bf16.mxu1 %v6867_v46 }
 0x24d   : > { %v1880_v1 = vadd.f32 1e-05, %v1832_v28  ;;  %v5807_v34 = vsub.f32 %v6871_v2, %v1611_v32  ;;  %1787 = vadd.xlane.f32.xlu1 %v1706_v25  ;;  %v4934_v62 = vpop.eup %4933  ;;  %v6876_v25 = vld [vmem:[#allocation13_spill] sm:$0xff] }
 0x24e   : > { %v1551_v51 = vpop.xlane.xlu1 %1550  ;;  %2300 = vmatmul.mubr.bf16.gmra.mrb[44].mxu0 %v2086_v6  ;;  %v1754_v60 = vpop.xlane.xlu0 %1753  ;;  %v1973_v30 = vmul.f32 %v4934_v62, %v6873_v26 }
 0x24f   : > { %4939 = vrsqrt.f32 %v1880_v1  ;;  %v1612_v29 = vmul.f32 0.0078125, %v1551_v51  ;;  %v1833_v23 = vmul.f32 0.0078125, %v1754_v60  ;;  %v1707_v31 = vmul.f32 %v5807_v34, %v5807_v34  ;;  %2309 = vmatprep.mubr.bf16.mxu0 %v6867_v46  ;;  %v6877_v1 = vld [vmem:[#allocation5_spill] sm:$0xff]  ;;  %v6878_v51 = vld [vmem:[#allocation6_spill] sm:$0xff] }
 0x251   : > { %v4936_v44 = vpop.eup %4935  ;;  %v5814_v50 = vsub.f32 %v6872_v24, %v1612_v29  ;;  %v1881_v10 = vadd.f32 1e-05, %v1833_v23  ;;  %1789 = vadd.xlane.f32.xlu0 %v1707_v31  ;;  %v2037_v31 = vld [vmem:[%s5603_s26 + $0xe0] sm:$0xff] }
 0x252   : > { %v1756_v52 = vpop.xlane.xlu1 %1755  ;;  %v1553_v11 = vpop.xlane.xlu0 %1552  ;;  %v1974_v0 = vmul.f32 %v4936_v44, %v6874_v54  ;;  %v2038_v44 = vld [vmem:[%s5603_s26 + $0xe8] sm:$0xff] }
 0x253   : > { %v1834_v38 = vmul.f32 0.0078125, %v1756_v52  ;;  %v1613_v36 = vmul.f32 0.0078125, %v1553_v11  ;;  %v1708_v14 = vmul.f32 %v5814_v50, %v5814_v50  ;;  %4941 = vrsqrt.f32 %v1881_v10  ;;  %2733 = vmatmul.mubr.bf16.gmra.mrb[60].mxu1 %v2070_v56  ;;  %v6879_v11 = vld [vmem:[#allocation15_spill] sm:$0xff]  ;;  %v6882_v56 = vld [vmem:[#allocation10_spill] sm:$0xff] }
 0x254   : > { %v2087_v43 = vpack.c.bf16 %v1974_v0, %v1973_v30  ;;  %2742 = vmatprep.mubr.bf16.mxu1 %v6867_v46  ;;  %v2071_v10 = vpack.c.bf16 %v2038_v44, %v2037_v31  ;;  %v2046_v31 = vld [vmem:[%s5603_s26 + $0x128] sm:$0xff] }
 0x255   : > { %v1882_v33 = vadd.f32 1e-05, %v1834_v38  ;;  %v5823_v18 = vsub.f32 %v6875_v41, %v1613_v36  ;;  %1791 = vadd.xlane.f32.xlu1 %v1708_v14  ;;  %v4938_v12 = vpop.eup %4937  ;;  %v6880_v14 = vld [vmem:[#allocation16_spill] sm:$0xff] }
 0x256   : > { %2310 = vmatmul.mubr.bf16.gmra.mrb[48].mxu0 %v2087_v43  ;;  %v1555_v37 = vpop.xlane.xlu1 %1554  ;;  %v1758_v3 = vpop.xlane.xlu0 %1757  ;;  %v1975_v2 = vmul.f32 %v4938_v12, %v6877_v1  ;;  %v2042_v1 = vld [vmem:[%s5603_s26 + $0x108] sm:$0xff] }
 0x257   : > { %4943 = vrsqrt.f32 %v1882_v33  ;;  %v1614_v63 = vmul.f32 0.0078125, %v1555_v37  ;;  %v1835_v61 = vmul.f32 0.0078125, %v1758_v3  ;;  %v1709_v28 = vmul.f32 %v5823_v18, %v5823_v18  ;;  %2319 = vmatprep.mubr.bf16.mxu0 %v6867_v46  ;;  %v2039_v37 = vld [vmem:[%s5603_s26 + $0xf0] sm:$0xff]  ;;  %v2040_v3 = vld [vmem:[%s5603_s26 + $0xf8] sm:$0xff] }
 0x259   : > { %v4940_v32 = vpop.eup %4939  ;;  %v5830_v4 = vsub.f32 %v6876_v25, %v1614_v63  ;;  %v1883_v7 = vadd.f32 1e-05, %v1835_v61  ;;  %1793 = vadd.xlane.f32.xlu0 %v1709_v28  ;;  %v2072_v63 = vpack.c.bf16 %v2040_v3, %v2039_v37 }
 0x25a   : > { %v1760_v6 = vpop.xlane.xlu1 %1759  ;;  %v1557_v57 = vpop.xlane.xlu0 %1556  ;;  %v1976_v60 = vmul.f32 %v4940_v32, %v6878_v51  ;;  %v6883_v32 = vld [vmem:[#allocation12_spill] sm:$0xff] }
 0x25b   : > { %v1836_v62 = vmul.f32 0.0078125, %v1760_v6  ;;  %v1615_v29 = vmul.f32 0.0078125, %v1557_v57  ;;  %v1710_v23 = vmul.f32 %v5830_v4, %v5830_v4  ;;  %4945 = vrsqrt.f32 %v1883_v7  ;;  %2743 = vmatmul.mubr.bf16.gmra.mrb[64].mxu1 %v2071_v10  ;;  %v6884_v7 = vld [vmem:[#allocation14_spill] sm:$0xff]  ;;  %v2048_v10 = vld [vmem:[%s5603_s26 + $0x138] sm:$0xff] }
 0x25c   : > { %v2088_v24 = vpack.c.bf16 %v1976_v60, %v1975_v2  ;;  %2752 = vmatprep.mubr.bf16.mxu1 %v6867_v46  ;;  %v2041_v57 = vld [vmem:[%s5603_s26 + $0x100] sm:$0xff]  ;;  %v2043_v60 = vld [vmem:[%s5603_s26 + $0x110] sm:$0xff] }
 0x25d   : > { %v1884_v52 = vadd.f32 1e-05, %v1836_v62  ;;  %v5839_v26 = vsub.f32 %v6879_v11, %v1615_v29  ;;  %1795 = vadd.xlane.f32.xlu1 %v1710_v23  ;;  %v4942_v54 = vpop.eup %4941  ;;  %v2073_v51 = vpack.c.bf16 %v2042_v1, %v2041_v57  ;;  %v2044_v62 = vld [vmem:[%s5603_s26 + $0x118] sm:$0xff]  ;;  %v2045_v23 = vld [vmem:[%s5603_s26 + $0x120] sm:$0xff] }
 0x25e   : > { %2320 = vmatmul.mubr.bf16.gmra.mrb[52].mxu0 %v2088_v24  ;;  %v1559_v30 = vpop.xlane.xlu1 %1558  ;;  %v1977_v43 = vmul.f32 %v4942_v54, %v6881_v20  ;;  %v2074_v29 = vpack.c.bf16 %v2044_v62, %v2043_v60  ;;  %v2075_v44 = vpack.c.bf16 %v2046_v31, %v2045_v23  ;;  %v2047_v24 = vld [vmem:[%s5603_s26 + $0x130] sm:$0xff] }
 0x25f   : > { %4947 = vrsqrt.f32 %v1884_v52  ;;  %v1616_v0 = vmul.f32 0.0078125, %v1559_v30  ;;  %v1711_v38 = vmul.f32 %v5839_v26, %v5839_v26  ;;  %2329 = vmatprep.mubr.bf16.mxu0 %v6867_v46  ;;  %v2076_v52 = vpack.c.bf16 %v2048_v10, %v2047_v24 }
 0x261   : > { %v4944_v36 = vpop.eup %4943  ;;  %v5846_v53 = vsub.f32 %v6880_v14, %v1616_v0  ;;  %1797 = vadd.xlane.f32.xlu0 %v1711_v38 }
 0x262   : > { %v1978_v33 = vmul.f32 %v4944_v36, %v6882_v56 }
 0x263   : > { %v1712_v41 = vmul.f32 %v5846_v53, %v5846_v53  ;;  %2753 = vmatmul.mubr.bf16.gmra.mrb[68].mxu1 %v2072_v63 }
 0x264   : > { %v2089_v12 = vpack.c.bf16 %v1978_v33, %v1977_v43  ;;  %2762 = vmatprep.mubr.bf16.mxu1 %v6867_v46 }
 0x265   : > { %1799 = vadd.xlane.f32.xlu1 %v1712_v41  ;;  %v4946_v61 = vpop.eup %4945 }
 0x266   : > { %2330 = vmatmul.mubr.bf16.gmra.mrb[56].mxu0 %v2089_v12  ;;  %v1979_v25 = vmul.f32 %v4946_v61, %v6883_v32 }
 0x267   : > { %2339 = vmatprep.mubr.bf16.mxu0 %v6867_v46 }
 0x269   : > { %v4948_v28 = vpop.eup %4947 }
 0x26a   : > { %v1980_v6 = vmul.f32 %v4948_v28, %v6884_v7 }
 0x26b   : > { %2763 = vmatmul.mubr.bf16.gmra.mrb[72].mxu1 %v2073_v51 }
 0x26c   : > { %v2090_v2 = vpack.c.bf16 %v1980_v6, %v1979_v25  ;;  %2772 = vmatprep.mubr.bf16.mxu1 %v6867_v46 }
 0x26e   : > { %2340 = vmatmul.mubr.bf16.gmra.mrb[60].mxu0 %v2090_v2 }
 0x26f   : > { %2349 = vmatprep.mubr.bf16.mxu0 %v6867_v46 }
 0x273   : > { %2773 = vmatmul.mubr.bf16.gmra.mrb[76].mxu1 %v2074_v29 }
 0x274   : > { %2782 = vmatprep.mubr.bf16.mxu1 %v6867_v46 }
 0x27b   : > { %2783 = vmatmul.mubr.bf16.gmra.mrb[80].mxu1 %v2075_v44 }
 0x27c   : > { %2792 = vmatprep.mubr.bf16.mxu1 %v6867_v46 }
 0x283   : > { %2793 = vmatmul.mubr.bf16.gmra.mrb[84].mxu1 %v2076_v52 }
 0x284   : > { %2802 = vmatprep.mubr.bf16.mxu1 %v6867_v46 }
 0x297   : > { %v5871_v11 = vpop.f32.mrb[24].mxu1 }
 0x298   : > { %v5873_v30 = vpop.f32.mrb[25].mxu1 }
 0x299   : > { %v5875_v54 = vpop.f32.mrb[26].mxu1 }
 0x29a   : > { %v2650_v0 = vpop.f32.mrb[27].mxu1 }
 0x29f   : > { %v5877_v38 = vpop.f32.mrb[28].mxu1 }
 0x2a0   : > { %v2656_v36 = vpop.f32.mrb[29].mxu1 }
 0x2a1   : > { %v5879_v14 = vpop.f32.mrb[30].mxu1 }
 0x2a2   : > { %v5881_v20 = vpop.f32.mrb[31].mxu1 }
 0x2a6   : > { %v1762_v43 = vpop.xlane.xlu0 %1761 }
 0x2a7   : > { %v1837_v56 = vmul.f32 0.0078125, %v1762_v43  ;;  %v5883_v41 = vpop.f32.mrb[32].mxu1 }
 0x2a8   : > { %v2666_v61 = vpop.f32.mrb[33].mxu1 }
 0x2a9   : > { %v1885_v33 = vadd.f32 1e-05, %v1837_v56  ;;  %v5885_v28 = vpop.f32.mrb[34].mxu1 }
 0x2aa   : > { %v1764_v37 = vpop.xlane.xlu1 %1763  ;;  %v1561_v3 = vpop.xlane.xlu0 %1560 }
 0x2ab   : > { %v1838_v12 = vmul.f32 0.0078125, %v1764_v37  ;;  %v1617_v63 = vmul.f32 0.0078125, %v1561_v3  ;;  %4949 = vrsqrt.f32 %v1885_v33  ;;  %v2670_v7 = vpop.f32.mrb[35].mxu1 }
 0x2ad   : > { %v1886_v32 = vadd.f32 1e-05, %v1838_v12  ;;  %v5888_v25 = vsub.f32 %v5673_v48, %v1617_v63 }
 0x2ae   : > { %v1563_v6 = vpop.xlane.xlu1 %1562  ;;  %v1766_v57 = vpop.xlane.xlu0 %1765 }
 0x2af   : > { %4951 = vrsqrt.f32 %v1886_v32  ;;  %v1618_v1 = vmul.f32 0.0078125, %v1563_v6  ;;  %v1839_v2 = vmul.f32 0.0078125, %v1766_v57  ;;  %v1713_v51 = vmul.f32 %v5888_v25, %v5888_v25  ;;  %v5895_v29 = vpop.f32.mrb[36].mxu1 }
 0x2b0   : > { %v5899_v10 = vpop.f32.mrb[37].mxu1 }
 0x2b1   : > { %v5893_v60 = vsub.f32 %v5678_v35, %v1618_v1  ;;  %v1887_v62 = vadd.f32 1e-05, %v1839_v2  ;;  %1801 = vadd.xlane.f32.xlu0 %v1713_v51  ;;  %v5901_v52 = vpop.f32.mrb[38].mxu1 }
 0x2b2   : > { %v1768_v23 = vpop.xlane.xlu1 %1767  ;;  %v1565_v31 = vpop.xlane.xlu0 %1564 }
 0x2b3   : > { %v1840_v48 = vmul.f32 0.0078125, %v1768_v23  ;;  %v1619_v44 = vmul.f32 0.0078125, %v1565_v31  ;;  %v1714_v24 = vmul.f32 %v5893_v60, %v5893_v60  ;;  %4953 = vrsqrt.f32 %v1887_v62  ;;  %v2680_v36 = vpop.f32.mrb[39].mxu1 }
 0x2b5   : > { %v1888_v0 = vadd.f32 1e-05, %v1840_v48  ;;  %v5904_v35 = vsub.f32 %v5691_v22, %v1619_v44  ;;  %1803 = vadd.xlane.f32.xlu1 %v1714_v24  ;;  %v4950_v33 = vpop.eup %4949 }
 0x2b6   : > { %v1567_v43 = vpop.xlane.xlu1 %1566  ;;  %v1770_v56 = vpop.xlane.xlu0 %1769  ;;  %v1981_v57 = vmul.f32 %v4950_v33, %v5665_v16 }
 0x2b7   : > { %4955 = vrsqrt.f32 %v1888_v0  ;;  %v1620_v37 = vmul.f32 0.0078125, %v1567_v43  ;;  %v1841_v3 = vmul.f32 0.0078125, %v1770_v56  ;;  %v1715_v12 = vmul.f32 %v5904_v35, %v5904_v35  ;;  %v5911_v7 = vpop.f32.mrb[40].mxu1 }
 0x2b8   : > { %v2686_v23 = vpop.f32.mrb[41].mxu1 }
 0x2b9   : > { %v4952_v63 = vpop.eup %4951  ;;  %v5909_v61 = vsub.f32 %v5698_v55, %v1620_v37  ;;  %v1889_v32 = vadd.f32 1e-05, %v1841_v3  ;;  %1805 = vadd.xlane.f32.xlu0 %v1715_v12  ;;  %v5917_v48 = vpop.f32.mrb[42].mxu1 }
 0x2ba   : > { %v1772_v22 = vpop.xlane.xlu1 %1771  ;;  %v1569_v6 = vpop.xlane.xlu0 %1568  ;;  %v1982_v1 = vmul.f32 %v4952_v63, %v5670_v49 }
 0x2bb   : > { %v1842_v2 = vmul.f32 0.0078125, %v1772_v22  ;;  %v1621_v51 = vmul.f32 0.0078125, %v1569_v6  ;;  %v1716_v62 = vmul.f32 %v5909_v61, %v5909_v61  ;;  %4957 = vrsqrt.f32 %v1889_v32  ;;  %v5922_v24 = vpop.f32.mrb[43].mxu1 }
 0x2bc   : > { %v2091_v31 = vpack.c.bf16 %v1982_v1, %v1981_v57 }
 0x2bd   : > { %v1890_v55 = vadd.f32 1e-05, %v1842_v2  ;;  %v5920_v44 = vsub.f32 %v5714_v8, %v1621_v51  ;;  %1807 = vadd.xlane.f32.xlu1 %v1716_v62  ;;  %v4954_v0 = vpop.eup %4953 }
 0x2be   : > { %2350 = vmatmul.mubr.bf16.gmra.mrb[64].mxu0 %v2091_v31  ;;  %v1571_v16 = vpop.xlane.xlu1 %1570  ;;  %v1774_v49 = vpop.xlane.xlu0 %1773  ;;  %v1983_v32 = vmul.f32 %v4954_v0, %v5681_v17 }
 0x2bf   : > { %4959 = vrsqrt.f32 %v1890_v55  ;;  %v1622_v36 = vmul.f32 0.0078125, %v1571_v16  ;;  %v1843_v43 = vmul.f32 0.0078125, %v1774_v49  ;;  %v1717_v56 = vmul.f32 %v5920_v44, %v5920_v44  ;;  %2359 = vmatprep.mubr.bf16.mxu0 %v6867_v46  ;;  %v5930_v3 = vpop.f32.mrb[44].mxu1 }
 0x2c0   : > { %v2696_v2 = vpop.f32.mrb[45].mxu1 }
 0x2c1   : > { %v4956_v33 = vpop.eup %4955  ;;  %v5928_v37 = vsub.f32 %v5723_v39, %v1622_v36  ;;  %v1891_v8 = vadd.f32 1e-05, %v1843_v43  ;;  %1809 = vadd.xlane.f32.xlu0 %v1717_v56  ;;  %v5936_v62 = vpop.f32.mrb[46].mxu1 }
 0x2c2   : > { %v1776_v12 = vpop.xlane.xlu1 %1775  ;;  %v1573_v63 = vpop.xlane.xlu0 %1572  ;;  %v1984_v22 = vmul.f32 %v4956_v33, %v5687_v58 }
 0x2c3   : > { %v1844_v6 = vmul.f32 0.0078125, %v1776_v12  ;;  %v1623_v57 = vmul.f32 0.0078125, %v1573_v63  ;;  %v1718_v1 = vmul.f32 %v5928_v37, %v5928_v37  ;;  %4961 = vrsqrt.f32 %v1891_v8  ;;  %v2700_v31 = vpop.f32.mrb[47].mxu1 }
 0x2c4   : > { %v2092_v51 = vpack.c.bf16 %v1984_v22, %v1983_v32  ;;  %v2049_v31 = vld [vmem:[%s5603_s26 + $0x140] sm:$0xff] }
 0x2c5   : > { %v1892_v39 = vadd.f32 1e-05, %v1844_v6  ;;  %v5939_v23 = vsub.f32 %v5739_v5, %v1623_v57  ;;  %1811 = vadd.xlane.f32.xlu1 %v1718_v1  ;;  %v4958_v58 = vpop.eup %4957 }
 0x2c6   : > { %v1575_v55 = vpop.xlane.xlu1 %1574  ;;  %2360 = vmatmul.mubr.bf16.gmra.mrb[68].mxu0 %v2092_v51  ;;  %v1778_v17 = vpop.xlane.xlu0 %1777  ;;  %v1985_v33 = vmul.f32 %v4958_v58, %v5701_v59 }
 0x2c7   : > { %4963 = vrsqrt.f32 %v1892_v39  ;;  %v1624_v16 = vmul.f32 0.0078125, %v1575_v55  ;;  %v1845_v49 = vmul.f32 0.0078125, %v1778_v17  ;;  %v1719_v0 = vmul.f32 %v5939_v23, %v5939_v23  ;;  %2369 = vmatprep.mubr.bf16.mxu0 %v6867_v46  ;;  %v2050_v55 = vld [vmem:[%s5603_s26 + $0x148] sm:$0xff] }
 0x2c8   : > { %v2077_v58 = vpack.c.bf16 %v2050_v55, %v2049_v31  ;;  %v2054_v31 = vld [vmem:[%s5603_s26 + $0x168] sm:$0xff] }
 0x2c9   : > { %v4960_v36 = vpop.eup %4959  ;;  %v5945_v43 = vsub.f32 %v5748_v40, %v1624_v16  ;;  %v1893_v5 = vadd.f32 1e-05, %v1845_v49  ;;  %1813 = vadd.xlane.f32.xlu0 %v1719_v0 }
 0x2ca   : > { %v1780_v56 = vpop.xlane.xlu1 %1779  ;;  %v1986_v8 = vmul.f32 %v4960_v36, %v5710_v9  ;;  %2803 = vmatmul.mubr.bf16.gmra.mrb[88].mxu1 %v2077_v58 }
 0x2cb   : > { %v1846_v12 = vmul.f32 0.0078125, %v1780_v56  ;;  %v1720_v63 = vmul.f32 %v5945_v43, %v5945_v43  ;;  %4965 = vrsqrt.f32 %v1893_v5  ;;  %2812 = vmatprep.mubr.bf16.mxu1 %v6867_v46 }
 0x2cc   : > { %v2093_v32 = vpack.c.bf16 %v1986_v8, %v1985_v33 }
 0x2cd   : > { %v1894_v22 = vadd.f32 1e-05, %v1846_v12  ;;  %1815 = vadd.xlane.f32.xlu1 %v1720_v63  ;;  %v4962_v6 = vpop.eup %4961  ;;  %v2051_v12 = vld [vmem:[%s5603_s26 + $0x150] sm:$0xff]  ;;  %v2052_v63 = vld [vmem:[%s5603_s26 + $0x158] sm:$0xff] }
 0x2ce   : > { %2370 = vmatmul.mubr.bf16.gmra.mrb[72].mxu0 %v2093_v32  ;;  %v1782_v40 = vpop.xlane.xlu0 %1781  ;;  %v1987_v2 = vmul.f32 %v4962_v6, %v5726_v42 }
 0x2cf   : > { %4967 = vrsqrt.f32 %v1894_v22  ;;  %v1847_v57 = vmul.f32 0.0078125, %v1782_v40  ;;  %2379 = vmatprep.mubr.bf16.mxu0 %v6867_v46  ;;  %v2078_v22 = vpack.c.bf16 %v2052_v63, %v2051_v12 }
 0x2d1   : > { %v4964_v59 = vpop.eup %4963  ;;  %v1895_v1 = vadd.f32 1e-05, %v1847_v57 }
 0x2d2   : > { %v1784_v9 = vpop.xlane.xlu1 %1783  ;;  %v1988_v51 = vmul.f32 %v4964_v59, %v5735_v21  ;;  %2813 = vmatmul.mubr.bf16.gmra.mrb[92].mxu1 %v2078_v22 }
 0x2d3   : > { %v1848_v39 = vmul.f32 0.0078125, %v1784_v9  ;;  %4969 = vrsqrt.f32 %v1895_v1  ;;  %2822 = vmatprep.mubr.bf16.mxu1 %v6867_v46 }
 0x2d4   : > { %v2094_v17 = vpack.c.bf16 %v1988_v51, %v1987_v2 }
 0x2d5   : > { %v1896_v16 = vadd.f32 1e-05, %v1848_v39  ;;  %v4966_v0 = vpop.eup %4965  ;;  %v2053_v39 = vld [vmem:[%s5603_s26 + $0x160] sm:$0xff] }
 0x2d6   : > { %2380 = vmatmul.mubr.bf16.gmra.mrb[76].mxu0 %v2094_v17  ;;  %v1786_v49 = vpop.xlane.xlu0 %1785  ;;  %v1989_v56 = vmul.f32 %v4966_v0, %v5751_v19  ;;  %v2079_v17 = vpack.c.bf16 %v2054_v31, %v2053_v39 }
 0x2d7   : > { %4971 = vrsqrt.f32 %v1896_v16  ;;  %v1849_v36 = vmul.f32 0.0078125, %v1786_v49  ;;  %2389 = vmatprep.mubr.bf16.mxu0 %v6867_v46 }
 0x2d9   : > { %v4968_v42 = vpop.eup %4967  ;;  %v1897_v21 = vadd.f32 1e-05, %v1849_v36 }
 0x2da   : > { %v1788_v5 = vpop.xlane.xlu1 %1787  ;;  %v1990_v33 = vmul.f32 %v4968_v42, %v5760_v27  ;;  %2823 = vmatmul.mubr.bf16.gmra.mrb[96].mxu1 %v2079_v17 }
 0x2db   : > { %v1850_v8 = vmul.f32 0.0078125, %v1788_v5  ;;  %4973 = vrsqrt.f32 %v1897_v21  ;;  %2832 = vmatprep.mubr.bf16.mxu1 %v6867_v46 }
 0x2dc   : > { %v2095_v32 = vpack.c.bf16 %v1990_v33, %v1989_v56  ;;  %v2055_v56 = vld [vmem:[%s5603_s26 + $0x170] sm:$0xff]  ;;  %v2056_v33 = vld [vmem:[%s5603_s26 + $0x178] sm:$0xff] }
 0x2dd   : > { %v1898_v40 = vadd.f32 1e-05, %v1850_v8  ;;  %v4970_v57 = vpop.eup %4969  ;;  %v2080_v12 = vpack.c.bf16 %v2056_v33, %v2055_v56 }
 0x2de   : > { %2390 = vmatmul.mubr.bf16.gmra.mrb[80].mxu0 %v2095_v32  ;;  %v1790_v6 = vpop.xlane.xlu0 %1789  ;;  %v1991_v9 = vmul.f32 %v4970_v57, %v5772_v13 }
 0x2df   : > { %4975 = vrsqrt.f32 %v1898_v40  ;;  %v1851_v59 = vmul.f32 0.0078125, %v1790_v6  ;;  %2399 = vmatprep.mubr.bf16.mxu0 %v6867_v46 }
 0x2e1   : > { %v4972_v19 = vpop.eup %4971  ;;  %v1899_v27 = vadd.f32 1e-05, %v1851_v59 }
 0x2e2   : > { %v1792_v1 = vpop.xlane.xlu1 %1791  ;;  %v1992_v2 = vmul.f32 %v4972_v19, %v5780_v47  ;;  %2833 = vmatmul.mubr.bf16.gmra.mrb[100].mxu1 %v2080_v12 }
 0x2e3   : > { %v1852_v51 = vmul.f32 0.0078125, %v1792_v1  ;;  %4977 = vrsqrt.f32 %v1899_v27 }
 0x2e4   : > { %v2096_v55 = vpack.c.bf16 %v1992_v2, %v1991_v9 }
 0x2e5   : > { %v1900_v58 = vadd.f32 1e-05, %v1852_v51  ;;  %v4974_v49 = vpop.eup %4973 }
 0x2e6   : > { %2400 = vmatmul.mubr.bf16.gmra.mrb[84].mxu0 %v2096_v55  ;;  %v1794_v16 = vpop.xlane.xlu0 %1793  ;;  %v1993_v42 = vmul.f32 %v4974_v49, %v5791_v15  ;;  %v4887_v15 = vld [vmem:[%s6827_s4 + $0x104] ss:$8 sps:$4 sm:$0xff]  }
 0x2e7   : > { %4979 = vrsqrt.f32 %v1900_v58  ;;  %v1853_v0 = vmul.f32 0.0078125, %v1794_v16  ;;  %2409 = vmatprep.mubr.bf16.mxu0 %v6867_v46  ;;  %2953 = vmatprep.subr.bf16.mxu0 %v4887_v15 }
 0x2e9   : > { %v4976_v13 = vpop.eup %4975  ;;  %v1901_v47 = vadd.f32 1e-05, %v1853_v0 }
 0x2ea   : > { %v1796_v36 = vpop.xlane.xlu1 %1795  ;;  %v1994_v21 = vmul.f32 %v4976_v13, %v5798_v45 }
 0x2eb   : > { %v1854_v5 = vmul.f32 0.0078125, %v1796_v36  ;;  %4981 = vrsqrt.f32 %v1901_v47 }
 0x2ec   : > { %v2097_v8 = vpack.c.bf16 %v1994_v21, %v1993_v42 }
 0x2ed   : > { %v1902_v63 = vadd.f32 1e-05, %v1854_v5  ;;  %v4978_v22 = vpop.eup %4977 }
 0x2ee   : > { %2410 = vmatmul.mubr.bf16.gmra.mrb[88].mxu0 %v2097_v8  ;;  %v1798_v32 = vpop.xlane.xlu0 %1797  ;;  %v1995_v59 = vmul.f32 %v4978_v22, %v5807_v34 }
 0x2ef   : > { %4983 = vrsqrt.f32 %v1902_v63  ;;  %v1855_v40 = vmul.f32 0.0078125, %v1798_v32  ;;  %2419 = vmatprep.mubr.bf16.mxu0 %v6867_v46 }
 0x2f1   : > { %v4980_v45 = vpop.eup %4979  ;;  %v1903_v6 = vadd.f32 1e-05, %v1855_v40 }
 0x2f2   : > { %v1800_v57 = vpop.xlane.xlu1 %1799  ;;  %v1996_v19 = vmul.f32 %v4980_v45, %v5814_v50 }
 0x2f3   : > { %v1856_v27 = vmul.f32 0.0078125, %v1800_v57  ;;  %4985 = vrsqrt.f32 %v1903_v6 }
 0x2f4   : > { %v2098_v1 = vpack.c.bf16 %v1996_v19, %v1995_v59 }
 0x2f5   : > { %v1904_v9 = vadd.f32 1e-05, %v1856_v27  ;;  %v4982_v2 = vpop.eup %4981 }
 0x2f6   : > { %2420 = vmatmul.mubr.bf16.gmra.mrb[92].mxu0 %v2098_v1  ;;  %v1997_v55 = vmul.f32 %v4982_v2, %v5823_v18 }
 0x2f7   : > { %4987 = vrsqrt.f32 %v1904_v9  ;;  %2429 = vmatprep.mubr.bf16.mxu0 %v6867_v46 }
 0x2f9   : > { %v4984_v51 = vpop.eup %4983  ;;  %v5981_v39 = vpop.f32.mrb[24].mxu0 }
 0x2fa   : > { %v2253_v31 = vpop.f32.mrb[25].mxu0  ;;  %v1998_v17 = vmul.f32 %v4984_v51, %v5830_v4 }
 0x2fb   : > { %v5985_v34 = vpop.f32.mrb[26].mxu0 }
 0x2fc   : > { %v2257_v50 = vpop.f32.mrb[27].mxu0  ;;  %v2099_v58 = vpack.c.bf16 %v1998_v17, %v1997_v55 }
 0x2fd   : > { %v4986_v16 = vpop.eup %4985 }
 0x2fe   : > { %2430 = vmatmul.mubr.bf16.gmra.mrb[96].mxu0 %v2099_v58  ;;  %v1999_v47 = vmul.f32 %v4986_v16, %v5839_v26 }
 0x2ff   : > { %2439 = vmatprep.mubr.bf16.mxu0 %v6867_v46 }
 0x301   : > { %v4988_v49 = vpop.eup %4987  ;;  %v5988_v0 = vpop.f32.mrb[28].mxu0 }
 0x302   : > { %v5990_v13 = vpop.f32.mrb[29].mxu0  ;;  %v2000_v36 = vmul.f32 %v4988_v49, %v5846_v53 }
 0x303   : > { %v5994_v18 = vpop.f32.mrb[30].mxu0 }
 0x304   : > { %v2267_v4 = vpop.f32.mrb[31].mxu0  ;;  %v2100_v42 = vpack.c.bf16 %v2000_v36, %v1999_v47 }
 0x306   : > { %2440 = vmatmul.mubr.bf16.gmra.mrb[100].mxu0 %v2100_v42 }
 0x307   : > { %2449 = vmatprep.mubr.bf16.mxu0 %v6867_v46 }
 0x309   : > { %v5997_v21 = vpop.f32.mrb[32].mxu0 }
 0x30a   : > { %v2273_v5 = vpop.f32.mrb[33].mxu0 }
 0x30b   : > { %v5999_v56 = vpop.f32.mrb[34].mxu0 }
 0x30c   : > { %v6001_v33 = vpop.f32.mrb[35].mxu0 }
 0x30e   : > { %v6005_v12 = vpop.f32.mrb[48].mxu1 }
 0x30f   : > { %v6007_v53 = vpop.f32.mrb[49].mxu1 }
 0x310   : > { %v6011_v32 = vpop.f32.mrb[50].mxu1 }
 0x311   : > { %v6003_v8 = vpop.f32.mrb[36].mxu0  ;;  %v2710_v40 = vpop.f32.mrb[51].mxu1 }
 0x312   : > { %v2283_v26 = vpop.f32.mrb[37].mxu0 }
 0x313   : > { %v6009_v63 = vpop.f32.mrb[38].mxu0 }
 0x314   : > { %v2287_v22 = vpop.f32.mrb[39].mxu0 }
 0x316   : > { %v6013_v45 = vpop.f32.mrb[52].mxu1 }
 0x317   : > { %v2716_v59 = vpop.f32.mrb[53].mxu1 }
 0x318   : > { %v6021_v1 = vpop.f32.mrb[54].mxu1 }
 0x319   : > { %v2291_v15 = vpop.f32.mrb[40].mxu0  ;;  %v6026_v51 = vpop.f32.mrb[55].mxu1 }
 0x31a   : > { %v6016_v6 = vadd.f32 %v5871_v11, %v2291_v15  ;;  %v2293_v57 = vpop.f32.mrb[41].mxu0 }
 0x31b   : > { %v6019_v19 = vadd.f32 %v5873_v30, %v2293_v57  ;;  %v2295_v27 = vpop.f32.mrb[42].mxu0 }
 0x31c   : > { %v6024_v9 = vadd.f32 %v5875_v54, %v2295_v27  ;;  %v2297_v2 = vpop.f32.mrb[43].mxu0 }
 0x31e   : > { %6885 = vst [vmem:[#allocation2_spill] sm:$0xff] %v6024_v9  ;;  %v6028_v55 = vpop.f32.mrb[56].mxu1 }
 0x31f   : > { %v2726_v50 = vpop.f32.mrb[57].mxu1 }
 0x320   : > { %v6033_v30 = vpop.f32.mrb[58].mxu1 }
 0x321   : > { %v2301_v31 = vpop.f32.mrb[44].mxu0  ;;  %v2730_v54 = vpop.f32.mrb[59].mxu1 }
 0x322   : > { %v6031_v11 = vadd.f32 %v5877_v38, %v2301_v31  ;;  %v2303_v17 = vpop.f32.mrb[45].mxu0 }
 0x323   : > { %v2305_v58 = vpop.f32.mrb[46].mxu0 }
 0x324   : > { %6886 = vst [vmem:[#allocation7_spill] sm:$0xff] %v6031_v11  ;;  %v6036_v16 = vadd.f32 %v5879_v14, %v2305_v58  ;;  %v2307_v49 = vpop.f32.mrb[47].mxu0 }
 0x325   : > { %v6039_v47 = vadd.f32 %v5881_v20, %v2307_v49 }
 0x326   : > { %6887 = vst [vmem:[#allocation9_spill] sm:$0xff] %v6036_v16  ;;  %v6041_v4 = vpop.f32.mrb[60].mxu1 }
 0x327   : > { %v6046_v5 = vpop.f32.mrb[61].mxu1 }
 0x328   : > { %v6048_v22 = vpop.f32.mrb[62].mxu1 }
 0x329   : > { %v2311_v36 = vpop.f32.mrb[48].mxu0  ;;  %v2740_v15 = vpop.f32.mrb[63].mxu1 }
 0x32a   : > { %v6044_v42 = vadd.f32 %v5883_v41, %v2311_v36  ;;  %v2313_v38 = vpop.f32.mrb[49].mxu0 }
 0x32b   : > { %v2315_v26 = vpop.f32.mrb[50].mxu0 }
 0x32c   : > { %6888 = vst [vmem:[#allocation3_spill] sm:$0xff] %v6044_v42  ;;  %v6051_v14 = vadd.f32 %v5885_v28, %v2315_v26  ;;  %v2317_v40 = vpop.f32.mrb[51].mxu0 }
 0x32e   : > { %6889 = vst [vmem:[#allocation4_spill] sm:$0xff] %v6051_v14  ;;  %v6053_v20 = vpop.f32.mrb[64].mxu1 }
 0x32f   : > { %v2746_v41 = vpop.f32.mrb[65].mxu1 }
 0x330   : > { %v6061_v17 = vpop.f32.mrb[66].mxu1 }
 0x331   : > { %v2321_v57 = vpop.f32.mrb[52].mxu0  ;;  %v6066_v58 = vpop.f32.mrb[67].mxu1 }
 0x332   : > { %v6056_v59 = vadd.f32 %v5895_v29, %v2321_v57  ;;  %v2323_v27 = vpop.f32.mrb[53].mxu0 }
 0x333   : > { %v6059_v2 = vadd.f32 %v5899_v10, %v2323_v27  ;;  %v2325_v31 = vpop.f32.mrb[54].mxu0 }
 0x334   : > { %6890 = vst [vmem:[#allocation11_spill] sm:$0xff] %v6056_v59  ;;  %v6064_v50 = vadd.f32 %v5901_v52, %v2325_v31  ;;  %v2327_v28 = vpop.f32.mrb[55].mxu0 }
 0x336   : > { %6891 = vst [vmem:[#allocation13_spill] sm:$0xff] %v6064_v50  ;;  %v6068_v54 = vpop.f32.mrb[68].mxu1 }
 0x337   : > { %v2756_v38 = vpop.f32.mrb[69].mxu1 }
 0x338   : > { %v6073_v10 = vpop.f32.mrb[70].mxu1 }
 0x339   : > { %v2331_v49 = vpop.f32.mrb[56].mxu0  ;;  %v2760_v52 = vpop.f32.mrb[71].mxu1 }
 0x33a   : > { %v6071_v29 = vadd.f32 %v5911_v7, %v2331_v49  ;;  %v2333_v36 = vpop.f32.mrb[57].mxu0 }
 0x33b   : > { %v2335_v26 = vpop.f32.mrb[58].mxu0 }
 0x33c   : > { %6892 = vst [vmem:[#allocation5_spill] sm:$0xff] %v6071_v29  ;;  %v6076_v40 = vadd.f32 %v5917_v48, %v2335_v26  ;;  %v2337_v15 = vpop.f32.mrb[59].mxu0 }
 0x33d   : > { %v6079_v57 = vadd.f32 %v5922_v24, %v2337_v15 }
 0x33e   : > { %6893 = vst [vmem:[#allocation6_spill] sm:$0xff] %v6076_v40  ;;  %v1802_v27 = vpop.xlane.xlu0 %1801  ;;  %v6081_v50 = vpop.f32.mrb[72].mxu1 }
 0x33f   : > { %v1857_v41 = vmul.f32 0.0078125, %v1802_v27  ;;  %v6086_v48 = vpop.f32.mrb[73].mxu1 }
 0x340   : > { %v6091_v15 = vpop.f32.mrb[74].mxu1 }
 0x341   : > { %v1905_v31 = vadd.f32 1e-05, %v1857_v41  ;;  %v2341_v28 = vpop.f32.mrb[60].mxu0  ;;  %v2770_v27 = vpop.f32.mrb[75].mxu1 }
 0x342   : > { %v6084_v7 = vadd.f32 %v5930_v3, %v2341_v28  ;;  %v1804_v49 = vpop.xlane.xlu1 %1803  ;;  %v2343_v36 = vpop.f32.mrb[61].mxu0 }
 0x343   : > { %v1858_v38 = vmul.f32 0.0078125, %v1804_v49  ;;  %v2345_v29 = vpop.f32.mrb[62].mxu0  ;;  %4989 = vrsqrt.f32 %v1905_v31 }
 0x344   : > { %6894 = vst [vmem:[#allocation15_spill] sm:$0xff] %v6084_v7  ;;  %v6089_v26 = vadd.f32 %v5936_v62, %v2345_v29  ;;  %v2347_v24 = vpop.f32.mrb[63].mxu0 }
 0x345   : > { %v1906_v52 = vadd.f32 1e-05, %v1858_v38 }
 0x346   : > { %6895 = vst [vmem:[#allocation16_spill] sm:$0xff] %v6089_v26  ;;  %v1806_v41 = vpop.xlane.xlu0 %1805  ;;  %v6093_v28 = vpop.f32.mrb[76].mxu1 }
 0x347   : > { %4991 = vrsqrt.f32 %v1906_v52  ;;  %v1859_v40 = vmul.f32 0.0078125, %v1806_v41  ;;  %v2776_v49 = vpop.f32.mrb[77].mxu1 }
 0x348   : > { %v6095_v59 = vpop.f32.mrb[78].mxu1 }
 0x349   : > { %v1907_v3 = vadd.f32 1e-05, %v1859_v40  ;;  %v6097_v14 = vpop.f32.mrb[79].mxu1 }
 0x34a   : > { %v1808_v36 = vpop.xlane.xlu1 %1807 }
 0x34b   : > { %v1860_v7 = vmul.f32 0.0078125, %v1808_v36  ;;  %4993 = vrsqrt.f32 %v1907_v3 }
 0x34d   : > { %v1908_v62 = vadd.f32 1e-05, %v1860_v7  ;;  %v4990_v24 = vpop.eup %4989 }
 0x34e   : > { %v1810_v29 = vpop.xlane.xlu0 %1809  ;;  %v6099_v52 = vpop.f32.mrb[80].mxu1  ;;  %v2001_v41 = vmul.f32 %v4990_v24, %v5888_v25 }
 0x34f   : > { %4995 = vrsqrt.f32 %v1908_v62  ;;  %v1861_v31 = vmul.f32 0.0078125, %v1810_v29  ;;  %v2786_v36 = vpop.f32.mrb[81].mxu1 }
 0x350   : > { %v6103_v42 = vpop.f32.mrb[82].mxu1 }
 0x351   : > { %v4992_v38 = vpop.eup %4991  ;;  %v1909_v27 = vadd.f32 1e-05, %v1861_v31  ;;  %v2790_v3 = vpop.f32.mrb[83].mxu1 }
 0x352   : > { %v1812_v40 = vpop.xlane.xlu1 %1811  ;;  %v2002_v49 = vmul.f32 %v4992_v38, %v5893_v60 }
 0x353   : > { %v1862_v26 = vmul.f32 0.0078125, %v1812_v40  ;;  %4997 = vrsqrt.f32 %v1909_v27 }
 0x354   : > { %v2101_v16 = vpack.c.bf16 %v2002_v49, %v2001_v41 }
 0x355   : > { %v1910_v7 = vadd.f32 1e-05, %v1862_v26  ;;  %v4994_v29 = vpop.eup %4993  ;;  %v3270_v26 = vld [vmem:[%s6829_s6] sm:$0xff] }
 0x356   : > { %2450 = vmatmul.mubr.bf16.gmra.mrb[104].mxu0 %v2101_v16  ;;  %v1814_v62 = vpop.xlane.xlu0 %1813  ;;  %v6106_v25 = vpop.f32.mrb[84].mxu1  ;;  %v2003_v24 = vmul.f32 %v4994_v29, %v5904_v35  ;;  %v3271_v16 = vld [vmem:[%s6829_s6 + $0x8] sm:$0xff]  ;;  %v3272_v35 = vld [vmem:[%s6829_s6 + $0x10] sm:$0xff] }
 0x357   : > { %4999 = vrsqrt.f32 %v1910_v7  ;;  %v1863_v31 = vmul.f32 0.0078125, %v1814_v62  ;;  %2459 = vmatprep.mubr.bf16.mxu0 %v6867_v46  ;;  %v6116_v27 = vpop.f32.mrb[85].mxu1  ;;  %v4756_v41 = vpack.c.bf16 %v3271_v16, %v3270_v26  ;;  %v3275_v29 = vld [vmem:[%s6829_s6 + $0x28] sm:$0xff] }
 0x358   : > { %v6118_v49 = vpop.f32.mrb[86].mxu1 }
 0x359   : > { %v4996_v11 = vpop.eup %4995  ;;  %v1911_v9 = vadd.f32 1e-05, %v1863_v31  ;;  %v2800_v3 = vpop.f32.mrb[87].mxu1  ;;  %4757 = vmatprep.subr.bf16.mxu1 %v4756_v41 }
 0x35a   : > { %v1816_v60 = vpop.xlane.xlu1 %1815  ;;  %v2004_v38 = vmul.f32 %v4996_v11, %v5909_v61  ;;  %v3273_v61 = vld [vmem:[%s6829_s6 + $0x18] sm:$0xff]  ;;  %v3274_v11 = vld [vmem:[%s6829_s6 + $0x20] sm:$0xff]  ;;  %4759 = vmatpush3.bf16.msra.mxu1 %v4756_v41  ;;  %v2010_v3 = vld [vmem:[%s5603_s26 + $0x8] sm:$0xff] }
 0x35b   : > { %v1864_v40 = vmul.f32 0.0078125, %v1816_v60  ;;  %5001 = vrsqrt.f32 %v1911_v9  ;;  %v4760_v62 = vpack.c.bf16 %v3273_v61, %v3272_v35  ;;  %v4764_v60 = vpack.c.bf16 %v3275_v29, %v3274_v11  ;;  %v3277_v9 = vld [vmem:[%s6829_s6 + $0x38] sm:$0xff]  ;;  %v2009_v11 = vld [vmem:[%s5603_s26] sm:$0xff] }
 0x35c   : > { %v2102_v36 = vpack.c.bf16 %v2004_v38, %v2003_v24  ;;  %v3276_v24 = vld [vmem:[%s6829_s6 + $0x30] sm:$0xff] }
 0x35d   : > { %v1912_v7 = vadd.f32 1e-05, %v1864_v40  ;;  %v4998_v31 = vpop.eup %4997  ;;  %4761 = vmatprep.subr.bf16.mxu1 %v4760_v62  ;;  %v4768_v40 = vpack.c.bf16 %v3277_v9, %v3276_v24  ;;  %v4890_v29 = vld [vmem:[%s6827_s4 + $0x114] ss:$8 sps:$4 sm:$0xff]   ;;  %v4891_v9 = vld [vmem:[%s6827_s4 + $0x120] ss:$8 sps:$4 sm:$0xff]  }
 0x35e   : > { %2460 = vmatmul.mubr.bf16.gmra.mrb[108].mxu0 %v2102_v36  ;;  %v2005_v26 = vmul.f32 %v4998_v31, %v5920_v44  ;;  %4763 = vmatpush3.bf16.msra.mxu1 %v4760_v62  ;;  %v4885_v62 = vld [vmem:[%s6827_s4 + $0x100] ss:$8 sps:$4 sm:$0xff]   ;;  %v2012_v31 = vld [vmem:[%s5603_s26 + $0x18] sm:$0xff] }
 0x35f   : > { %5003 = vrsqrt.f32 %v1912_v7  ;;  %2469 = vmatprep.mubr.bf16.mxu0 %v6867_v46  ;;  %4765 = vmatprep.subr.bf16.mxu1 %v4764_v60  ;;  %v2057_v7 = vpack.c.bf16 %v2010_v3, %v2009_v11  ;;  %v2016_v11 = vld [vmem:[%s5603_s26 + $0x38] sm:$0xff]  ;;  %v4905_v3 = vld [vmem:[%s6827_s4 + $0x164] ss:$8 sps:$4 sm:$0xff]  }
 0x361   : > { %v5000_v38 = vpop.eup %4999 }
 0x362   : > { %v2006_v16 = vmul.f32 %v5000_v38, %v5928_v37  ;;  %4767 = vmatpush3.bf16.msra.mxu1 %v4764_v60  ;;  %v4893_v60 = vld [vmem:[%s6827_s4 + $0x124] ss:$8 sps:$4 sm:$0xff]   ;;  %v4896_v38 = vld [vmem:[%s6827_s4 + $0x134] ss:$8 sps:$4 sm:$0xff]  }
 0x363   : > { %4769 = vmatprep.subr.bf16.mxu1 %v4768_v40 }
 0x364   : > { %v2103_v41 = vpack.c.bf16 %v2006_v16, %v2005_v26  ;;  %v4894_v26 = vld [vmem:[%s6827_s4 + $0x130] ss:$8 sps:$4 sm:$0xff]   ;;  %v2013_v16 = vld [vmem:[%s5603_s26 + $0x20] sm:$0xff] }
 0x365   : > { %v5002_v36 = vpop.eup %5001 }
 0x366   : > { %2470 = vmatmul.mubr.bf16.gmra.mrb[112].mxu0 %v2103_v41  ;;  %v2007_v61 = vmul.f32 %v5002_v36, %v5939_v23  ;;  %4771 = vmatpush3.bf16.msra.mxu1 %v4768_v40  ;;  %v4888_v23 = vld [vmem:[%s6827_s4 + $0x110] ss:$8 sps:$4 sm:$0xff]   ;;  %v2014_v40 = vld [vmem:[%s5603_s26 + $0x28] sm:$0xff] }
 0x367   : > { %2479 = vmatprep.mubr.bf16.mxu0 %v6867_v46  ;;  %v4899_v41 = vld [vmem:[%s6827_s4 + $0x144] ss:$8 sps:$4 sm:$0xff]   ;;  %v2059_v36 = vpack.c.bf16 %v2014_v40, %v2013_v16 }
 0x369   : > { %v5004_v35 = vpop.eup %5003 }
 0x36a   : > { %v2008_v44 = vmul.f32 %v5004_v35, %v5945_v43  ;;  %v2011_v43 = vld [vmem:[%s5603_s26 + $0x10] sm:$0xff]  ;;  %v4897_v35 = vld [vmem:[%s6827_s4 + $0x140] ss:$8 sps:$4 sm:$0xff]  }
 0x36b   : > { %v2058_v24 = vpack.c.bf16 %v2012_v31, %v2011_v43  ;;  %v2843_v43 = vld [vmem:[%s458_s15] sm:$0xff]  ;;  %s5018_s15 = smov 37  }
 0x36c   : > { %v2104_v37 = vpack.c.bf16 %v2008_v44, %v2007_v61  ;;  %v4902_v61 = vld [vmem:[%s6827_s4 + $0x154] ss:$8 sps:$4 sm:$0xff]   ;;  %v4900_v44 = vld [vmem:[%s6827_s4 + $0x150] ss:$8 sps:$4 sm:$0xff]  }
 0x36e   : > { %2480 = vmatmul.mubr.bf16.gmra.mrb[116].mxu0 %v2104_v37  ;;  %v2015_v37 = vld [vmem:[%s5603_s26 + $0x30] sm:$0xff] }
 0x36f   : > { %2602 = vmatprep.mubr.bf16.mxu0 %v6867_v46 }
 0x376   : > { %2603 = vmatmul.mubr.bf16.vlgmr.msra.gmra.mrb[120].mxu0 %v2057_v7  ;;  %v2060_v7 = vpack.c.bf16 %v2016_v11, %v2015_v37 }
 0x377   : > { %2954 = vmatpush1.bf16.msra.mxu0 %v4885_v62  ;;  %2612 = vmatprep.mubr.bf16.mxu0 %v6867_v46  ;;  %v4903_v62 = vld [vmem:[%s6827_s4 + $0x160] ss:$8 sps:$4 sm:$0xff]  }
 0x378   : > { %2955 = vmatprep.subr.bf16.mxu0 %v4890_v29  ;;  %v4908_v29 = vld [vmem:[%s6827_s4 + $0x174] ss:$8 sps:$4 sm:$0xff]  }
 0x37b   : > { %2956 = vmatpush1.bf16.msra.mxu0 %v4888_v23  ;;  %v4906_v23 = vld [vmem:[%s6827_s4 + $0x170] ss:$8 sps:$4 sm:$0xff]  }
 0x37c   : > { %2957 = vmatprep.subr.bf16.mxu0 %v4893_v60 }
 0x37e   : > { %2613 = vmatmul.mubr.bf16.gmra.mrb[124].mxu0 %v2058_v24 }
 0x37f   : > { %2958 = vmatpush1.bf16.msra.mxu0 %v4891_v9  ;;  %2622 = vmatprep.mubr.bf16.mxu0 %v6867_v46  ;;  %v2844_v9 = vpack.c.bf16 %v2843_v43, %v2843_v43 }
 0x380   : > { %2959 = vmatprep.subr.bf16.mxu0 %v4896_v38 }
 0x383   : > { %2960 = vmatpush1.bf16.msra.mxu0 %v4894_v26 }
 0x384   : > { %2961 = vmatprep.subr.bf16.mxu0 %v4899_v41 }
 0x386   : > { %2623 = vmatmul.mubr.bf16.gmra.mrb[128].mxu0 %v2059_v36 }
 0x387   : > { %2962 = vmatpush1.bf16.msra.mxu0 %v4897_v35  ;;  %2632 = vmatprep.mubr.bf16.mxu0 %v6867_v46 }
 0x388   : > { %2963 = vmatprep.subr.bf16.mxu0 %v4902_v61 }
 0x38b   : > { %2964 = vmatpush1.bf16.msra.mxu0 %v4900_v44 }
 0x38c   : > { %2965 = vmatprep.subr.bf16.mxu0 %v4905_v3 }
 0x38e   : > { %2633 = vmatmul.mubr.bf16.gmra.mrb[132].mxu0 %v2060_v7 }
 0x38f   : > { %2966 = vmatpush1.bf16.msra.mxu0 %v4903_v62  ;;  %2985 = vmatprep.mubr.bf16.mxu0 %v6867_v46 }
 0x390   : > { %2967 = vmatprep.subr.bf16.mxu0 %v4908_v29 }
 0x391   : > { %v2351_v31 = vpop.f32.mrb[64].mxu0 }
 0x392   : > { %v6213_v60 = vadd.f32 %v6005_v12, %v2351_v31  ;;  %v2353_v24 = vpop.f32.mrb[65].mxu0 }
 0x393   : > { %v6216_v38 = vadd.f32 %v6007_v53, %v2353_v24  ;;  %2968 = vmatpush1.bf16.msra.mxu0 %v4906_v23  ;;  %v2355_v26 = vpop.f32.mrb[66].mxu0 }
 0x394   : > { %v6219_v16 = vadd.f32 %v6011_v32, %v2355_v26  ;;  %v2357_v40 = vpop.f32.mrb[67].mxu0 }
 0x396   : > { %2986 = vmatmul.mubr.bf16.vlgmr.msra.gmra.mrb[136].mxu0 %v2844_v9 }
 0x399   : > { %v2361_v41 = vpop.f32.mrb[68].mxu0 }
 0x39a   : > { %v6222_v46 = vadd.f32 %v6013_v45, %v2361_v41  ;;  %v2363_v36 = vpop.f32.mrb[69].mxu0 }
 0x39b   : > { %v2365_v35 = vpop.f32.mrb[70].mxu0 }
 0x39c   : > { %v6225_v12 = vadd.f32 %v6021_v1, %v2365_v35  ;;  %v2367_v61 = vpop.f32.mrb[71].mxu0 }
 0x39d   : > { %v6228_v53 = vadd.f32 %v6026_v51, %v2367_v61  ;;  %v6236_v62 = vpop.f32.mrb[88].mxu1  ;;  %v3278_v51 = vld [vmem:[%s6829_s6 + $0x40] sm:$0xff] }
 0x39e   : > { %v2806_v23 = vpop.f32.mrb[89].mxu1 }
 0x39f   : > { %v6250_v24 = vpop.f32.mrb[90].mxu1 }
 0x3a0   : > { %v6255_v26 = vpop.f32.mrb[91].mxu1 }
 0x3a1   : > { %v2371_v44 = vpop.f32.mrb[72].mxu0 }
 0x3a2   : > { %v6231_v37 = vadd.f32 %v6028_v55, %v2371_v44  ;;  %v2373_v32 = vpop.f32.mrb[73].mxu0  ;;  %v3279_v55 = vld [vmem:[%s6829_s6 + $0x48] sm:$0xff] }
 0x3a3   : > { %v2375_v11 = vpop.f32.mrb[74].mxu0  ;;  %v4772_v31 = vpack.c.bf16 %v3279_v55, %v3278_v51 }
 0x3a4   : > { %v6234_v3 = vadd.f32 %v6033_v30, %v2375_v11  ;;  %v2377_v45 = vpop.f32.mrb[75].mxu0 }
 0x3a5   : > { %4773 = vmatprep.subr.bf16.mxu1 %v4772_v31  ;;  %v6257_v41 = vpop.f32.mrb[92].mxu1 }
 0x3a6   : > { %4775 = vmatpush3.bf16.msra.mxu1 %v4772_v31  ;;  %v2816_v35 = vpop.f32.mrb[93].mxu1 }
 0x3a7   : > { %v6262_v44 = vpop.f32.mrb[94].mxu1 }
 0x3a8   : > { %v2820_v11 = vpop.f32.mrb[95].mxu1 }
 0x3a9   : > { %v2381_v7 = vpop.f32.mrb[76].mxu0 }
 0x3aa   : > { %v6239_v1 = vadd.f32 %v6041_v4, %v2381_v7  ;;  %v2383_v29 = vpop.f32.mrb[77].mxu0 }
 0x3ab   : > { %v6248_v30 = vadd.f32 %v6046_v5, %v2383_v29  ;;  %v2385_v43 = vpop.f32.mrb[78].mxu0 }
 0x3ac   : > { %6896 = vst [vmem:[#allocation8_spill] sm:$0xff] %v6239_v1  ;;  %v6253_v4 = vadd.f32 %v6048_v22, %v2385_v43  ;;  %v2387_v9 = vpop.f32.mrb[79].mxu0 }
 0x3ad   : > { %v6270_v29 = vpop.f32.mrb[96].mxu1  ;;  %v3281_v9 = vld [vmem:[%s6829_s6 + $0x58] sm:$0xff] }
 0x3ae   : > { %6897 = vst [vmem:[#allocation10_spill] sm:$0xff] %v6253_v4  ;;  %v6275_v55 = vpop.f32.mrb[97].mxu1 }
 0x3af   : > { %v6277_v43 = vpop.f32.mrb[98].mxu1 }
 0x3b1   : > { %v2391_v40 = vpop.f32.mrb[80].mxu0 }
 0x3b2   : > { %v6260_v36 = vadd.f32 %v6053_v20, %v2391_v40  ;;  %v2393_v5 = vpop.f32.mrb[81].mxu0 }
 0x3b3   : > { %v2395_v61 = vpop.f32.mrb[82].mxu0 }
 0x3b4   : > { %6898 = vst [vmem:[#allocation12_spill] sm:$0xff] %v6260_v36  ;;  %v6265_v32 = vadd.f32 %v6061_v17, %v2395_v61  ;;  %v2397_v22 = vpop.f32.mrb[83].mxu0 }
 0x3b5   : > { %v6268_v45 = vadd.f32 %v6066_v58, %v2397_v22  ;;  %v3280_v58 = vld [vmem:[%s6829_s6 + $0x50] sm:$0xff] }
 0x3b6   : > { %6899 = vst [vmem:[#allocation14_spill] sm:$0xff] %v6265_v32  ;;  %v4776_v40 = vpack.c.bf16 %v3281_v9, %v3280_v58 }
 0x3b8   : > { %4777 = vmatprep.subr.bf16.mxu1 %v4776_v40 }
 0x3b9   : > { %v2401_v7 = vpop.f32.mrb[84].mxu0  ;;  %4779 = vmatpush3.bf16.msra.mxu1 %v4776_v40 }
 0x3ba   : > { %v6273_v51 = vadd.f32 %v6068_v54, %v2401_v7  ;;  %v2403_v20 = vpop.f32.mrb[85].mxu0  ;;  %v2830_v54 = vpop.f32.mrb[99].mxu1 }
 0x3bb   : > { %v2405_v23 = vpop.f32.mrb[86].mxu0  ;;  %v6288_v35 = vpop.f32.mrb[100].mxu1 }
 0x3bc   : > { %6900 = vst [vmem:[#allocation17_spill] sm:$0xff] %v6273_v51  ;;  %v6280_v17 = vadd.f32 %v6073_v10, %v2405_v23  ;;  %v2407_v31 = vpop.f32.mrb[87].mxu0  ;;  %v2836_v22 = vpop.f32.mrb[101].mxu1 }
 0x3bd   : > { %v6296_v20 = vpop.f32.mrb[102].mxu1 }
 0x3be   : > { %6901 = vst [vmem:[#allocation18_spill] sm:$0xff] %v6280_v17  ;;  %v6301_v58 = vpop.f32.mrb[103].mxu1 }
 0x3c1   : > { %v2411_v5 = vpop.f32.mrb[88].mxu0 }
 0x3c2   : > { %v6291_v61 = vadd.f32 %v6081_v50, %v2411_v5  ;;  %v2413_v10 = vpop.f32.mrb[89].mxu0 }
 0x3c3   : > { %v6294_v11 = vadd.f32 %v6086_v48, %v2413_v10  ;;  %v2415_v7 = vpop.f32.mrb[90].mxu0 }
 0x3c4   : > { %6902 = vst [vmem:[#allocation19_spill] sm:$0xff] %v6291_v61  ;;  %v6299_v23 = vadd.f32 %v6091_v15, %v2415_v7  ;;  %v2417_v31 = vpop.f32.mrb[91].mxu0 }
 0x3c5   : > { %v3282_v31 = vld [vmem:[%s6829_s6 + $0x60] sm:$0xff] }
 0x3c6   : > { %6903 = vst [vmem:[#allocation20_spill] sm:$0xff] %v6299_v23 }
 0x3c9   : > { %v2421_v9 = vpop.f32.mrb[92].mxu0 }
 0x3ca   : > { %v6304_v54 = vadd.f32 %v6093_v28, %v2421_v9  ;;  %v2423_v50 = vpop.f32.mrb[93].mxu0  ;;  %v3283_v28 = vld [vmem:[%s6829_s6 + $0x68] sm:$0xff] }
 0x3cb   : > { %v2425_v40 = vpop.f32.mrb[94].mxu0 }
 0x3cc   : > { %6904 = vst [vmem:[#allocation21_spill] sm:$0xff] %v6304_v54  ;;  %v6307_v5 = vadd.f32 %v6095_v59, %v2425_v40  ;;  %v2427_v48 = vpop.f32.mrb[95].mxu0  ;;  %v4780_v59 = vpack.c.bf16 %v3283_v28, %v3282_v31  ;;  %v3285_v31 = vld [vmem:[%s6829_s6 + $0x78] sm:$0xff] }
 0x3cd   : > { %v6310_v10 = vadd.f32 %v6097_v14, %v2427_v48 }
 0x3ce   : > { %6905 = vst [vmem:[#allocation22_spill] sm:$0xff] %v6307_v5  ;;  %4781 = vmatprep.subr.bf16.mxu1 %v4780_v59 }
 0x3cf   : > { %4783 = vmatpush3.bf16.msra.mxu1 %v4780_v59  ;;  %v3893_v59 = vld [vmem:[%s6831_s8 + $0x18] sm:$0xff] }
 0x3d1   : > { %v2431_v22 = vpop.f32.mrb[96].mxu0 }
 0x3d2   : > { %v6313_v15 = vadd.f32 %v6099_v52, %v2431_v22  ;;  %v2433_v7 = vpop.f32.mrb[97].mxu0 }
 0x3d3   : > { %v2435_v9 = vpop.f32.mrb[98].mxu0 }
 0x3d4   : > { %6906 = vst [vmem:[#allocation23_spill] sm:$0xff] %v6313_v15  ;;  %v6322_v50 = vadd.f32 %v6103_v42, %v2435_v9  ;;  %v2437_v14 = vpop.f32.mrb[99].mxu0  ;;  %v3284_v42 = vld [vmem:[%s6829_s6 + $0x70] sm:$0xff] }
 0x3d5   : > { %v4784_v28 = vpack.c.bf16 %v3285_v31, %v3284_v42  ;;  %v3892_v9 = vld [vmem:[%s6831_s8 + $0x10] sm:$0xff]  ;;  %v3897_v31 = vld [vmem:[%s6831_s8 + $0x38] sm:$0xff] }
 0x3d6   : > { %6907 = vst [vmem:[#allocation24_spill] sm:$0xff] %v6322_v50  ;;  %v4792_v14 = vpack.c.bf16 %v3893_v59, %v3892_v9  ;;  %v3896_v42 = vld [vmem:[%s6831_s8 + $0x30] sm:$0xff]  ;;  %v3901_v59 = vld [vmem:[%s6831_s8 + $0x58] sm:$0xff] }
 0x3d7   : > { %4785 = vmatprep.subr.bf16.mxu1 %v4784_v28  ;;  %v3900_v9 = vld [vmem:[%s6831_s8 + $0x50] sm:$0xff] }
 0x3d8   : > { %4787 = vmatpush3.bf16.msra.mxu1 %v4784_v28  ;;  %v4798_v28 = vpack.c.bf16 %v3897_v31, %v3896_v42 }
 0x3d9   : > { %v2441_v40 = vpop.f32.mrb[100].mxu0 }
 0x3da   : > { %v6325_v52 = vadd.f32 %v6106_v25, %v2441_v40  ;;  %v2443_v48 = vpop.f32.mrb[101].mxu0  ;;  %v3890_v25 = vld [vmem:[%s6831_s8] sm:$0xff] }
 0x3db   : > { %v6328_v22 = vadd.f32 %v6116_v27, %v2443_v48  ;;  %v2445_v7 = vpop.f32.mrb[102].mxu0  ;;  %v3891_v27 = vld [vmem:[%s6831_s8 + $0x8] sm:$0xff]  ;;  %v3894_v40 = vld [vmem:[%s6831_s8 + $0x20] sm:$0xff] }
 0x3dc   : > { %6908 = vst [vmem:[#allocation25_spill] sm:$0xff] %v6325_v52  ;;  %v6331_v15 = vadd.f32 %v6118_v49, %v2445_v7  ;;  %v2447_v5 = vpop.f32.mrb[103].mxu0  ;;  %v5014_v49 = vmov 0.0|0.0   ;;  %v3895_v48 = vld [vmem:[%s6831_s8 + $0x28] sm:$0xff] }
 0x3dd   : > { %4788 = vmatprep.subr.bf16.mxu0 %v5014_v49  ;;  %v4789_v5 = vpack.c.bf16 %v3891_v27, %v3890_v25  ;;  %v4795_v7 = vpack.c.bf16 %v3895_v48, %v3894_v40  ;;  %v3898_v25 = vld [vmem:[%s6831_s8 + $0x40] sm:$0xff]  ;;  %v3899_v27 = vld [vmem:[%s6831_s8 + $0x48] sm:$0xff]  ;;  %v5016_v40 = vmov 0.0  }
 0x3de   : > { %6909 = vst [vmem:[#allocation26_spill] sm:$0xff] %v6331_v15  ;;  %4753 = vmatprep.mubr.msk.f32.mxu0 %vm5015_vm1, %v5016_v40  ;;  %vm3931_vm1 = vcmask 785408  }
 0x3df   : > { %4790 = vmatpush3.bf16.msra.mxu0 %v4789_v5  ;;  %v4801_v5 = vpack.c.bf16 %v3899_v27, %v3898_v25 }
 0x3e0   : > { %4791 = vmatprep.subr.bf16.mxu0 %v5014_v49 }
 0x3e3   : > { %4793 = vmatpush3.bf16.msra.mxu0 %v4792_v14  ;;  %v4804_v14 = vpack.c.bf16 %v3901_v59, %v3900_v9 }
 0x3e4   : > { %4794 = vmatprep.subr.bf16.mxu0 %v5014_v49 }
 0x3e7   : > { %4796 = vmatpush3.bf16.msra.mxu0 %v4795_v7 }
 0x3e8   : > { %4797 = vmatprep.subr.bf16.mxu0 %v5014_v49 }
 0x3eb   : > { %4799 = vmatpush3.bf16.msra.mxu0 %v4798_v28 }
 0x3ec   : > { %4800 = vmatprep.subr.bf16.mxu0 %v5014_v49 }
 0x3ef   : > { %4802 = vmatpush3.bf16.msra.mxu0 %v4801_v5 }
 0x3f0   : > { %4803 = vmatprep.subr.bf16.mxu0 %v5014_v49 }
 0x3f3   : > { %4805 = vmatpush3.bf16.msra.mxu0 %v4804_v14 }
 0x429   : > { %v2451_v48 = vpop.f32.mrb[104].mxu0 }
 0x42a   : > { %v6376_v7 = vadd.f32 %v6236_v62, %v2451_v48  ;;  %v2453_v42 = vpop.f32.mrb[105].mxu0 }
 0x42b   : > { %v2455_v31 = vpop.f32.mrb[106].mxu0 }
 0x42c   : > { %6910 = vst [vmem:[#allocation27_spill] sm:$0xff] %v6376_v7  ;;  %v6379_v49 = vadd.f32 %v6250_v24, %v2455_v31  ;;  %v2457_v28 = vpop.f32.mrb[107].mxu0 }
 0x42d   : > { %v6382_v25 = vadd.f32 %v6255_v26, %v2457_v28 }
 0x42e   : > { %6911 = vst [vmem:[#allocation28_spill] sm:$0xff] %v6379_v49 }
 0x431   : > { %v2461_v27 = vpop.f32.mrb[108].mxu0 }
 0x432   : > { %v6385_v5 = vadd.f32 %v6257_v41, %v2461_v27  ;;  %v2463_v9 = vpop.f32.mrb[109].mxu0 }
 0x433   : > { %v2465_v59 = vpop.f32.mrb[110].mxu0 }
 0x434   : > { %6912 = vst [vmem:[#allocation29_spill] sm:$0xff] %v6385_v5  ;;  %v6388_v14 = vadd.f32 %v6262_v44, %v2465_v59  ;;  %v2467_v62 = vpop.f32.mrb[111].mxu0 }
 0x436   : > { %6913 = vst [vmem:[#allocation30_spill] sm:$0xff] %v6388_v14 }
 0x439   : > { %v2471_v40 = vpop.f32.mrb[112].mxu0 }
 0x43a   : > { %v6391_v48 = vadd.f32 %v6270_v29, %v2471_v40  ;;  %v2473_v24 = vpop.f32.mrb[113].mxu0 }
 0x43b   : > { %v6394_v42 = vadd.f32 %v6275_v55, %v2473_v24  ;;  %v2475_v26 = vpop.f32.mrb[114].mxu0 }
 0x43c   : > { %6914 = vst [vmem:[#allocation31_spill] sm:$0xff] %v6391_v48  ;;  %v6397_v31 = vadd.f32 %v6277_v43, %v2475_v26  ;;  %v2477_v41 = vpop.f32.mrb[115].mxu0 }
 0x43e   : > { %6915 = vst [vmem:[#allocation32_spill] sm:$0xff] %v6397_v31 }
 0x441   : > { %v2481_v28 = vpop.f32.mrb[116].mxu0 }
 0x442   : > { %v6400_v27 = vadd.f32 %v6288_v35, %v2481_v28  ;;  %v2483_v44 = vpop.f32.mrb[117].mxu0 }
 0x443   : > { %v2485_v9 = vpop.f32.mrb[118].mxu0 }
 0x444   : > { %6916 = vst [vmem:[#allocation33_spill] sm:$0xff] %v6400_v27  ;;  %v6403_v59 = vadd.f32 %v6296_v20, %v2485_v9  ;;  %v2487_v29 = vpop.f32.mrb[119].mxu0 }
 0x445   : > { %v6406_v62 = vadd.f32 %v6301_v58, %v2487_v29 }
 0x446   : > { %6917 = vst [vmem:[#allocation34_spill] sm:$0xff] %v6403_v59 }
 0x449   : > { %v2604_v55 = vpop.f32.mrb[120].mxu0 }
 0x44a   : > { %v6409_v40 = vadd.f32 %v2604_v55, %v5981_v39  ;;  %v2606_v43 = vpop.f32.mrb[121].mxu0 }
 0x44b   : > { %v2608_v24 = vpop.f32.mrb[122].mxu0  ;;  %v2863_v43 = vlaneseq }
 0x44c   : > { %v6412_v26 = vadd.f32 %v2608_v24, %v5985_v34  ;;  %v2610_v35 = vpop.f32.mrb[123].mxu0 }
 0x44d   : > { %v3654_v48 = vand.u32 127, %v2863_v43 }
 0x451   : > { %v2614_v41 = vpop.f32.mrb[124].mxu0 }
 0x452   : > { %v6415_v28 = vadd.f32 %v2614_v41, %v5988_v0  ;;  %v2616_v20 = vpop.f32.mrb[125].mxu0 }
 0x453   : > { %v6418_v44 = vadd.f32 %v2616_v20, %v5990_v13  ;;  %v2618_v58 = vpop.f32.mrb[126].mxu0  ;;  %v2864_v13 = vshrl.u32 %v2863_v43, 7 }
 0x454   : > { %v6421_v9 = vadd.f32 %v2618_v58, %v5994_v18  ;;  %v2620_v39 = vpop.f32.mrb[127].mxu0 }
 0x455   : > { %v6433_v58 = vsub.s32 0, %v2864_v13  ;;  %v6442_v50 = vadd.s32 40, %v2864_v13 }
 0x457   : > { %vm3697_vm2 = vcmp.eq.s32.totalorder %v6442_v50, 47 }
 0x459   : > { %v2624_v29 = vpop.f32.mrb[128].mxu0 }
 0x45a   : > { %v6424_v55 = vadd.f32 %v2624_v29, %v5997_v21  ;;  %v2626_v34 = vpop.f32.mrb[129].mxu0  ;;  %v2861_v21 = vld [vmem:[%s6828_s5] sm:$0x3]  ;;  %v2869_v29 = vsub.s32 1, %v2864_v13 }
 0x45b   : > { %v2628_v24 = vpop.f32.mrb[130].mxu0  ;;  %v5017_v34 = vmov 1966171168  }
 0x45c   : > { %v6427_v35 = vadd.f32 %v2628_v24, %v5999_v56  ;;  %v2630_v0 = vpop.f32.mrb[131].mxu0  ;;  %v2999_v56 = vunpack.c.l.s4 %v5017_v34  ;;  %v2870_v27 = vrot.slane %v2861_v21, %v2869_v29  ;;  %v3655_v34 = vadd.s32 128, %v3654_v48 }
 0x45d   : > { %v2631_v41 = vadd.f32 %v2630_v0, %v6001_v33  ;;  %v2866_v0 = vrot.slane %v2861_v21, %v6433_v58 }
 0x45e   : > { %vm3698_vm3 = vcmp.ge.s32.totalorder %v3655_v34, 160  ;;  %vm3683_vm5 = vcmp.lt.s32.totalorder %v3655_v34, 160  ;;  %vm3719_vm6 = vcmp.lt.s32.totalorder %v3655_v34, 224 }
 0x45f   : > { %vm3718_vm7 = vmand %vm3697_vm2, %vm3698_vm3  ;;  %vm4160_vm3 = vcmask 302080  }
 0x460   : > { %vm6490_vm9 = vmand %vm3718_vm7, %vm3719_vm6 }
 0x461   : > { %v2634_v20 = vpop.f32.mrb[132].mxu0 }
 0x462   : > { %v6431_v59 = vadd.f32 %v2634_v20, %v6003_v8  ;;  %v2636_v18 = vpop.f32.mrb[133].mxu0  ;;  %v3000_v8 = vunpack.c.0.s8 %v2999_v56 }
 0x463   : > { %v2638_v39 = vpop.f32.mrb[134].mxu0 }
 0x464   : > { %v6439_v24 = vadd.f32 %v2638_v39, %v6009_v63  ;;  %v2640_v33 = vpop.f32.mrb[135].mxu0  ;;  %v3003_v5 = vsub.s32 %v3000_v8, %v2864_v13 }
 0x465   : > { %v3649_v33 = vadd.s32 16, %v2864_v13 }
 0x467   : > { %vm3658_vm4 = vcmp.eq.s32.totalorder %v3649_v33, 23 }
 0x468   : > { %vm6481_vm8 = vmand %vm3658_vm4, %vm3683_vm5 }
 0x469   : > { %v2987_v20 = vpop.f32.mrb[136].mxu0 }
 0x46a   : > { %v2988_v18 = vadd.f32 %v2987_v20, %v2866_v0  ;;  %v2989_v31 = vpop.f32.mrb[137].mxu0 }
 0x46b   : > { %v2990_v14 = vadd.f32 %v2989_v31, %v2870_v27  ;;  %v2991_v49 = vpop.f32.mrb[138].mxu0 }
 0x46c   : > { %v2992_v7 = vpop.f32.mrb[139].mxu0 }
 0x46d   : > { %v2996_v15 = vcombine.low %v2988_v18, %v2990_v14  ;;  %v2997_v52 = vcombine.high %v2988_v18, %v2990_v14 }
 0x46f   : > { %v3004_v63 = vrot.slane %v2996_v15, %v3003_v5  ;;  %v3011_v39 = vrot.slane %v2997_v52, %v3003_v5 }
 0x471   : > { %v3012_v54 = vcombine.high %v3004_v63, %v3004_v63  ;;  %v3013_v23 = vcombine.high %v3011_v39, %v3011_v39  ;;  %v3020_v21 = vrot.slane %v3004_v63, %v3003_v5  ;;  %v6444_v56 = vrot.slane %v3011_v39, %v3003_v5 }
 0x473   : > { %v3034_v31 = vrot.slane %v3012_v54, %v3003_v5  ;;  %v6447_v27 = vrot.slane %v3013_v23, %v3003_v5  ;;  %v3042_v7 = vcombine.high %v3020_v21, %v3020_v21  ;;  %v6451_v49 = vcombine.high %v6444_v56, %v6444_v56 }
 0x474   : > { %v3053_v14 = vrot.slane %v3020_v21, %v2869_v29  ;;  %v6458_v43 = vrot.slane %v3020_v21, %v6433_v58  ;;  %v3085_v5 = vrot.slane %v6444_v56, %v2869_v29 }
 0x475   : > { %6918 = vst [vmem:[#allocation35_spill] sm:$0xff] %v6451_v49  ;;  %v3044_v15 = vcombine.high %v3034_v31, %v3034_v31  ;;  %v6455_v52 = vcombine.high %v6447_v27, %v6447_v27  ;;  %v3061_v48 = vrot.slane %v3034_v31, %v2869_v29  ;;  %v6461_v23 = vrot.slane %v3034_v31, %v6433_v58 }
 0x476   : > { %v3069_v54 = vrot.slane %v3042_v7, %v2869_v29  ;;  %v6468_v13 = vrot.slane %v3042_v7, %v6433_v58  ;;  %v3093_v8 = vrot.slane %v6447_v27, %v2869_v29  ;;  %v3101_v20 = vrot.slane %v6451_v49, %v2869_v29 }
 0x477   : > { %6919 = vst [vmem:[#allocation36_spill] sm:$0xff] %v6455_v52  ;;  %v3077_v0 = vrot.slane %v3044_v15, %v2869_v29  ;;  %v6473_v18 = vrot.slane %v3044_v15, %v6433_v58  ;;  %v6476_v63 = vrot.slane %v6455_v52, %v2869_v29  ;;  %v3131_v39 = vadd.f32 %v3053_v14, %v6418_v44 }
 0x478   : > { %v3137_v21 = vadd.f32 %v3053_v14, %v2631_v41  ;;  %v3143_v7 = vadd.f32 %v3061_v48, %v6019_v19  ;;  %v3149_v61 = vadd.f32 %v3061_v48, %v6039_v47  ;;  %v3155_v17 = vadd.f32 %v3069_v54, %v6059_v2 }
 0x479   : > { %v3161_v15 = vadd.f32 %v3069_v54, %v6079_v57  ;;  %v3167_v44 = vadd.f32 %v3077_v0, %v6216_v38  ;;  %v3173_v41 = vadd.f32 %v3077_v0, %v6228_v53  ;;  %v3179_v33 = vadd.f32 %v3085_v5, %v6248_v30 }
 0x47a   : > { %v3185_v14 = vadd.f32 %v3085_v5, %v6268_v45  ;;  %v3191_v19 = vadd.f32 %v3093_v8, %v6294_v11  ;;  %v6500_v47 = vadd.f32 %v3093_v8, %v6310_v10  ;;  %v3203_v2 = vadd.f32 %v3101_v20, %v6328_v22 }
 0x47b   : > { %v6504_v57 = vadd.f32 %v3101_v20, %v6382_v25  ;;  %v6508_v34 = vadd.f32 %v6476_v63, %v6394_v42  ;;  %v3748_v38 = vsel %vm6481_vm8, %v3131_v39, 0.0  ;;  %v3751_v53 = vsel %vm6490_vm9, %v3137_v21, 0.0 }
 0x47c   : > { %v3754_v30 = vsel %vm6481_vm8, %v3143_v7, 0.0  ;;  %v3757_v45 = vsel %vm6490_vm9, %v3149_v61, 0.0  ;;  %v3760_v11 = vsel %vm6481_vm8, %v3155_v17, 0.0  ;;  %v3763_v10 = vsel %vm6490_vm9, %v3161_v15, 0.0 }
 0x47d   : > { %v3766_v22 = vsel %vm6481_vm8, %v3167_v44, 0.0  ;;  %v3769_v25 = vsel %vm6490_vm9, %v3173_v41, 0.0  ;;  %v3772_v42 = vsel %vm6481_vm8, %v3179_v33, 0.0  ;;  %v3775_v48 = vsel %vm6490_vm9, %v3185_v14, 0.0 }
 0x47e   : > { %v3778_v54 = vsel %vm6481_vm8, %v3191_v19, 0.0  ;;  %v3781_v17 = vsel %vm6490_vm9, %v6500_v47, 0.0  ;;  %v3784_v5 = vsel %vm6481_vm8, %v3203_v2, 0.0  ;;  %v3787_v0 = vsel %vm6490_vm9, %v6504_v57, 0.0 }
 0x47f   : > { %v3798_v8 = vadd.f32 %v3751_v53, %v3748_v38  ;;  %v3809_v20 = vadd.f32 %v3757_v45, %v3754_v30  ;;  %v3820_v39 = vadd.f32 %v3763_v10, %v3760_v11  ;;  %v3831_v7 = vadd.f32 %v3769_v25, %v3766_v22 }
 0x480   : > { %v3842_v44 = vadd.f32 %v3775_v48, %v3772_v42  ;;  %v6540_v52 = vadd.f32 %v3781_v17, %v3778_v54  ;;  %v6542_v19 = vadd.f32 %v3787_v0, %v3784_v5  ;;  %v4009_v51 = vsel %vm3697_vm2, %v3137_v21, 0.0 }
 0x481   : > { %v3799_v33 = vrot.slane %v3798_v8, 4  ;;  %v3810_v32 = vrot.slane %v3809_v20, 4  ;;  %v3821_v36 = vrot.slane %v3820_v39, 4  ;;  %v3832_v2 = vrot.slane %v3831_v7, 4 }
 0x482   : > { %v3843_v49 = vrot.slane %v3842_v44, 4  ;;  %v3854_v1 = vrot.slane %v6540_v52, 4  ;;  %v4015_v38 = vsel %vm3697_vm2, %v3149_v61, 0.0  ;;  %v4021_v53 = vsel %vm3697_vm2, %v3161_v15, 0.0 }
 0x483   : > { %v3800_v4 = vadd.f32 %v3799_v33, %v3798_v8  ;;  %v3811_v30 = vadd.f32 %v3810_v32, %v3809_v20  ;;  %v3822_v45 = vadd.f32 %v3821_v36, %v3820_v39  ;;  %v6551_v11 = vadd.f32 %v3832_v2, %v3831_v7 }
 0x484   : > { %v6553_v10 = vadd.f32 %v3843_v49, %v3842_v44  ;;  %v6557_v22 = vsel %vm3697_vm2, %v3173_v41, 0.0  ;;  %v4033_v25 = vsel %vm3697_vm2, %v3185_v14, 0.0  ;;  %v4057_v42 = vrot.slane %v4009_v51, 4 }
 0x485   : > { %v3801_v21 = vrot.slane %v3800_v4, 2  ;;  %v3812_v48 = vrot.slane %v3811_v30, 2  ;;  %v3823_v61 = vrot.slane %v3822_v45, 2  ;;  %v4068_v15 = vrot.slane %v4015_v38, 4 }
 0x486   : > { %v3845_v54 = vrot.slane %v6553_v10, 2  ;;  %v4058_v36 = vadd.f32 %v4057_v42, %v4009_v51  ;;  %v4079_v17 = vrot.slane %v4021_v53, 4  ;;  %v4090_v49 = vrot.slane %v6557_v22, 4 }
 0x487   : > { %v3802_v32 = vadd.f32 %v3801_v21, %v3800_v4  ;;  %v3813_v5 = vadd.f32 %v3812_v48, %v3811_v30  ;;  %v6563_v0 = vadd.f32 %v3823_v61, %v3822_v45  ;;  %v4069_v8 = vadd.f32 %v4068_v15, %v4015_v38 }
 0x488   : > { %v4101_v41 = vrot.slane %v4033_v25, 4  ;;  %v4059_v39 = vrot.slane %v4058_v36, 2  ;;  %v4080_v7 = vadd.f32 %v4079_v17, %v4021_v53  ;;  %v3126_v14 = vadd.f32 %v6458_v43, %v6409_v40 }
 0x489   : > { %v3803_v20 = vrot.slane %v3802_v32, 1  ;;  %v3814_v44 = vrot.slane %v3813_v5, 1  ;;  %v4070_v33 = vrot.slane %v4069_v8, 2  ;;  %v3128_v4 = vadd.f32 %v6458_v43, %v6412_v26 }
 0x48a   : > { %v4102_v2 = vadd.f32 %v4101_v41, %v4033_v25  ;;  %v4060_v21 = vadd.f32 %v4059_v39, %v4058_v36  ;;  %v4081_v30 = vrot.slane %v4080_v7, 2  ;;  %v3222_v45 = vmax.f32 %v3126_v14, 0.0 }
 0x48b   : > { %v6569_v51 = vadd.f32 %v3803_v20, %v3802_v32  ;;  %v6571_v42 = vadd.f32 %v3814_v44, %v3813_v5  ;;  %v4071_v38 = vadd.f32 %v4070_v33, %v4069_v8  ;;  %v3223_v48 = vmax.f32 %v3128_v4, 0.0  ;;  %v6924_v8 = vld [vmem:[#allocation2_spill] sm:$0xff] }
 0x48c   : > { %v3130_v53 = vadd.f32 %v6458_v43, %v6415_v28  ;;  %v4061_v61 = vrot.slane %v4060_v21, 1  ;;  %4657 = vmatprep.mubr.f32.mxu1 %v3222_v45  ;;  %v3132_v26 = vadd.f32 %v6458_v43, %v6421_v9  ;;  %v3134_v25 = vadd.f32 %v6458_v43, %v6424_v55 }
 0x48d   : > { %v3882_v40 = vmax.f32 %v6569_v51, 0.0  ;;  %4658 = vmatmul.mubr.f32.vlgmr.msra.gmra.mrb[104].mxu1 %v3223_v48  ;;  %v3136_v32 = vadd.f32 %v6458_v43, %v6427_v35  ;;  %v3138_v36 = vadd.f32 %v6461_v23, %v6431_v59  ;;  %v3140_v28 = vadd.f32 %v6461_v23, %v6439_v24  ;;  %v6925_v43 = vld [vmem:[#allocation7_spill] sm:$0xff] }
 0x48e   : > { %v3224_v15 = vmax.f32 %v3130_v53, 0.0  ;;  %v3225_v17 = vmax.f32 %v3132_v26, 0.0  ;;  %v3226_v5 = vmax.f32 %v3134_v25, 0.0  ;;  %v3142_v9 = vadd.f32 %v6461_v23, %v6016_v6 }
 0x48f   : > { %v6590_v55 = vadd.f32 %v6461_v23, %v6924_v8  ;;  %v3227_v41 = vmax.f32 %v3136_v32, 0.0  ;;  %v3228_v20 = vmax.f32 %v3138_v36, 0.0  ;;  %v3229_v35 = vmax.f32 %v3140_v28, 0.0  ;;  %v6926_v32 = vld [vmem:[#allocation9_spill] sm:$0xff] }
 0x490   : > { %4660 = vmatprep.mubr.f32.mxu1 %v3224_v15  ;;  %v6594_v59 = vadd.f32 %v6461_v23, %v6925_v43  ;;  %v3230_v39 = vmax.f32 %v3142_v9, 0.0  ;;  %v3221_v14 = vadd.f32 %v6476_v63, %v6406_v62  ;;  %v3790_v6 = vsel %vm6481_vm8, %v6508_v34, 0.0 }
 0x491   : > { %v3231_v24 = vmax.f32 %v6590_v55, 0.0  ;;  %4661 = vmatmul.mubr.f32.gmra.mrb[106].mxu1 %v3225_v17  ;;  %v4039_v33 = vsel %vm3697_vm2, %v6500_v47, 0.0  ;;  %v4045_v4 = vsel %vm3697_vm2, %v6504_v57, 0.0  ;;  %v4062_v45 = vadd.f32 %v4061_v61, %v4060_v21 }
 0x492   : > { %v3232_v44 = vmax.f32 %v6594_v59, 0.0  ;;  %4663 = vmatprep.mubr.f32.mxu1 %v3226_v5  ;;  %v3793_v62 = vsel %vm6490_vm9, %v3221_v14, 0.0  ;;  %v4051_v63 = vsel %vm3697_vm2, %v3221_v14, 0.0  ;;  %v4072_v31 = vrot.slane %v4071_v38, 1 }
 0x493   : > { %v4082_v34 = vadd.f32 %v4081_v30, %v4080_v7  ;;  %v6613_v48 = vadd.f32 %v3793_v62, %v3790_v6  ;;  %v4091_v47 = vadd.f32 %v4090_v49, %v6557_v22  ;;  %v4103_v53 = vrot.slane %v4102_v2, 2 }
 0x494   : > { %v4112_v26 = vrot.slane %v4039_v33, 4  ;;  %v4073_v57 = vadd.f32 %v4072_v31, %v4071_v38  ;;  %v4123_v61 = vrot.slane %v4045_v4, 4  ;;  %v4134_v25 = vrot.slane %v4051_v63, 4 }
 0x495   : > { %v4083_v21 = vrot.slane %v4082_v34, 1  ;;  %4664 = vmatmul.mubr.f32.gmra.mrb[108].mxu1 %v3227_v41  ;;  %v4092_v29 = vrot.slane %v4091_v47, 2  ;;  %v4104_v15 = vadd.f32 %v4103_v53, %v4102_v2  ;;  %v3148_v7 = vadd.f32 %v6461_v23, %v6926_v32  ;;  %v6927_v2 = vld [vmem:[#allocation3_spill] sm:$0xff] }
 0x496   : > { %v4113_v50 = vadd.f32 %v4112_v26, %v4039_v33  ;;  %4666 = vmatprep.mubr.f32.mxu1 %v3228_v20  ;;  %v4124_v36 = vadd.f32 %v4123_v61, %v4045_v4  ;;  %v4135_v22 = vadd.f32 %v4134_v25, %v4051_v63  ;;  %v4148_v49 = vsel %vm3917_vm10, %v4073_v57, %v4062_v45 }
 0x497   : > { %v4084_v30 = vadd.f32 %v4083_v21, %v4082_v34  ;;  %v4093_v28 = vadd.f32 %v4092_v29, %v4091_v47  ;;  %v4105_v38 = vrot.slane %v4104_v15, 1  ;;  %v3233_v5 = vmax.f32 %v3148_v7, 0.0 }
 0x498   : > { %v4114_v17 = vrot.slane %v4113_v50, 2  ;;  %v4125_v9 = vrot.slane %v4124_v36, 2  ;;  %v4136_v8 = vrot.slane %v4135_v22, 2  ;;  %v3150_v41 = vadd.f32 %v6468_v13, %v6927_v2 }
 0x499   : > { %v4149_v55 = vsel %vm3919_vm11, %v4084_v30, %v4148_v49  ;;  %4667 = vmatmul.mubr.f32.gmra.mrb[110].mxu1 %v3229_v35  ;;  %v4094_v23 = vrot.slane %v4093_v28, 1  ;;  %v4106_v20 = vadd.f32 %v4105_v38, %v4104_v15  ;;  %v3825_v59 = vrot.slane %v6563_v0, 1 }
 0x49a   : > { %v4115_v43 = vadd.f32 %v4114_v17, %v4113_v50  ;;  %4669 = vmatprep.mubr.f32.mxu1 %v3230_v39  ;;  %v4126_v14 = vadd.f32 %v4125_v9, %v4124_v36  ;;  %v4137_v6 = vadd.f32 %v4136_v8, %v4135_v22  ;;  %v3234_v33 = vmax.f32 %v3150_v41, 0.0  ;;  %v6928_v17 = vld [vmem:[#allocation4_spill] sm:$0xff] }
 0x49b   : > { %v3834_v4 = vrot.slane %v6551_v11, 2  ;;  %v4095_v45 = vadd.f32 %v4094_v23, %v4093_v28  ;;  %v3826_v63 = vadd.f32 %v3825_v59, %v6563_v0  ;;  %v3846_v31 = vadd.f32 %v3845_v54, %v6553_v10 }
 0x49c   : > { %v4116_v62 = vrot.slane %v4115_v43, 1  ;;  %v4127_v35 = vrot.slane %v4126_v14, 1  ;;  %v4138_v34 = vrot.slane %v4137_v6, 1  ;;  %v3855_v39 = vadd.f32 %v3854_v1, %v6540_v52 }
 0x49d   : > { %v3835_v47 = vadd.f32 %v3834_v4, %v6551_v11  ;;  %4670 = vmatmul.mubr.f32.gmra.mrb[112].mxu1 %v3231_v24  ;;  %v4150_v26 = vsel %vm3921_vm12, %v4095_v45, %v4149_v55  ;;  %v3847_v57 = vrot.slane %v3846_v31, 1  ;;  %v3865_v21 = vrot.slane %v6542_v19, 4  ;;  %v6929_v55 = vld [vmem:[#allocation11_spill] sm:$0xff] }
 0x49e   : > { %v4117_v53 = vadd.f32 %v4116_v62, %v4115_v43  ;;  %4672 = vmatprep.mubr.f32.mxu1 %v3232_v44  ;;  %v4128_v0 = vadd.f32 %v4127_v35, %v4126_v14  ;;  %v4139_v61 = vadd.f32 %v4138_v34, %v4137_v6  ;;  %v4151_v10 = vsel %vm3923_vm13, %v4106_v20, %v4150_v26  ;;  %v6931_v6 = vld [vmem:[#allocation5_spill] sm:$0xff]  ;;  %v6932_v62 = vld [vmem:[#allocation6_spill] sm:$0xff] }
 0x49f   : > { %v3836_v54 = vrot.slane %v3835_v47, 1  ;;  %v3848_v11 = vadd.f32 %v3847_v57, %v3846_v31  ;;  %v3856_v29 = vrot.slane %v3855_v39, 2  ;;  %v3866_v15 = vadd.f32 %v3865_v21, %v6542_v19  ;;  %v6933_v31 = vld [vmem:[#allocation15_spill] sm:$0xff] }
 0x4a0   : > { %v4152_v25 = vsel %vm3925_vm14, %v4117_v53, %v4151_v10  ;;  %v3876_v24 = vrot.slane %v6613_v48, 4  ;;  %v3883_v50 = vmax.f32 %v6571_v42, 0.0  ;;  %v3884_v30 = vmax.f32 %v3826_v63, 0.0 }
 0x4a1   : > { %v4153_v1 = vsel %vm3927_vm15, %v4128_v0, %v4152_v25  ;;  %v3837_v52 = vadd.f32 %v3836_v54, %v3835_v47  ;;  %4673 = vmatmul.mubr.f32.gmra.mrb[114].mxu1 %v3233_v5  ;;  %v3857_v32 = vadd.f32 %v3856_v29, %v3855_v39  ;;  %v3867_v7 = vrot.slane %v3866_v15, 2  ;;  %v6934_v47 = vld [vmem:[#allocation16_spill] sm:$0xff] }
 0x4a2   : > { %v4154_v44 = vsel %vm3929_vm0, %v4139_v61, %v4153_v1  ;;  %4675 = vmatprep.mubr.f32.mxu1 %v3234_v33  ;;  %v3877_v36 = vadd.f32 %v3876_v24, %v6613_v48  ;;  %v3886_v19 = vmax.f32 %v3848_v11, 0.0  ;;  %v3918_v49 = vsel %vm3917_vm10, %v3883_v50, %v3882_v40  ;;  %v6930_v48 = vld [vmem:[#allocation13_spill] sm:$0xff]  ;;  %v6935_v29 = vld [vmem:[#allocation8_spill] sm:$0xff]  ;;  %v6937_v24 = vld [vmem:[#allocation35_spill] sm:$0xff] }
 0x4a3   : > { %4155 = vrot.lane.b32.xlu0 %v4154_v44, %s5018_s15  ;;  %v3885_v22 = vmax.f32 %v3837_v52, 0.0  ;;  %v3858_v28 = vrot.slane %v3857_v32, 1  ;;  %v3868_v38 = vadd.f32 %v3867_v7, %v3866_v15  ;;  %v3920_v42 = vsel %vm3919_vm11, %v3884_v30, %v3918_v49  ;;  %v6940_v7 = vld [vmem:[#allocation17_spill] sm:$0xff]  ;;  %v6943_v49 = vld [vmem:[#allocation19_spill] sm:$0xff] }
 0x4a4   : > { %v3152_v5 = vadd.f32 %v6468_v13, %v6928_v17  ;;  %v3878_v9 = vrot.slane %v3877_v36, 2  ;;  %v3154_v2 = vadd.f32 %v6468_v13, %v6929_v55  ;;  %v3156_v41 = vadd.f32 %v6468_v13, %v6930_v48  ;;  %v6945_v17 = vld [vmem:[#allocation21_spill] sm:$0xff]  ;;  %v6947_v48 = vld [vmem:[#allocation23_spill] sm:$0xff] }
 0x4a5   : > { %v3922_v8 = vsel %vm3921_vm12, %v3885_v22, %v3920_v42  ;;  %v3859_v23 = vadd.f32 %v3858_v28, %v3857_v32  ;;  %v3869_v51 = vrot.slane %v3868_v38, 1  ;;  %v3081_v43 = vrot.slane %v6444_v56, %v6433_v58  ;;  %v6938_v32 = vld [vmem:[#allocation12_spill] sm:$0xff] }
 0x4a6   : > { %v3924_v40 = vsel %vm3923_vm13, %v3886_v19, %v3922_v8  ;;  %v3235_v20 = vmax.f32 %v3152_v5, 0.0  ;;  %v3879_v59 = vadd.f32 %v3878_v9, %v3877_v36  ;;  %v3236_v14 = vmax.f32 %v3154_v2, 0.0  ;;  %v6942_v22 = vld [vmem:[#allocation36_spill] sm:$0xff]  ;;  %v6946_v8 = vld [vmem:[#allocation22_spill] sm:$0xff] }
 0x4a7   : > { %v3158_v33 = vadd.f32 %v6468_v13, %v6931_v6  ;;  %v3870_v4 = vadd.f32 %v3869_v51, %v3868_v38  ;;  %v3887_v45 = vmax.f32 %v3859_v23, 0.0  ;;  %v3160_v63 = vadd.f32 %v6468_v13, %v6932_v62  ;;  %v6944_v38 = vld [vmem:[#allocation20_spill] sm:$0xff] }
 0x4a8   : > { %4676 = vmatmul.mubr.f32.gmra.mrb[116].mxu1 %v3235_v20  ;;  %v3162_v35 = vadd.f32 %v6473_v18, %v6933_v31  ;;  %v3880_v34 = vrot.slane %v3879_v59, 1  ;;  %v3164_v39 = vadd.f32 %v6473_v18, %v6934_v47  ;;  %v3166_v56 = vadd.f32 %v6473_v18, %v6213_v60  ;;  %v6948_v23 = vld [vmem:[#allocation24_spill] sm:$0xff] }
 0x4a9   : > { %4678 = vmatprep.mubr.f32.mxu1 %v3236_v14  ;;  %v3888_v53 = vmax.f32 %v3870_v4, 0.0  ;;  %v3926_v26 = vsel %vm3925_vm14, %v3887_v45, %v3924_v40  ;;  %v3237_v57 = vmax.f32 %v3156_v41, 0.0  ;;  %v3089_v21 = vrot.slane %v6447_v27, %v6433_v58  ;;  %v6949_v40 = vld [vmem:[#allocation25_spill] sm:$0xff]  ;;  %v6952_v6 = vld [vmem:[#allocation28_spill] sm:$0xff] }
 0x4aa   : > { %v3881_v0 = vadd.f32 %v3880_v34, %v3879_v59  ;;  %v3238_v13 = vmax.f32 %v3158_v33, 0.0  ;;  %v3168_v61 = vadd.f32 %v6473_v18, %v6219_v16  ;;  %v3170_v54 = vadd.f32 %v6473_v18, %v6222_v46  ;;  %v6936_v16 = vld [vmem:[#allocation10_spill] sm:$0xff]  ;;  %v6951_v59 = vld [vmem:[#allocation27_spill] sm:$0xff]  ;;  %v6953_v4 = vld [vmem:[#allocation29_spill] sm:$0xff] }
 0x4ab   : > { %v3928_v10 = vsel %vm3927_vm15, %v3888_v53, %v3926_v26  ;;  %v3172_v60 = vadd.f32 %v6473_v18, %v6225_v12  ;;  %v3174_v25 = vadd.f32 %v3081_v43, %v6231_v37  ;;  %v3176_v27 = vadd.f32 %v3081_v43, %v6234_v3  ;;  %v6939_v37 = vld [vmem:[#allocation14_spill] sm:$0xff]  ;;  %v6955_v34 = vld [vmem:[#allocation31_spill] sm:$0xff]  ;;  %v6957_v53 = vld [vmem:[#allocation33_spill] sm:$0xff] }
 0x4ac   : > { %4679 = vmatmul.mubr.f32.gmra.mrb[118].mxu1 %v3237_v57  ;;  %v3889_v11 = vmax.f32 %v3881_v0, 0.0  ;;  %v3178_v15 = vadd.f32 %v3081_v43, %v6935_v29  ;;  %v3239_v1 = vmax.f32 %v3160_v63, 0.0  ;;  %v3180_v52 = vadd.f32 %v3081_v43, %v6936_v16  ;;  %v6941_v3 = vld [vmem:[#allocation18_spill] sm:$0xff] }
 0x4ad   : > { %4681 = vmatprep.mubr.f32.mxu1 %v3238_v13  ;;  %v3097_v50 = vrot.slane %v6937_v24, %v6433_v58  ;;  %v3240_v44 = vmax.f32 %v3162_v35, 0.0  ;;  %v3182_v12 = vadd.f32 %v3081_v43, %v6938_v32  ;;  %v3184_v18 = vadd.f32 %v3081_v43, %v6939_v37  ;;  %v6950_v43 = vld [vmem:[#allocation26_spill] sm:$0xff] }
 0x4ae   : > { %v3930_v46 = vsel %vm3929_vm0, %v3889_v11, %v3928_v10  ;;  %v3186_v30 = vadd.f32 %v3089_v21, %v6940_v7  ;;  %v3188_v36 = vadd.f32 %v3089_v21, %v6941_v3  ;;  %v3105_v19 = vrot.slane %v6942_v22, %v6433_v58  ;;  %v6954_v63 = vld [vmem:[#allocation30_spill] sm:$0xff] }
 0x4af   : > { %4754 = vmatmul.mubr.msk.f32.vlgmr.msra.gmra.mrb[140].mxu0 %vm3931_vm1, %v3930_v46  ;;  %v3190_v28 = vadd.f32 %v3089_v21, %v6943_v49  ;;  %v3192_v42 = vadd.f32 %v3089_v21, %v6944_v38  ;;  %v3194_v5 = vadd.f32 %v3089_v21, %v6945_v17  ;;  %v3241_v9 = vmax.f32 %v3164_v39, 0.0  ;;  %v6956_v39 = vld [vmem:[#allocation32_spill] sm:$0xff]  ;;  %v6958_v57 = vld [vmem:[#allocation34_spill] sm:$0xff] }
 0x4b0   : > { %4682 = vmatmul.mubr.f32.gmra.mrb[120].mxu1 %v3239_v1  ;;  %v3196_v55 = vadd.f32 %v3089_v21, %v6946_v8  ;;  %v3242_v2 = vmax.f32 %v3166_v56, 0.0  ;;  %v3198_v41 = vadd.f32 %v3097_v50, %v6947_v48  ;;  %v3200_v51 = vadd.f32 %v3097_v50, %v6948_v23 }
 0x4b1   : > { %4684 = vmatprep.mubr.f32.mxu1 %v3240_v44  ;;  %v3202_v20 = vadd.f32 %v3097_v50, %v6949_v40  ;;  %v3204_v58 = vadd.f32 %v3097_v50, %v6950_v43  ;;  %v3206_v14 = vadd.f32 %v3097_v50, %v6951_v59  ;;  %v3208_v33 = vadd.f32 %v3097_v50, %v6952_v6 }
 0x4b2   : > { %v3210_v45 = vadd.f32 %v3105_v19, %v6953_v4  ;;  %v3243_v62 = vmax.f32 %v3168_v61, 0.0  ;;  %v3212_v31 = vadd.f32 %v3105_v19, %v6954_v63  ;;  %v3244_v35 = vmax.f32 %v3170_v54, 0.0 }
 0x4b3   : > { %v3214_v47 = vadd.f32 %v3105_v19, %v6955_v34  ;;  %v3216_v56 = vadd.f32 %v3105_v19, %v6956_v39  ;;  %v3218_v26 = vadd.f32 %v3105_v19, %v6957_v53  ;;  %v3220_v21 = vadd.f32 %v3105_v19, %v6958_v57 }
 0x4b4   : > { %4685 = vmatmul.mubr.f32.gmra.mrb[122].mxu1 %v3241_v9  ;;  %v3245_v0 = vmax.f32 %v3172_v60, 0.0  ;;  %v3246_v13 = vmax.f32 %v3174_v25, 0.0  ;;  %v3247_v10 = vmax.f32 %v3176_v27, 0.0  ;;  %v3248_v11 = vmax.f32 %v3178_v15, 0.0 }
 0x4b5   : > { %4687 = vmatprep.mubr.f32.mxu1 %v3242_v2  ;;  %v3249_v61 = vmax.f32 %v3180_v52, 0.0  ;;  %v3250_v54 = vmax.f32 %v3182_v12, 0.0  ;;  %v3251_v29 = vmax.f32 %v3184_v18, 0.0  ;;  %v3252_v1 = vmax.f32 %v3186_v30, 0.0 }
 0x4b6   : > { %v3253_v16 = vmax.f32 %v3188_v36, 0.0  ;;  %v3254_v24 = vmax.f32 %v3190_v28, 0.0  ;;  %v3255_v60 = vmax.f32 %v3192_v42, 0.0  ;;  %v3256_v25 = vmax.f32 %v3194_v5, 0.0  ;;  %v6708_v36 = vld [vmem:[%s6830_s7] ss:$0 sm:$0xff] }
 0x4b7   : > { %v3257_v27 = vmax.f32 %v3196_v55, 0.0  ;;  %v3258_v15 = vmax.f32 %v3198_v41, 0.0  ;;  %v3259_v52 = vmax.f32 %v3200_v51, 0.0  ;;  %v3260_v50 = vmax.f32 %v3202_v20, 0.0 }
 0x4b8   : > { %4688 = vmatmul.mubr.f32.gmra.mrb[124].mxu1 %v3243_v62  ;;  %v3261_v46 = vmax.f32 %v3204_v58, 0.0  ;;  %v3262_v44 = vmax.f32 %v3206_v14, 0.0  ;;  %v3263_v32 = vmax.f32 %v3208_v33, 0.0  ;;  %v3264_v12 = vmax.f32 %v3210_v45, 0.0 }
 0x4b9   : > { %4690 = vmatprep.mubr.f32.mxu1 %v3244_v35  ;;  %v3265_v37 = vmax.f32 %v3212_v31, 0.0  ;;  %v3266_v18 = vmax.f32 %v3214_v47, 0.0  ;;  %v3267_v7 = vmax.f32 %v3216_v56, 0.0  ;;  %v3268_v30 = vmax.f32 %v3218_v26, 0.0  ;;  %v4400_v47 = vld [vmem:[%s6832_s9] ss:$0 sm:$0xff] }
 0x4ba   : > { %v3269_v3 = vmax.f32 %v3220_v21, 0.0  ;;  %vm4158_vm2 = vcmask 39936  }
 0x4bc   : > { %4691 = vmatmul.mubr.f32.gmra.mrb[126].mxu1 %v3245_v0 }
 0x4bd   : > { %4693 = vmatprep.mubr.f32.mxu1 %v3246_v13 }
 0x4c0   : > { %4694 = vmatmul.mubr.f32.gmra.mrb[128].mxu1 %v3247_v10 }
 0x4c1   : > { %4696 = vmatprep.mubr.f32.mxu1 %v3248_v11 }
 0x4c4   : > { %4697 = vmatmul.mubr.f32.gmra.mrb[130].mxu1 %v3249_v61 }
 0x4c5   : > { %4699 = vmatprep.mubr.f32.mxu1 %v3250_v54 }
 0x4c8   : > { %4700 = vmatmul.mubr.f32.gmra.mrb[132].mxu1 %v3251_v29 }
 0x4c9   : > { %4702 = vmatprep.mubr.f32.mxu1 %v3252_v1 }
 0x4cc   : > { %4703 = vmatmul.mubr.f32.gmra.mrb[134].mxu1 %v3253_v16 }
 0x4cd   : > { %4705 = vmatprep.mubr.f32.mxu1 %v3254_v24 }
 0x4d0   : > { %4706 = vmatmul.mubr.f32.gmra.mrb[136].mxu1 %v3255_v60 }
 0x4d1   : > { %4708 = vmatprep.mubr.f32.mxu1 %v3256_v25 }
 0x4d4   : > { %4709 = vmatmul.mubr.f32.gmra.mrb[138].mxu1 %v3257_v27 }
 0x4d5   : > { %4711 = vmatprep.mubr.f32.mxu1 %v3258_v15 }
 0x4d8   : > { %4712 = vmatmul.mubr.f32.gmra.mrb[140].mxu1 %v3259_v52 }
 0x4d9   : > { %4714 = vmatprep.mubr.f32.mxu1 %v3260_v50 }
 0x4dc   : > { %4715 = vmatmul.mubr.f32.gmra.mrb[142].mxu1 %v3261_v46 }
 0x4dd   : > { %4717 = vmatprep.mubr.f32.mxu1 %v3262_v44 }
 0x4e0   : > { %4718 = vmatmul.mubr.f32.gmra.mrb[144].mxu1 %v3263_v32 }
 0x4e1   : > { %4720 = vmatprep.mubr.f32.mxu1 %v3264_v12 }
 0x4e4   : > { %4721 = vmatmul.mubr.f32.gmra.mrb[146].mxu1 %v3265_v37 }
 0x4e5   : > { %4723 = vmatprep.mubr.f32.mxu1 %v3266_v18 }
 0x4e8   : > { %4724 = vmatmul.mubr.f32.gmra.mrb[148].mxu1 %v3267_v7 }
 0x4e9   : > { %4726 = vmatprep.mubr.f32.mxu1 %v3268_v30 }
 0x4ec   : > { %4727 = vmatmul.mubr.f32.gmra.mrb[150].mxu1 %v3269_v3 }
 0x515   : > { %v4156_v13 = vpop.permute.xlu0 %4155 }
 0x560   : > { %v4659_v22 = vpop.f32.mrb[104].mxu1 }
 0x561   : > { %v3365_v19 = vadd.f32 %v4659_v22, %v6708_v36  ;;  %v3359_v49 = vpop.f32.mrb[105].mxu1 }
 0x562   : > { %v3360_v28 = vadd.f32 %v6708_v36, %v3359_v49 }
 0x563   : > { %3599 = vst [vmem:[%s6714_s23 + $0x8] sm:$0xff] %v3365_v19 }
 0x564   : > { %3598 = vst [vmem:[%s6714_s23] sm:$0xff] %v3360_v28  ;;  %v4662_v38 = vpop.f32.mrb[106].mxu1 }
 0x565   : > { %v3375_v42 = vadd.f32 %v4662_v38, %v6708_v36  ;;  %v3369_v17 = vpop.f32.mrb[107].mxu1 }
 0x566   : > { %v3370_v5 = vadd.f32 %v6708_v36, %v3369_v17 }
 0x567   : > { %3601 = vst [vmem:[%s6714_s23 + $0x18] sm:$0xff] %v3375_v42 }
 0x568   : > { %3600 = vst [vmem:[%s6714_s23 + $0x10] sm:$0xff] %v3370_v5  ;;  %v4665_v9 = vpop.f32.mrb[108].mxu1 }
 0x569   : > { %v3385_v8 = vadd.f32 %v4665_v9, %v6708_v36  ;;  %v3379_v55 = vpop.f32.mrb[109].mxu1 }
 0x56a   : > { %v3380_v2 = vadd.f32 %v6708_v36, %v3379_v55 }
 0x56b   : > { %3603 = vst [vmem:[%s6714_s23 + $0x28] sm:$0xff] %v3385_v8 }
 0x56c   : > { %3602 = vst [vmem:[%s6714_s23 + $0x20] sm:$0xff] %v3380_v2  ;;  %v4668_v48 = vpop.f32.mrb[110].mxu1 }
 0x56d   : > { %v3395_v41 = vadd.f32 %v4668_v48, %v6708_v36  ;;  %v3389_v23 = vpop.f32.mrb[111].mxu1 }
 0x56e   : > { %v3390_v51 = vadd.f32 %v6708_v36, %v3389_v23 }
 0x56f   : > { %3605 = vst [vmem:[%s6714_s23 + $0x38] sm:$0xff] %v3395_v41 }
 0x570   : > { %3604 = vst [vmem:[%s6714_s23 + $0x30] sm:$0xff] %v3390_v51  ;;  %v4671_v40 = vpop.f32.mrb[112].mxu1 }
 0x571   : > { %v3405_v20 = vadd.f32 %v4671_v40, %v6708_v36  ;;  %v3399_v43 = vpop.f32.mrb[113].mxu1 }
 0x572   : > { %v3400_v58 = vadd.f32 %v6708_v36, %v3399_v43 }
 0x573   : > { %3607 = vst [vmem:[%s6714_s23 + $0x48] sm:$0xff] %v3405_v20 }
 0x574   : > { %3606 = vst [vmem:[%s6714_s23 + $0x40] sm:$0xff] %v3400_v58  ;;  %v4674_v59 = vpop.f32.mrb[114].mxu1 }
 0x575   : > { %v3415_v14 = vadd.f32 %v4674_v59, %v6708_v36  ;;  %v3409_v6 = vpop.f32.mrb[115].mxu1 }
 0x576   : > { %v3410_v33 = vadd.f32 %v6708_v36, %v3409_v6 }
 0x577   : > { %3609 = vst [vmem:[%s6714_s23 + $0x58] sm:$0xff] %v3415_v14 }
 0x578   : > { %3608 = vst [vmem:[%s6714_s23 + $0x50] sm:$0xff] %v3410_v33 }
 0x57b   : > { %v4677_v4 = vpop.f32.mrb[116].mxu1 }
 0x57c   : > { %v3425_v45 = vadd.f32 %v4677_v4, %v6708_v36  ;;  %v3419_v62 = vpop.f32.mrb[117].mxu1 }
 0x57d   : > { %v3420_v63 = vadd.f32 %v6708_v36, %v3419_v62 }
 0x57e   : > { %3611 = vst [vmem:[%s6714_s23 + $0x68] sm:$0xff] %v3425_v45 }
 0x57f   : > { %3610 = vst [vmem:[%s6714_s23 + $0x60] sm:$0xff] %v3420_v63  ;;  %v4680_v31 = vpop.f32.mrb[118].mxu1 }
 0x580   : > { %v3435_v35 = vadd.f32 %v4680_v31, %v6708_v36  ;;  %v3429_v34 = vpop.f32.mrb[119].mxu1 }
 0x581   : > { %v3430_v39 = vadd.f32 %v6708_v36, %v3429_v34 }
 0x582   : > { %3613 = vst [vmem:[%s6714_s23 + $0x78] sm:$0xff] %v3435_v35  ;;  %v4000_v56 = vpop.f32.mrb[140].mxu0 }
 0x583   : > { %3612 = vst [vmem:[%s6714_s23 + $0x70] sm:$0xff] %v3430_v39  ;;  %v4683_v53 = vpop.f32.mrb[120].mxu1  ;;  %v4001_v26 = vadd.f32 %v4400_v47, %v4000_v56  ;;  %v4755_v57 = vpop.f32.mrb[141].mxu0 }
 0x584   : > { %v3445_v21 = vadd.f32 %v4683_v53, %v6708_v36  ;;  %v3439_v0 = vpop.f32.mrb[121].mxu1 }
 0x585   : > { %v3440_v10 = vadd.f32 %v6708_v36, %v3439_v0  ;;  %v4159_v11 = vsel %vm4158_vm2, %v4001_v26, %v4156_v13 }
 0x586   : > { %3615 = vst [vmem:[%s6714_s23 + $0x88] sm:$0xff] %v3445_v21  ;;  %v4161_v61 = vsel %vm4160_vm3, %v4159_v11, 0.0 }
 0x587   : > { %3614 = vst [vmem:[%s6714_s23 + $0x80] sm:$0xff] %v3440_v10  ;;  %v4686_v54 = vpop.f32.mrb[122].mxu1  ;;  %4162 = vst [vmem:[%s469_s29] sm:$0xff] %v4161_v61 }
 0x588   : > { %v3455_v29 = vadd.f32 %v4686_v54, %v6708_v36  ;;  %v3449_v1 = vpop.f32.mrb[123].mxu1 }
 0x589   : > { %v3450_v16 = vadd.f32 %v6708_v36, %v3449_v1 }
 0x58a   : > { %3617 = vst [vmem:[%s6714_s23 + $0x98] sm:$0xff] %v3455_v29 }
 0x58b   : > { %3616 = vst [vmem:[%s6714_s23 + $0x90] sm:$0xff] %v3450_v16  ;;  %v4689_v24 = vpop.f32.mrb[124].mxu1 }
 0x58c   : > { %v3465_v60 = vadd.f32 %v4689_v24, %v6708_v36  ;;  %v3459_v25 = vpop.f32.mrb[125].mxu1 }
 0x58d   : > { %v3460_v27 = vadd.f32 %v6708_v36, %v3459_v25 }
 0x58e   : > { %3619 = vst [vmem:[%s6714_s23 + $0xa8] sm:$0xff] %v3465_v60 }
 0x58f   : > { %3618 = vst [vmem:[%s6714_s23 + $0xa0] sm:$0xff] %v3460_v27  ;;  %v4692_v15 = vpop.f32.mrb[126].mxu1 }
 0x590   : > { %v3475_v52 = vadd.f32 %v4692_v15, %v6708_v36  ;;  %v3469_v50 = vpop.f32.mrb[127].mxu1 }
 0x591   : > { %v3470_v46 = vadd.f32 %v6708_v36, %v3469_v50 }
 0x592   : > { %3621 = vst [vmem:[%s6714_s23 + $0xb8] sm:$0xff] %v3475_v52 }
 0x593   : > { %3620 = vst [vmem:[%s6714_s23 + $0xb0] sm:$0xff] %v3470_v46  ;;  %v4695_v44 = vpop.f32.mrb[128].mxu1 }
 0x594   : > { %v3485_v32 = vadd.f32 %v4695_v44, %v6708_v36  ;;  %v3479_v12 = vpop.f32.mrb[129].mxu1 }
 0x595   : > { %v3480_v37 = vadd.f32 %v6708_v36, %v3479_v12 }
 0x596   : > { %3623 = vst [vmem:[%s6714_s23 + $0xc8] sm:$0xff] %v3485_v32 }
 0x597   : > { %3622 = vst [vmem:[%s6714_s23 + $0xc0] sm:$0xff] %v3480_v37  ;;  %v4698_v18 = vpop.f32.mrb[130].mxu1 }
 0x598   : > { %v3495_v7 = vadd.f32 %v4698_v18, %v6708_v36  ;;  %v3489_v30 = vpop.f32.mrb[131].mxu1 }
 0x599   : > { %v3490_v3 = vadd.f32 %v6708_v36, %v3489_v30 }
 0x59a   : > { %3625 = vst [vmem:[%s6714_s23 + $0xd8] sm:$0xff] %v3495_v7 }
 0x59b   : > { %3624 = vst [vmem:[%s6714_s23 + $0xd0] sm:$0xff] %v3490_v3  ;;  %v4701_v22 = vpop.f32.mrb[132].mxu1 }
 0x59c   : > { %v3505_v19 = vadd.f32 %v4701_v22, %v6708_v36  ;;  %v3499_v49 = vpop.f32.mrb[133].mxu1 }
 0x59d   : > { %v3500_v28 = vadd.f32 %v6708_v36, %v3499_v49 }
 0x59e   : > { %3627 = vst [vmem:[%s6714_s23 + $0xe8] sm:$0xff] %v3505_v19 }
 0x59f   : > { %3626 = vst [vmem:[%s6714_s23 + $0xe0] sm:$0xff] %v3500_v28  ;;  %v4704_v38 = vpop.f32.mrb[134].mxu1 }
 0x5a0   : > { %v3515_v42 = vadd.f32 %v4704_v38, %v6708_v36  ;;  %v3509_v17 = vpop.f32.mrb[135].mxu1 }
 0x5a1   : > { %v3510_v5 = vadd.f32 %v6708_v36, %v3509_v17 }
 0x5a2   : > { %3629 = vst [vmem:[%s6714_s23 + $0xf8] sm:$0xff] %v3515_v42 }
 0x5a3   : > { %3628 = vst [vmem:[%s6714_s23 + $0xf0] sm:$0xff] %v3510_v5  ;;  %v4707_v9 = vpop.f32.mrb[136].mxu1 }
 0x5a4   : > { %v3525_v8 = vadd.f32 %v4707_v9, %v6708_v36  ;;  %v3519_v55 = vpop.f32.mrb[137].mxu1 }
 0x5a5   : > { %v3520_v2 = vadd.f32 %v6708_v36, %v3519_v55 }
 0x5a6   : > { %3631 = vst [vmem:[%s6714_s23 + $0x108] sm:$0xff] %v3525_v8 }
 0x5a7   : > { %3630 = vst [vmem:[%s6714_s23 + $0x100] sm:$0xff] %v3520_v2  ;;  %v4710_v48 = vpop.f32.mrb[138].mxu1 }
 0x5a8   : > { %v3535_v41 = vadd.f32 %v4710_v48, %v6708_v36  ;;  %v3529_v23 = vpop.f32.mrb[139].mxu1 }
 0x5a9   : > { %v3530_v51 = vadd.f32 %v6708_v36, %v3529_v23 }
 0x5aa   : > { %3633 = vst [vmem:[%s6714_s23 + $0x118] sm:$0xff] %v3535_v41 }
 0x5ab   : > { %3632 = vst [vmem:[%s6714_s23 + $0x110] sm:$0xff] %v3530_v51  ;;  %v4713_v40 = vpop.f32.mrb[140].mxu1 }
 0x5ac   : > { %v3545_v20 = vadd.f32 %v4713_v40, %v6708_v36  ;;  %v3539_v43 = vpop.f32.mrb[141].mxu1 }
 0x5ad   : > { %v3540_v58 = vadd.f32 %v6708_v36, %v3539_v43 }
 0x5ae   : > { %3635 = vst [vmem:[%s6714_s23 + $0x128] sm:$0xff] %v3545_v20 }
 0x5af   : > { %3634 = vst [vmem:[%s6714_s23 + $0x120] sm:$0xff] %v3540_v58  ;;  %v4716_v59 = vpop.f32.mrb[142].mxu1 }
 0x5b0   : > { %v3555_v14 = vadd.f32 %v4716_v59, %v6708_v36  ;;  %v3549_v6 = vpop.f32.mrb[143].mxu1 }
 0x5b1   : > { %v3550_v33 = vadd.f32 %v6708_v36, %v3549_v6 }
 0x5b2   : > { %3637 = vst [vmem:[%s6714_s23 + $0x138] sm:$0xff] %v3555_v14 }
 0x5b3   : > { %3636 = vst [vmem:[%s6714_s23 + $0x130] sm:$0xff] %v3550_v33  ;;  %v4719_v4 = vpop.f32.mrb[144].mxu1 }
 0x5b4   : > { %v3565_v45 = vadd.f32 %v4719_v4, %v6708_v36  ;;  %v3559_v62 = vpop.f32.mrb[145].mxu1 }
 0x5b5   : > { %v3560_v63 = vadd.f32 %v6708_v36, %v3559_v62 }
 0x5b6   : > { %3639 = vst [vmem:[%s6714_s23 + $0x148] sm:$0xff] %v3565_v45 }
 0x5b7   : > { %3638 = vst [vmem:[%s6714_s23 + $0x140] sm:$0xff] %v3560_v63  ;;  %v4722_v31 = vpop.f32.mrb[146].mxu1 }
 0x5b8   : > { %v3575_v35 = vadd.f32 %v4722_v31, %v6708_v36  ;;  %v3569_v34 = vpop.f32.mrb[147].mxu1 }
 0x5b9   : > { %v3570_v47 = vadd.f32 %v6708_v36, %v3569_v34 }
 0x5ba   : > { %3641 = vst [vmem:[%s6714_s23 + $0x158] sm:$0xff] %v3575_v35 }
 0x5bb   : > { %3640 = vst [vmem:[%s6714_s23 + $0x150] sm:$0xff] %v3570_v47  ;;  %v4725_v39 = vpop.f32.mrb[148].mxu1 }
 0x5bc   : > { %v3585_v56 = vadd.f32 %v4725_v39, %v6708_v36  ;;  %v3579_v53 = vpop.f32.mrb[149].mxu1 }
 0x5bd   : > { %v3580_v26 = vadd.f32 %v6708_v36, %v3579_v53 }
 0x5be   : > { %3643 = vst [vmem:[%s6714_s23 + $0x168] sm:$0xff] %v3585_v56 }
 0x5bf   : > { %3642 = vst [vmem:[%s6714_s23 + $0x160] sm:$0xff] %v3580_v26  ;;  %v4728_v57 = vpop.f32.mrb[150].mxu1 }
 0x5c0   : > { %v3595_v21 = vadd.f32 %v4728_v57, %v6708_v36  ;;  %v3589_v0 = vpop.f32.mrb[151].mxu1 }
 0x5c1   : > { %v3590_v13 = vadd.f32 %v6708_v36, %v3589_v0 }
 0x5c2   : > { %3645 = vst [vmem:[%s6714_s23 + $0x178] sm:$0xff] %v3595_v21 }
 0x5c3   : > { %3644 = vst [vmem:[%s6714_s23 + $0x170] sm:$0xff] %v3590_v13 }
 0x5c4 PF: > { %s22_s17 = sadd.s32 1, %s5011_s17  }
 0x5c5   : > { %p19_p5 = scmp.ge.s32.totalorder %s22_s17, 4  }
 0x5c7   :  { %21 = sbr.rel (!%p19_p5) target bundleno = 1 (0x1), region = 111 }

</bundles_post_ra>
